<compile_context>
chip_gen: v7x
topology: tpu7x:2x2x1
jax: 0.10.0
libtpu: 0.0.40
codegen_flags: <defaults>
</compile_context>

<pallas_src>
import math

import jax
import jax.numpy as jnp
from jax import lax
from jax.experimental import pallas as pl
from jax.experimental.pallas import tpu as pltpu


def _round_up(x, m):
    return ((x + m - 1) // m) * m


def _nbytes(shape, dtype):
    return math.prod(shape) * jnp.dtype(dtype).itemsize


def _default_gate_dtype():
    """bf16 gate math only where the VPU/EUP support it (v6e / v7x); f32 elsewhere."""
    try:
        kind = jax.devices()[0].device_kind.lower()
    except Exception:
        return jnp.float32
    if "v6" in kind or "v7" in kind or "7x" in kind:
        return jnp.bfloat16
    return jnp.float32


# --------------------------------------------------------------------------------------
# Kernel
# --------------------------------------------------------------------------------------
def sent_gru_kernel(emb_ref, lens_ref, wih_ref, bih_ref,
                    whh_f_ref, whh_b_ref, bhn_f_ref, bhn_b_ref,
                    out_ref, gx_ref):
    TB, D = emb_ref.shape            # (T*tb, D_pad)  flattened time-major batch tile
    tb, H = out_ref.shape            # (block_b, H_pad)
    T = TB // tb
    H3 = 3 * H
    cdt = wih_ref.dtype              # matmul-operand dtype (bf16)
    gdt = gx_ref.dtype               # gate / elementwise dtype (f32, or bf16 on v6e/v7x)

    # ---- hoisted input projection: ONE MXU matmul for all timesteps & both directions.
    # Column order [r_f | z_f | n_f | r_b | z_b | n_b], each gate lane-padded to H.
    # b_ih (all gates) + b_hh (r,z) are pre-folded into bih. Single wide lane-dense store.
    gx = jnp.dot(emb_ref[...], wih_ref[...], preferred_element_type=jnp.float32)
    gx_ref[...] = (gx + bih_ref[...]).astype(gdt)

    lens = lens_ref[...]             # (tb, 1) f32 valid lengths (0 for padded rows)

    # grid-invariant weights loaded once (hoisted out of the recurrence)
    whh_f = whh_f_ref[...]           # (H, 3H) gate-concatenated [r|z|n]
    whh_b = whh_b_ref[...]
    # b_hh(n) cannot be folded into gx (it sits inside the r* term); broadcast ONCE here.
    bhn_f = jnp.broadcast_to(bhn_f_ref[...].astype(gdt), (tb, H))
    bhn_b = jnp.broadcast_to(bhn_b_ref[...].astype(gdt), (tb, H))

    zeros = jnp.zeros((tb, H), jnp.float32)

    # ---- fused bidirectional recurrence: fwd at t=i, bwd at t=T-1-i -------------------
    def step(i, carry):
        h_f, h_b, acc = carry
        t_f = i
        t_b = (T - 1) - i
        row_f = pl.multiple_of(t_f * tb, tb)
        row_b = pl.multiple_of(t_b * tb, tb)

        # ONE recurrent matmul per direction (all three gates fused along lanes)
        gh_f = jnp.dot(h_f.astype(cdt), whh_f,
                       preferred_element_type=jnp.float32).astype(gdt)
        gh_b = jnp.dot(h_b.astype(cdt), whh_b,
                       preferred_element_type=jnp.float32).astype(gdt)

        gx_f = gx_ref[pl.ds(row_f, tb), pl.ds(0, H3)]     # lane-aligned (H % 128 == 0)
        gx_b = gx_ref[pl.ds(row_b, tb), pl.ds(H3, H3)]

        # GRU cell, gate order [r, z, n]; carries stay f32
        r_f = jax.nn.sigmoid(gx_f[:, 0:H] + gh_f[:, 0:H])
        z_f = jax.nn.sigmoid(gx_f[:, H:2 * H] + gh_f[:, H:2 * H])
        n_f = jnp.tanh(gx_f[:, 2 * H:H3] + r_f * (gh_f[:, 2 * H:H3] + bhn_f))
        hf_new = n_f + z_f * (h_f - n_f)                  # == (1-z)*n + z*h

        r_b = jax.nn.sigmoid(gx_b[:, 0:H] + gh_b[:, 0:H])
        z_b = jax.nn.sigmoid(gx_b[:, H:2 * H] + gh_b[:, H:2 * H])
        n_b = jnp.tanh(gx_b[:, 2 * H:H3] + r_b * (gh_b[:, 2 * H:H3] + bhn_b))
        hb_new = n_b + z_b * (h_b - n_b)

        m_f = lens > t_f.astype(jnp.float32)              # (tb, 1) valid-token masks
        m_b = lens > t_b.astype(jnp.float32)

        h_f = jnp.where(m_f, hf_new, h_f)                 # frozen past the sequence end
        h_b = jnp.where(m_b, hb_new, h_b)
        acc = acc + jnp.where(m_f, hf_new, 0.0) + jnp.where(m_b, hb_new, 0.0)
        return h_f, h_b, acc

    # full unroll only for small configs (large H / long T would spill; sweep in prod)
    unroll = True if (T <= 16 and H <= 256) else 2
    _, _, acc = lax.fori_loop(0, T, step, (zeros, zeros, zeros), unroll=unroll)

    # sent = sum_t((h_f + h_b)/2 * mask) / len ; exact divide (once per tile);
    # max(.,1) guards padded / empty rows.
    inv_len = 1.0 / jnp.maximum(lens, 1.0)
    out_ref[...] = (acc * (0.5 * inv_len)).astype(out_ref.dtype)


# --------------------------------------------------------------------------------------
# One-time parameter repacking (load time, NOT per forward call)
# --------------------------------------------------------------------------------------
def prepare_params(params, *, matmul_dtype=jnp.bfloat16):
    """Repack PyTorch-layout GRU weights into the kernel layout (done once).

    Pads dim_word / hidden to lane multiples of 128, folds b_ih (+ b_hh for r,z) into the
    hoisted input projection, gate-concatenates W_hh per direction, casts MXU operands
    to bf16.  Zero padding is exactly neutral: padded hidden columns stay 0 forever.
    """
    emb = params["embedding"]
    D = emb.shape[1]
    H = params["weight_hh_l0"].shape[1]
    D_pad = _round_up(D, 128)
    H_pad = _round_up(H, 128)

    emb_pad = jnp.zeros((emb.shape[0], D_pad), jnp.float32).at[:, :D].set(emb)

    def _wih_dir(w_ih):                  # (3H, D) -> (D_pad, 3*H_pad), columns [r|z|n]
        w = jnp.zeros((D_pad, 3 * H_pad), jnp.float32)
        for g in range(3):
            w = w.at[:D, g * H_pad:g * H_pad + H].set(w_ih[g * H:(g + 1) * H, :].T)
        return w

    def _whh_dir(w_hh):                  # (3H, H) -> (H_pad, 3*H_pad), columns [r|z|n]
        w = jnp.zeros((H_pad, 3 * H_pad), jnp.float32)
        for g in range(3):
            w = w.at[:H, g * H_pad:g * H_pad + H].set(w_hh[g * H:(g + 1) * H, :].T)
        return w

    def _bias_dir(b_ih, b_hh):           # fold b_ih (all gates) + b_hh (r,z); n keeps b_ih
        b = jnp.zeros((3 * H_pad,), jnp.float32)
        for g in range(3):
            v = b_ih[g * H:(g + 1) * H]
            if g < 2:
                v = v + b_hh[g * H:(g + 1) * H]
            b = b.at[g * H_pad:g * H_pad + H].set(v)
        return b

    def _bhn_dir(b_hh):                  # b_hh for the n gate (cannot be folded)
        return jnp.zeros((1, H_pad), jnp.float32).at[0, :H].set(b_hh[2 * H:3 * H])

    w_ih_cat = jnp.concatenate(
        [_wih_dir(params["weight_ih_l0"]), _wih_dir(params["weight_ih_l0_reverse"])],
        axis=1).astype(matmul_dtype)                               # (D_pad, 6*H_pad)
    b_cat = jnp.concatenate(
        [_bias_dir(params["bias_ih_l0"], params["bias_hh_l0"]),
         _bias_dir(params["bias_ih_l0_reverse"], params["bias_hh_l0_reverse"])]
    )[None, :].astype(jnp.float32)                                 # (1, 6*H_pad)

    return {
        "embedding": emb_pad.astype(matmul_dtype),
        "w_ih_cat": w_ih_cat,
        "b_cat": b_cat,
        "whh_f": _whh_dir(params["weight_hh_l0"]).astype(matmul_dtype),
        "whh_b": _whh_dir(params["weight_hh_l0_reverse"]).astype(matmul_dtype),
        "bhn_f": _bhn_dir(params["bias_hh_l0"]),
        "bhn_b": _bhn_dir(params["bias_hh_l0_reverse"]),
        "dim_word": D, "hidden": H, "D_pad": D_pad, "H_pad": H_pad,
        "matmul_dtype": matmul_dtype,
    }


# --------------------------------------------------------------------------------------
# Forward wrapper
# --------------------------------------------------------------------------------------
def sent_encoder_forward(cap_ids, cap_lens, packed, *, block_b_max=128, gate_dtype=None):
    """cap_ids: int32 (B, T); cap_lens: float (B,). Returns (B, hidden) float32."""
    if gate_dtype is None:
        gate_dtype = _default_gate_dtype()
    B, T = cap_ids.shape
    D_pad, H_pad, H = packed["D_pad"], packed["H_pad"], packed["hidden"]
    mdt = packed["matmul_dtype"]

    # --- glue: embedding lookup gathered directly time-major; eval dropout = identity ---
    emb_tm = jnp.take(packed["embedding"], cap_ids.T, axis=0)      # (T, B, D_pad)

    # --- pad the batch to a multiple of 16 (bf16 sublane packing); pick the batch tile ---
    b_pad = _round_up(B, 16)
    block_b = min(_round_up(block_b_max, 16), b_pad)
    b_pad = _round_up(b_pad, block_b)
    # keep >=2 grid tiles when the batch allows it (v7x: 2 TensorCores per chip)
    if b_pad // block_b < 2 and b_pad >= 32 and (b_pad // 2) % 8 == 0:
        block_b = b_pad // 2
    n_tiles = b_pad // block_b

    emb_tm = jnp.pad(emb_tm, ((0, 0), (0, b_pad - B), (0, 0)))
    # flatten time-major per batch tile in the wrapper (no in-kernel VMEM->VMEM copy)
    emb_flat = (emb_tm.reshape(T, n_tiles, block_b, D_pad)
                      .transpose(1, 0, 2, 3)
                      .reshape(n_tiles, T * block_b, D_pad))
    lens = jnp.pad(cap_lens.astype(jnp.float32), (0, b_pad - B)).reshape(b_pad, 1)

    # --- explicit VMEM budget (default scoped limits: 16 MiB v5e / 32 MiB v6e,v7x) ---
    need = (2 * _nbytes((T * block_b, D_pad), mdt)                 # emb tile, dbl-buffered
            + 2 * _nbytes((block_b, 1), jnp.float32)
            + 2 * (_nbytes((D_pad, 6 * H_pad), mdt)                # weights, dbl-buffered
                   + _nbytes((1, 6 * H_pad), jnp.float32)
                   + 2 * _nbytes((H_pad, 3 * H_pad), mdt)
                   + 2 * _nbytes((1, H_pad), jnp.float32))
            + 2 * _nbytes((block_b, H_pad), jnp.float32)           # out, dbl-buffered
            + _nbytes((T * block_b, 6 * H_pad), gate_dtype))       # gx scratch
    vmem_limit = int(min(max(32 << 20, int(need * 1.5) + (2 << 20)), 100 << 20))

    out = pl.pallas_call(
        sent_gru_kernel,
        out_shape=jax.ShapeDtypeStruct((b_pad, H_pad), jnp.float32),
        grid_spec=pltpu.PrefetchScalarGridSpec(
            num_scalar_prefetch=0,
            grid=(n_tiles,),
            in_specs=[
                # embeddings, already flattened time-major per tile (leading dim squeezed)
                pl.BlockSpec((None, T * block_b, D_pad), lambda j: (j, 0, 0)),
                pl.BlockSpec((block_b, 1), lambda j: (j, 0)),          # lengths
                # grid-invariant weights / biases
                # TODO(synk): on v7x add pipeline_mode=pl.Buffered(1) to these constant
                # specs so they are not double-buffered (saves a few MiB of VMEM).
                pl.BlockSpec((D_pad, 6 * H_pad), lambda j: (0, 0)),    # W_ih (both dirs)
                pl.BlockSpec((1, 6 * H_pad), lambda j: (0, 0)),        # folded biases
                pl.BlockSpec((H_pad, 3 * H_pad), lambda j: (0, 0)),    # W_hh fwd [r|z|n]
                pl.BlockSpec((H_pad, 3 * H_pad), lambda j: (0, 0)),    # W_hh bwd [r|z|n]
                pl.BlockSpec((1, H_pad), lambda j: (0, 0)),            # b_hh(n) fwd
                pl.BlockSpec((1, H_pad), lambda j: (0, 0)),            # b_hh(n) bwd
            ],
            out_specs=pl.BlockSpec((block_b, H_pad), lambda j: (j, 0)),  # lane-dense out
            scratch_shapes=[pltpu.VMEM((T * block_b, 6 * H_pad), gate_dtype)],
        ),
        compiler_params=pltpu.CompilerParams(
            dimension_semantics=("parallel",),        # batch tiles are independent
            vmem_limit_bytes=vmem_limit),
    )(emb_flat, lens, packed["w_ih_cat"], packed["b_cat"],
      packed["whh_f"], packed["whh_b"], packed["bhn_f"], packed["bhn_b"])

    return out[:B, :H]


# --------------------------------------------------------------------------------------
# Pure-JAX f32 reference (mirrors the PyTorch module, eval mode)
# --------------------------------------------------------------------------------------
def reference_forward(cap_ids, cap_lens, params):
    emb = jnp.take(params["embedding"], cap_ids, axis=0)            # (B, T, D)
    B, T, D = emb.shape
    H = params["weight_hh_l0"].shape[1]
    lens = cap_lens.astype(jnp.float32)

    def gru_cell(x, h, w_ih, w_hh, b_ih, b_hh):
        gx = x @ w_ih.T + b_ih
        gh = h @ w_hh.T + b_hh
        r = jax.nn.sigmoid(gx[:, :H] + gh[:, :H])
        z = jax.nn.sigmoid(gx[:, H:2 * H] + gh[:, H:2 * H])
        n = jnp.tanh(gx[:, 2 * H:] + r * gh[:, 2 * H:])
        return (1 - z) * n + z * h

    h = jnp.zeros((B, H)); outs_f = []
    for t in range(T):
        hn = gru_cell(emb[:, t], h, params["weight_ih_l0"], params["weight_hh_l0"],
                      params["bias_ih_l0"], params["bias_hh_l0"])
        m = (t < lens).astype(jnp.float32)[:, None]
        h = m * hn + (1 - m) * h
        outs_f.append(m * h)
    h = jnp.zeros((B, H)); outs_b = [None] * T
    for t in range(T - 1, -1, -1):
        hn = gru_cell(emb[:, t], h, params["weight_ih_l0_reverse"],
                      params["weight_hh_l0_reverse"],
                      params["bias_ih_l0_reverse"], params["bias_hh_l0_reverse"])
        m = (t < lens).astype(jnp.float32)[:, None]
        h = m * hn + (1 - m) * h
        outs_b[t] = m * h
    hiddens = (jnp.stack(outs_f, 1) + jnp.stack(outs_b, 1)) / 2.0
    return jnp.sum(hiddens, axis=1) / lens[:, None]


def make_params(key, num_words, dim_word, hidden):
    # init_weights(): orthogonal RNN weights, zero biases (GRU -> no LSTM bias fill).
    # Embedding: deterministic normal init (synthetic, not a checkpoint load).
    k_emb, k1, k2, k3, k4 = jax.random.split(key, 5)
    orth = jax.nn.initializers.orthogonal()
    return {
        "embedding": jax.random.normal(k_emb, (num_words, dim_word), jnp.float32),
        "weight_ih_l0": orth(k1, (3 * hidden, dim_word), jnp.float32),
        "weight_hh_l0": orth(k2, (3 * hidden, hidden), jnp.float32),
        "bias_ih_l0": jnp.zeros((3 * hidden,), jnp.float32),
        "bias_hh_l0": jnp.zeros((3 * hidden,), jnp.float32),
        "weight_ih_l0_reverse": orth(k3, (3 * hidden, dim_word), jnp.float32),
        "weight_hh_l0_reverse": orth(k4, (3 * hidden, hidden), jnp.float32),
        "bias_ih_l0_reverse": jnp.zeros((3 * hidden,), jnp.float32),
        "bias_hh_l0_reverse": jnp.zeros((3 * hidden,), jnp.float32),
    }


if __name__ == "__main__":
    # Small config: num_words=50, dim_word=32, rnn_hidden_size=32,
    # num_layers=1, bidirectional=True, rnn_type='gru', dropout (eval) = identity.
    num_words, dim_word, hidden = 50, 32, 32
    B, T = 2, 8

    key = jax.random.PRNGKey(0)
    k_params, k_ids = jax.random.split(key)
    params = make_params(k_params, num_words, dim_word, hidden)

    cap_ids = jax.random.randint(k_ids, (B, T), 0, num_words, dtype=jnp.int32)
    cap_lens = jnp.array([8.0, 5.0], dtype=jnp.float32)         # (batch,) float lengths

    packed = prepare_params(params)             # one-time weight repacking (load time)
    gate_dtype = _default_gate_dtype()

    out = jax.block_until_ready(
        sent_encoder_forward(cap_ids, cap_lens, packed, gate_dtype=gate_dtype))
    ref = reference_forward(cap_ids, cap_lens, params)

    assert out.shape == (B, hidden)
    # Tolerance reflects bf16 matmul operands (+ bf16 gate math on v6e/v7x) vs f32 ref.
    tol = 3e-2 if gate_dtype == jnp.float32 else 5e-2
    max_err = float(jnp.max(jnp.abs(out - ref)))
    assert jnp.allclose(out, ref, atol=tol, rtol=tol), \
        f"mismatch vs reference (max abs err {max_err})"

    # TODO(synk): training-mode dropout and return_dense / return_all_word_embeddings
    # paths are not exercised (eval-mode pooled output only).
    print("KERNEL_OK")
</pallas_src>

<mosaic_0001>
module attributes {stable_mosaic.version = 11 : i64} {
  func.func @sent_gru_kernel(%arg0: i32, %arg1: memref<1x128x128xbf16, #tpu.memory_space<vmem>>, %arg2: memref<16x1xf32, #tpu.memory_space<vmem>>, %arg3: memref<128x768xbf16, #tpu.memory_space<vmem>>, %arg4: memref<1x768xf32, #tpu.memory_space<vmem>>, %arg5: memref<128x384xbf16, #tpu.memory_space<vmem>>, %arg6: memref<128x384xbf16, #tpu.memory_space<vmem>>, %arg7: memref<1x128xf32, #tpu.memory_space<vmem>>, %arg8: memref<1x128xf32, #tpu.memory_space<vmem>>, %arg9: memref<16x128xf32, #tpu.memory_space<vmem>>, %arg10: memref<128x768xf32, #tpu.memory_space<vmem>>) attributes {dimension_semantics = [#tpu.dimension_semantics<parallel>], iteration_bounds = array<i64: 1>, scalar_prefetch = 0 : i64, scratch_operands = 1 : i64, tpu.core_type = #tpu.core_type<tc>, window_params = [{transform_indices = @transform_0, window_bounds = array<i64: 1, 128, 128>}, {transform_indices = @transform_1, window_bounds = array<i64: 16, 1>}, {pipeline_mode = #tpu.pipeline_mode<synchronous>, transform_indices = @transform_2, window_bounds = array<i64: 128, 768>}, {pipeline_mode = #tpu.pipeline_mode<synchronous>, transform_indices = @transform_3, window_bounds = array<i64: 1, 768>}, {pipeline_mode = #tpu.pipeline_mode<synchronous>, transform_indices = @transform_4, window_bounds = array<i64: 128, 384>}, {pipeline_mode = #tpu.pipeline_mode<synchronous>, transform_indices = @transform_5, window_bounds = array<i64: 128, 384>}, {pipeline_mode = #tpu.pipeline_mode<synchronous>, transform_indices = @transform_6, window_bounds = array<i64: 1, 128>}, {pipeline_mode = #tpu.pipeline_mode<synchronous>, transform_indices = @transform_7, window_bounds = array<i64: 1, 128>}, {transform_indices = @transform_8, window_bounds = array<i64: 16, 128>}]} {
    %c0 = arith.constant 0 : index
    %c0_0 = arith.constant 0 : index
    %c0_1 = arith.constant 0 : index
    %0 = vector.load %arg1[%c0, %c0_0, %c0_1] : memref<1x128x128xbf16, #tpu.memory_space<vmem>>, vector<1x128x128xbf16>
    %1 = vector.shape_cast %0 : vector<1x128x128xbf16> to vector<128x128xbf16>
    %c0_2 = arith.constant 0 : index
    %c0_3 = arith.constant 0 : index
    %2 = vector.load %arg3[%c0_2, %c0_3] : memref<128x768xbf16, #tpu.memory_space<vmem>>, vector<128x768xbf16>
    %cst = arith.constant dense<0.000000e+00> : vector<128x768xf32>
    %3 = tpu.matmul %1, %2, %cst {dimension_numbers = #tpu.dot_dimension_numbers<[1], [0], [0], [1], [0, 0, 1, 1], [], []>} : vector<128x128xbf16>, vector<128x768xbf16>, vector<128x768xf32> -> vector<128x768xf32>
    %c0_4 = arith.constant 0 : index
    %c0_5 = arith.constant 0 : index
    %4 = vector.load %arg4[%c0_4, %c0_5] : memref<1x768xf32, #tpu.memory_space<vmem>>, vector<1x768xf32>
    %5 = vector.broadcast %4 : vector<1x768xf32> to vector<128x768xf32>
    %6 = arith.addf %3, %5 : vector<128x768xf32>
    %c0_6 = arith.constant 0 : index
    %c0_7 = arith.constant 0 : index
    %7 = vector.load %arg10[%c0_6, %c0_7] : memref<128x768xf32, #tpu.memory_space<vmem>>, vector<128x768xf32>
    tpu.vector_store %arg10[%c0_6, %c0_7], %6 {strides = array<i32>} : memref<128x768xf32, #tpu.memory_space<vmem>>, vector<128x768xf32>,
    %c0_8 = arith.constant 0 : index
    %c0_9 = arith.constant 0 : index
    %8 = vector.load %arg2[%c0_8, %c0_9] : memref<16x1xf32, #tpu.memory_space<vmem>>, vector<16x1xf32>
    %c0_10 = arith.constant 0 : index
    %c0_11 = arith.constant 0 : index
    %9 = vector.load %arg5[%c0_10, %c0_11] : memref<128x384xbf16, #tpu.memory_space<vmem>>, vector<128x384xbf16>
    %c0_12 = arith.constant 0 : index
    %c0_13 = arith.constant 0 : index
    %10 = vector.load %arg6[%c0_12, %c0_13] : memref<128x384xbf16, #tpu.memory_space<vmem>>, vector<128x384xbf16>
    %c0_14 = arith.constant 0 : index
    %c0_15 = arith.constant 0 : index
    %11 = vector.load %arg7[%c0_14, %c0_15] : memref<1x128xf32, #tpu.memory_space<vmem>>, vector<1x128xf32>
    %12 = vector.shape_cast %11 : vector<1x128xf32> to vector<1x128xf32>
    %13 = vector.broadcast %12 : vector<1x128xf32> to vector<16x128xf32>
    %c0_16 = arith.constant 0 : index
    %c0_17 = arith.constant 0 : index
    %14 = vector.load %arg8[%c0_16, %c0_17] : memref<1x128xf32, #tpu.memory_space<vmem>>, vector<1x128xf32>
    %15 = vector.shape_cast %14 : vector<1x128xf32> to vector<1x128xf32>
    %16 = vector.broadcast %15 : vector<1x128xf32> to vector<16x128xf32>
    %cst_18 = arith.constant 0.000000e+00 : f32
    %17 = vector.broadcast %cst_18 : f32 to vector<16x128xf32>
    %c0_i32 = arith.constant 0 : i32
    %c7_i32 = arith.constant 7 : i32
    %18 = arith.subi %c7_i32, %c0_i32 : i32
    %c16_i32 = arith.constant 16 : i32
    %19 = arith.muli %c0_i32, %c16_i32 : i32
    %20 = tpu.assume_multiple %19, 16 : i32
    %c16_i32_19 = arith.constant 16 : i32
    %21 = arith.muli %18, %c16_i32_19 : i32
    %22 = tpu.assume_multiple %21, 16 : i32
    %23 = arith.truncf %17 : vector<16x128xf32> to vector<16x128xbf16>
    %cst_20 = arith.constant dense<0.000000e+00> : vector<16x384xf32>
    %24 = tpu.matmul %23, %9, %cst_20 {dimension_numbers = #tpu.dot_dimension_numbers<[1], [0], [0], [1], [0, 0, 1, 1], [], []>} : vector<16x128xbf16>, vector<128x384xbf16>, vector<16x384xf32> -> vector<16x384xf32>
    %25 = arith.truncf %17 : vector<16x128xf32> to vector<16x128xbf16>
    %cst_21 = arith.constant dense<0.000000e+00> : vector<16x384xf32>
    %26 = tpu.matmul %25, %10, %cst_21 {dimension_numbers = #tpu.dot_dimension_numbers<[1], [0], [0], [1], [0, 0, 1, 1], [], []>} : vector<16x128xbf16>, vector<128x384xbf16>, vector<16x384xf32> -> vector<16x384xf32>
    %27 = arith.index_cast %20 : i32 to index
    %c0_22 = arith.constant 0 : index
    %28 = vector.load %arg10[%27, %c0_22] : memref<128x768xf32, #tpu.memory_space<vmem>>, vector<16x384xf32>
    %29 = arith.index_cast %22 : i32 to index
    %c384 = arith.constant 384 : index
    %30 = vector.load %arg10[%29, %c384] : memref<128x768xf32, #tpu.memory_space<vmem>>, vector<16x384xf32>
    %31 = vector.extract_strided_slice %28 {offsets = [0, 0], sizes = [16, 128], strides = [1, 1]} : vector<16x384xf32> to vector<16x128xf32>
    %32 = vector.extract_strided_slice %24 {offsets = [0, 0], sizes = [16, 128], strides = [1, 1]} : vector<16x384xf32> to vector<16x128xf32>
    %33 = arith.addf %31, %32 : vector<16x128xf32>
    %34 = arith.negf %33 : vector<16x128xf32>
    %35 = math.exp %34 : vector<16x128xf32>
    %cst_23 = arith.constant 1.000000e+00 : f32
    %36 = vector.broadcast %cst_23 : f32 to vector<16x128xf32>
    %37 = arith.addf %36, %35 : vector<16x128xf32>
    %38 = arith.divf %36, %37 : vector<16x128xf32>
    %39 = vector.extract_strided_slice %28 {offsets = [0, 128], sizes = [16, 128], strides = [1, 1]} : vector<16x384xf32> to vector<16x128xf32>
    %40 = vector.extract_strided_slice %24 {offsets = [0, 128], sizes = [16, 128], strides = [1, 1]} : vector<16x384xf32> to vector<16x128xf32>
    %41 = arith.addf %39, %40 : vector<16x128xf32>
    %42 = arith.negf %41 : vector<16x128xf32>
    %43 = math.exp %42 : vector<16x128xf32>
    %cst_24 = arith.constant 1.000000e+00 : f32
    %44 = vector.broadcast %cst_24 : f32 to vector<16x128xf32>
    %45 = arith.addf %44, %43 : vector<16x128xf32>
    %46 = arith.divf %44, %45 : vector<16x128xf32>
    %47 = vector.extract_strided_slice %28 {offsets = [0, 256], sizes = [16, 128], strides = [1, 1]} : vector<16x384xf32> to vector<16x128xf32>
    %48 = vector.extract_strided_slice %24 {offsets = [0, 256], sizes = [16, 128], strides = [1, 1]} : vector<16x384xf32> to vector<16x128xf32>
    %49 = arith.addf %48, %13 : vector<16x128xf32>
    %50 = arith.mulf %38, %49 : vector<16x128xf32>
    %51 = arith.addf %47, %50 : vector<16x128xf32>
    %52 = math.tanh %51 : vector<16x128xf32>
    %53 = arith.subf %17, %52 : vector<16x128xf32>
    %54 = arith.mulf %46, %53 : vector<16x128xf32>
    %55 = arith.addf %52, %54 : vector<16x128xf32>
    %56 = vector.extract_strided_slice %30 {offsets = [0, 0], sizes = [16, 128], strides = [1, 1]} : vector<16x384xf32> to vector<16x128xf32>
    %57 = vector.extract_strided_slice %26 {offsets = [0, 0], sizes = [16, 128], strides = [1, 1]} : vector<16x384xf32> to vector<16x128xf32>
    %58 = arith.addf %56, %57 : vector<16x128xf32>
    %59 = arith.negf %58 : vector<16x128xf32>
    %60 = math.exp %59 : vector<16x128xf32>
    %cst_25 = arith.constant 1.000000e+00 : f32
    %61 = vector.broadcast %cst_25 : f32 to vector<16x128xf32>
    %62 = arith.addf %61, %60 : vector<16x128xf32>
    %63 = arith.divf %61, %62 : vector<16x128xf32>
    %64 = vector.extract_strided_slice %30 {offsets = [0, 128], sizes = [16, 128], strides = [1, 1]} : vector<16x384xf32> to vector<16x128xf32>
    %65 = vector.extract_strided_slice %26 {offsets = [0, 128], sizes = [16, 128], strides = [1, 1]} : vector<16x384xf32> to vector<16x128xf32>
    %66 = arith.addf %64, %65 : vector<16x128xf32>
    %67 = arith.negf %66 : vector<16x128xf32>
    %68 = math.exp %67 : vector<16x128xf32>
    %cst_26 = arith.constant 1.000000e+00 : f32
    %69 = vector.broadcast %cst_26 : f32 to vector<16x128xf32>
    %70 = arith.addf %69, %68 : vector<16x128xf32>
    %71 = arith.divf %69, %70 : vector<16x128xf32>
    %72 = vector.extract_strided_slice %30 {offsets = [0, 256], sizes = [16, 128], strides = [1, 1]} : vector<16x384xf32> to vector<16x128xf32>
    %73 = vector.extract_strided_slice %26 {offsets = [0, 256], sizes = [16, 128], strides = [1, 1]} : vector<16x384xf32> to vector<16x128xf32>
    %74 = arith.addf %73, %16 : vector<16x128xf32>
    %75 = arith.mulf %63, %74 : vector<16x128xf32>
    %76 = arith.addf %72, %75 : vector<16x128xf32>
    %77 = math.tanh %76 : vector<16x128xf32>
    %78 = arith.subf %17, %77 : vector<16x128xf32>
    %79 = arith.mulf %71, %78 : vector<16x128xf32>
    %80 = arith.addf %77, %79 : vector<16x128xf32>
    %81 = arith.sitofp %c0_i32 : i32 to f32
    %82 = vector.broadcast %81 : f32 to vector<16x1xf32>
    %83 = arith.cmpf ogt, %8, %82 : vector<16x1xf32>
    %84 = arith.sitofp %18 : i32 to f32
    %85 = vector.broadcast %84 : f32 to vector<16x1xf32>
    %86 = arith.cmpf ogt, %8, %85 : vector<16x1xf32>
    %87 = vector.shape_cast %83 : vector<16x1xi1> to vector<16x1xi1>
    %88 = vector.broadcast %87 : vector<16x1xi1> to vector<16x128xi1>
    %89 = arith.select %88, %55, %17 : vector<16x128xi1>, vector<16x128xf32>
    %90 = vector.shape_cast %86 : vector<16x1xi1> to vector<16x1xi1>
    %91 = vector.broadcast %90 : vector<16x1xi1> to vector<16x128xi1>
    %92 = arith.select %91, %80, %17 : vector<16x128xi1>, vector<16x128xf32>
    %cst_27 = arith.constant 0.000000e+00 : f32
    %93 = vector.shape_cast %83 : vector<16x1xi1> to vector<16x1xi1>
    %94 = vector.broadcast %93 : vector<16x1xi1> to vector<16x128xi1>
    %95 = vector.broadcast %cst_27 : f32 to vector<16x128xf32>
    %96 = arith.select %94, %55, %95 : vector<16x128xi1>, vector<16x128xf32>
    %97 = arith.addf %17, %96 : vector<16x128xf32>
    %cst_28 = arith.constant 0.000000e+00 : f32
    %98 = vector.shape_cast %86 : vector<16x1xi1> to vector<16x1xi1>
    %99 = vector.broadcast %98 : vector<16x1xi1> to vector<16x128xi1>
    %100 = vector.broadcast %cst_28 : f32 to vector<16x128xf32>
    %101 = arith.select %99, %80, %100 : vector<16x128xi1>, vector<16x128xf32>
    %102 = arith.addf %97, %101 : vector<16x128xf32>
    %c1_i32 = arith.constant 1 : i32
    %c7_i32_29 = arith.constant 7 : i32
    %103 = arith.subi %c7_i32_29, %c1_i32 : i32
    %c16_i32_30 = arith.constant 16 : i32
    %104 = arith.muli %c1_i32, %c16_i32_30 : i32
    %105 = tpu.assume_multiple %104, 16 : i32
    %c16_i32_31 = arith.constant 16 : i32
    %106 = arith.muli %103, %c16_i32_31 : i32
    %107 = tpu.assume_multiple %106, 16 : i32
    %108 = arith.truncf %89 : vector<16x128xf32> to vector<16x128xbf16>
    %cst_32 = arith.constant dense<0.000000e+00> : vector<16x384xf32>
    %109 = tpu.matmul %108, %9, %cst_32 {dimension_numbers = #tpu.dot_dimension_numbers<[1], [0], [0], [1], [0, 0, 1, 1], [], []>} : vector<16x128xbf16>, vector<128x384xbf16>, vector<16x384xf32> -> vector<16x384xf32>
    %110 = arith.truncf %92 : vector<16x128xf32> to vector<16x128xbf16>
    %cst_33 = arith.constant dense<0.000000e+00> : vector<16x384xf32>
    %111 = tpu.matmul %110, %10, %cst_33 {dimension_numbers = #tpu.dot_dimension_numbers<[1], [0], [0], [1], [0, 0, 1, 1], [], []>} : vector<16x128xbf16>, vector<128x384xbf16>, vector<16x384xf32> -> vector<16x384xf32>
    %112 = arith.index_cast %105 : i32 to index
    %c0_34 = arith.constant 0 : index
    %113 = vector.load %arg10[%112, %c0_34] : memref<128x768xf32, #tpu.memory_space<vmem>>, vector<16x384xf32>
    %114 = arith.index_cast %107 : i32 to index
    %c384_35 = arith.constant 384 : index
    %115 = vector.load %arg10[%114, %c384_35] : memref<128x768xf32, #tpu.memory_space<vmem>>, vector<16x384xf32>
    %116 = vector.extract_strided_slice %113 {offsets = [0, 0], sizes = [16, 128], strides = [1, 1]} : vector<16x384xf32> to vector<16x128xf32>
    %117 = vector.extract_strided_slice %109 {offsets = [0, 0], sizes = [16, 128], strides = [1, 1]} : vector<16x384xf32> to vector<16x128xf32>
    %118 = arith.addf %116, %117 : vector<16x128xf32>
    %119 = arith.negf %118 : vector<16x128xf32>
    %120 = math.exp %119 : vector<16x128xf32>
    %cst_36 = arith.constant 1.000000e+00 : f32
    %121 = vector.broadcast %cst_36 : f32 to vector<16x128xf32>
    %122 = arith.addf %121, %120 : vector<16x128xf32>
    %123 = arith.divf %121, %122 : vector<16x128xf32>
    %124 = vector.extract_strided_slice %113 {offsets = [0, 128], sizes = [16, 128], strides = [1, 1]} : vector<16x384xf32> to vector<16x128xf32>
    %125 = vector.extract_strided_slice %109 {offsets = [0, 128], sizes = [16, 128], strides = [1, 1]} : vector<16x384xf32> to vector<16x128xf32>
    %126 = arith.addf %124, %125 : vector<16x128xf32>
    %127 = arith.negf %126 : vector<16x128xf32>
    %128 = math.exp %127 : vector<16x128xf32>
    %cst_37 = arith.constant 1.000000e+00 : f32
    %129 = vector.broadcast %cst_37 : f32 to vector<16x128xf32>
    %130 = arith.addf %129, %128 : vector<16x128xf32>
    %131 = arith.divf %129, %130 : vector<16x128xf32>
    %132 = vector.extract_strided_slice %113 {offsets = [0, 256], sizes = [16, 128], strides = [1, 1]} : vector<16x384xf32> to vector<16x128xf32>
    %133 = vector.extract_strided_slice %109 {offsets = [0, 256], sizes = [16, 128], strides = [1, 1]} : vector<16x384xf32> to vector<16x128xf32>
    %134 = arith.addf %133, %13 : vector<16x128xf32>
    %135 = arith.mulf %123, %134 : vector<16x128xf32>
    %136 = arith.addf %132, %135 : vector<16x128xf32>
    %137 = math.tanh %136 : vector<16x128xf32>
    %138 = arith.subf %89, %137 : vector<16x128xf32>
    %139 = arith.mulf %131, %138 : vector<16x128xf32>
    %140 = arith.addf %137, %139 : vector<16x128xf32>
    %141 = vector.extract_strided_slice %115 {offsets = [0, 0], sizes = [16, 128], strides = [1, 1]} : vector<16x384xf32> to vector<16x128xf32>
    %142 = vector.extract_strided_slice %111 {offsets = [0, 0], sizes = [16, 128], strides = [1, 1]} : vector<16x384xf32> to vector<16x128xf32>
    %143 = arith.addf %141, %142 : vector<16x128xf32>
    %144 = arith.negf %143 : vector<16x128xf32>
    %145 = math.exp %144 : vector<16x128xf32>
    %cst_38 = arith.constant 1.000000e+00 : f32
    %146 = vector.broadcast %cst_38 : f32 to vector<16x128xf32>
    %147 = arith.addf %146, %145 : vector<16x128xf32>
    %148 = arith.divf %146, %147 : vector<16x128xf32>
    %149 = vector.extract_strided_slice %115 {offsets = [0, 128], sizes = [16, 128], strides = [1, 1]} : vector<16x384xf32> to vector<16x128xf32>
    %150 = vector.extract_strided_slice %111 {offsets = [0, 128], sizes = [16, 128], strides = [1, 1]} : vector<16x384xf32> to vector<16x128xf32>
    %151 = arith.addf %149, %150 : vector<16x128xf32>
    %152 = arith.negf %151 : vector<16x128xf32>
    %153 = math.exp %152 : vector<16x128xf32>
    %cst_39 = arith.constant 1.000000e+00 : f32
    %154 = vector.broadcast %cst_39 : f32 to vector<16x128xf32>
    %155 = arith.addf %154, %153 : vector<16x128xf32>
    %156 = arith.divf %154, %155 : vector<16x128xf32>
    %157 = vector.extract_strided_slice %115 {offsets = [0, 256], sizes = [16, 128], strides = [1, 1]} : vector<16x384xf32> to vector<16x128xf32>
    %158 = vector.extract_strided_slice %111 {offsets = [0, 256], sizes = [16, 128], strides = [1, 1]} : vector<16x384xf32> to vector<16x128xf32>
    %159 = arith.addf %158, %16 : vector<16x128xf32>
    %160 = arith.mulf %148, %159 : vector<16x128xf32>
    %161 = arith.addf %157, %160 : vector<16x128xf32>
    %162 = math.tanh %161 : vector<16x128xf32>
    %163 = arith.subf %92, %162 : vector<16x128xf32>
    %164 = arith.mulf %156, %163 : vector<16x128xf32>
    %165 = arith.addf %162, %164 : vector<16x128xf32>
    %166 = arith.sitofp %c1_i32 : i32 to f32
    %167 = vector.broadcast %166 : f32 to vector<16x1xf32>
    %168 = arith.cmpf ogt, %8, %167 : vector<16x1xf32>
    %169 = arith.sitofp %103 : i32 to f32
    %170 = vector.broadcast %169 : f32 to vector<16x1xf32>
    %171 = arith.cmpf ogt, %8, %170 : vector<16x1xf32>
    %172 = vector.shape_cast %168 : vector<16x1xi1> to vector<16x1xi1>
    %173 = vector.broadcast %172 : vector<16x1xi1> to vector<16x128xi1>
    %174 = arith.select %173, %140, %89 : vector<16x128xi1>, vector<16x128xf32>
    %175 = vector.shape_cast %171 : vector<16x1xi1> to vector<16x1xi1>
    %176 = vector.broadcast %175 : vector<16x1xi1> to vector<16x128xi1>
    %177 = arith.select %176, %165, %92 : vector<16x128xi1>, vector<16x128xf32>
    %cst_40 = arith.constant 0.000000e+00 : f32
    %178 = vector.shape_cast %168 : vector<16x1xi1> to vector<16x1xi1>
    %179 = vector.broadcast %178 : vector<16x1xi1> to vector<16x128xi1>
    %180 = vector.broadcast %cst_40 : f32 to vector<16x128xf32>
    %181 = arith.select %179, %140, %180 : vector<16x128xi1>, vector<16x128xf32>
    %182 = arith.addf %102, %181 : vector<16x128xf32>
    %cst_41 = arith.constant 0.000000e+00 : f32
    %183 = vector.shape_cast %171 : vector<16x1xi1> to vector<16x1xi1>
    %184 = vector.broadcast %183 : vector<16x1xi1> to vector<16x128xi1>
    %185 = vector.broadcast %cst_41 : f32 to vector<16x128xf32>
    %186 = arith.select %184, %165, %185 : vector<16x128xi1>, vector<16x128xf32>
    %187 = arith.addf %182, %186 : vector<16x128xf32>
    %c2_i32 = arith.constant 2 : i32
    %c7_i32_42 = arith.constant 7 : i32
    %188 = arith.subi %c7_i32_42, %c2_i32 : i32
    %c16_i32_43 = arith.constant 16 : i32
    %189 = arith.muli %c2_i32, %c16_i32_43 : i32
    %190 = tpu.assume_multiple %189, 16 : i32
    %c16_i32_44 = arith.constant 16 : i32
    %191 = arith.muli %188, %c16_i32_44 : i32
    %192 = tpu.assume_multiple %191, 16 : i32
    %193 = arith.truncf %174 : vector<16x128xf32> to vector<16x128xbf16>
    %cst_45 = arith.constant dense<0.000000e+00> : vector<16x384xf32>
    %194 = tpu.matmul %193, %9, %cst_45 {dimension_numbers = #tpu.dot_dimension_numbers<[1], [0], [0], [1], [0, 0, 1, 1], [], []>} : vector<16x128xbf16>, vector<128x384xbf16>, vector<16x384xf32> -> vector<16x384xf32>
    %195 = arith.truncf %177 : vector<16x128xf32> to vector<16x128xbf16>
    %cst_46 = arith.constant dense<0.000000e+00> : vector<16x384xf32>
    %196 = tpu.matmul %195, %10, %cst_46 {dimension_numbers = #tpu.dot_dimension_numbers<[1], [0], [0], [1], [0, 0, 1, 1], [], []>} : vector<16x128xbf16>, vector<128x384xbf16>, vector<16x384xf32> -> vector<16x384xf32>
    %197 = arith.index_cast %190 : i32 to index
    %c0_47 = arith.constant 0 : index
    %198 = vector.load %arg10[%197, %c0_47] : memref<128x768xf32, #tpu.memory_space<vmem>>, vector<16x384xf32>
    %199 = arith.index_cast %192 : i32 to index
    %c384_48 = arith.constant 384 : index
    %200 = vector.load %arg10[%199, %c384_48] : memref<128x768xf32, #tpu.memory_space<vmem>>, vector<16x384xf32>
    %201 = vector.extract_strided_slice %198 {offsets = [0, 0], sizes = [16, 128], strides = [1, 1]} : vector<16x384xf32> to vector<16x128xf32>
    %202 = vector.extract_strided_slice %194 {offsets = [0, 0], sizes = [16, 128], strides = [1, 1]} : vector<16x384xf32> to vector<16x128xf32>
    %203 = arith.addf %201, %202 : vector<16x128xf32>
    %204 = arith.negf %203 : vector<16x128xf32>
    %205 = math.exp %204 : vector<16x128xf32>
    %cst_49 = arith.constant 1.000000e+00 : f32
    %206 = vector.broadcast %cst_49 : f32 to vector<16x128xf32>
    %207 = arith.addf %206, %205 : vector<16x128xf32>
    %208 = arith.divf %206, %207 : vector<16x128xf32>
    %209 = vector.extract_strided_slice %198 {offsets = [0, 128], sizes = [16, 128], strides = [1, 1]} : vector<16x384xf32> to vector<16x128xf32>
    %210 = vector.extract_strided_slice %194 {offsets = [0, 128], sizes = [16, 128], strides = [1, 1]} : vector<16x384xf32> to vector<16x128xf32>
    %211 = arith.addf %209, %210 : vector<16x128xf32>
    %212 = arith.negf %211 : vector<16x128xf32>
    %213 = math.exp %212 : vector<16x128xf32>
    %cst_50 = arith.constant 1.000000e+00 : f32
    %214 = vector.broadcast %cst_50 : f32 to vector<16x128xf32>
    %215 = arith.addf %214, %213 : vector<16x128xf32>
    %216 = arith.divf %214, %215 : vector<16x128xf32>
    %217 = vector.extract_strided_slice %198 {offsets = [0, 256], sizes = [16, 128], strides = [1, 1]} : vector<16x384xf32> to vector<16x128xf32>
    %218 = vector.extract_strided_slice %194 {offsets = [0, 256], sizes = [16, 128], strides = [1, 1]} : vector<16x384xf32> to vector<16x128xf32>
    %219 = arith.addf %218, %13 : vector<16x128xf32>
    %220 = arith.mulf %208, %219 : vector<16x128xf32>
    %221 = arith.addf %217, %220 : vector<16x128xf32>
    %222 = math.tanh %221 : vector<16x128xf32>
    %223 = arith.subf %174, %222 : vector<16x128xf32>
    %224 = arith.mulf %216, %223 : vector<16x128xf32>
    %225 = arith.addf %222, %224 : vector<16x128xf32>
    %226 = vector.extract_strided_slice %200 {offsets = [0, 0], sizes = [16, 128], strides = [1, 1]} : vector<16x384xf32> to vector<16x128xf32>
    %227 = vector.extract_strided_slice %196 {offsets = [0, 0], sizes = [16, 128], strides = [1, 1]} : vector<16x384xf32> to vector<16x128xf32>
    %228 = arith.addf %226, %227 : vector<16x128xf32>
    %229 = arith.negf %228 : vector<16x128xf32>
    %230 = math.exp %229 : vector<16x128xf32>
    %cst_51 = arith.constant 1.000000e+00 : f32
    %231 = vector.broadcast %cst_51 : f32 to vector<16x128xf32>
    %232 = arith.addf %231, %230 : vector<16x128xf32>
    %233 = arith.divf %231, %232 : vector<16x128xf32>
    %234 = vector.extract_strided_slice %200 {offsets = [0, 128], sizes = [16, 128], strides = [1, 1]} : vector<16x384xf32> to vector<16x128xf32>
    %235 = vector.extract_strided_slice %196 {offsets = [0, 128], sizes = [16, 128], strides = [1, 1]} : vector<16x384xf32> to vector<16x128xf32>
    %236 = arith.addf %234, %235 : vector<16x128xf32>
    %237 = arith.negf %236 : vector<16x128xf32>
    %238 = math.exp %237 : vector<16x128xf32>
    %cst_52 = arith.constant 1.000000e+00 : f32
    %239 = vector.broadcast %cst_52 : f32 to vector<16x128xf32>
    %240 = arith.addf %239, %238 : vector<16x128xf32>
    %241 = arith.divf %239, %240 : vector<16x128xf32>
    %242 = vector.extract_strided_slice %200 {offsets = [0, 256], sizes = [16, 128], strides = [1, 1]} : vector<16x384xf32> to vector<16x128xf32>
    %243 = vector.extract_strided_slice %196 {offsets = [0, 256], sizes = [16, 128], strides = [1, 1]} : vector<16x384xf32> to vector<16x128xf32>
    %244 = arith.addf %243, %16 : vector<16x128xf32>
    %245 = arith.mulf %233, %244 : vector<16x128xf32>
    %246 = arith.addf %242, %245 : vector<16x128xf32>
    %247 = math.tanh %246 : vector<16x128xf32>
    %248 = arith.subf %177, %247 : vector<16x128xf32>
    %249 = arith.mulf %241, %248 : vector<16x128xf32>
    %250 = arith.addf %247, %249 : vector<16x128xf32>
    %251 = arith.sitofp %c2_i32 : i32 to f32
    %252 = vector.broadcast %251 : f32 to vector<16x1xf32>
    %253 = arith.cmpf ogt, %8, %252 : vector<16x1xf32>
    %254 = arith.sitofp %188 : i32 to f32
    %255 = vector.broadcast %254 : f32 to vector<16x1xf32>
    %256 = arith.cmpf ogt, %8, %255 : vector<16x1xf32>
    %257 = vector.shape_cast %253 : vector<16x1xi1> to vector<16x1xi1>
    %258 = vector.broadcast %257 : vector<16x1xi1> to vector<16x128xi1>
    %259 = arith.select %258, %225, %174 : vector<16x128xi1>, vector<16x128xf32>
    %260 = vector.shape_cast %256 : vector<16x1xi1> to vector<16x1xi1>
    %261 = vector.broadcast %260 : vector<16x1xi1> to vector<16x128xi1>
    %262 = arith.select %261, %250, %177 : vector<16x128xi1>, vector<16x128xf32>
    %cst_53 = arith.constant 0.000000e+00 : f32
    %263 = vector.shape_cast %253 : vector<16x1xi1> to vector<16x1xi1>
    %264 = vector.broadcast %263 : vector<16x1xi1> to vector<16x128xi1>
    %265 = vector.broadcast %cst_53 : f32 to vector<16x128xf32>
    %266 = arith.select %264, %225, %265 : vector<16x128xi1>, vector<16x128xf32>
    %267 = arith.addf %187, %266 : vector<16x128xf32>
    %cst_54 = arith.constant 0.000000e+00 : f32
    %268 = vector.shape_cast %256 : vector<16x1xi1> to vector<16x1xi1>
    %269 = vector.broadcast %268 : vector<16x1xi1> to vector<16x128xi1>
    %270 = vector.broadcast %cst_54 : f32 to vector<16x128xf32>
    %271 = arith.select %269, %250, %270 : vector<16x128xi1>, vector<16x128xf32>
    %272 = arith.addf %267, %271 : vector<16x128xf32>
    %c3_i32 = arith.constant 3 : i32
    %c7_i32_55 = arith.constant 7 : i32
    %273 = arith.subi %c7_i32_55, %c3_i32 : i32
    %c16_i32_56 = arith.constant 16 : i32
    %274 = arith.muli %c3_i32, %c16_i32_56 : i32
    %275 = tpu.assume_multiple %274, 16 : i32
    %c16_i32_57 = arith.constant 16 : i32
    %276 = arith.muli %273, %c16_i32_57 : i32
    %277 = tpu.assume_multiple %276, 16 : i32
    %278 = arith.truncf %259 : vector<16x128xf32> to vector<16x128xbf16>
    %cst_58 = arith.constant dense<0.000000e+00> : vector<16x384xf32>
    %279 = tpu.matmul %278, %9, %cst_58 {dimension_numbers = #tpu.dot_dimension_numbers<[1], [0], [0], [1], [0, 0, 1, 1], [], []>} : vector<16x128xbf16>, vector<128x384xbf16>, vector<16x384xf32> -> vector<16x384xf32>
    %280 = arith.truncf %262 : vector<16x128xf32> to vector<16x128xbf16>
    %cst_59 = arith.constant dense<0.000000e+00> : vector<16x384xf32>
    %281 = tpu.matmul %280, %10, %cst_59 {dimension_numbers = #tpu.dot_dimension_numbers<[1], [0], [0], [1], [0, 0, 1, 1], [], []>} : vector<16x128xbf16>, vector<128x384xbf16>, vector<16x384xf32> -> vector<16x384xf32>
    %282 = arith.index_cast %275 : i32 to index
    %c0_60 = arith.constant 0 : index
    %283 = vector.load %arg10[%282, %c0_60] : memref<128x768xf32, #tpu.memory_space<vmem>>, vector<16x384xf32>
    %284 = arith.index_cast %277 : i32 to index
    %c384_61 = arith.constant 384 : index
    %285 = vector.load %arg10[%284, %c384_61] : memref<128x768xf32, #tpu.memory_space<vmem>>, vector<16x384xf32>
    %286 = vector.extract_strided_slice %283 {offsets = [0, 0], sizes = [16, 128], strides = [1, 1]} : vector<16x384xf32> to vector<16x128xf32>
    %287 = vector.extract_strided_slice %279 {offsets = [0, 0], sizes = [16, 128], strides = [1, 1]} : vector<16x384xf32> to vector<16x128xf32>
    %288 = arith.addf %286, %287 : vector<16x128xf32>
    %289 = arith.negf %288 : vector<16x128xf32>
    %290 = math.exp %289 : vector<16x128xf32>
    %cst_62 = arith.constant 1.000000e+00 : f32
    %291 = vector.broadcast %cst_62 : f32 to vector<16x128xf32>
    %292 = arith.addf %291, %290 : vector<16x128xf32>
    %293 = arith.divf %291, %292 : vector<16x128xf32>
    %294 = vector.extract_strided_slice %283 {offsets = [0, 128], sizes = [16, 128], strides = [1, 1]} : vector<16x384xf32> to vector<16x128xf32>
    %295 = vector.extract_strided_slice %279 {offsets = [0, 128], sizes = [16, 128], strides = [1, 1]} : vector<16x384xf32> to vector<16x128xf32>
    %296 = arith.addf %294, %295 : vector<16x128xf32>
    %297 = arith.negf %296 : vector<16x128xf32>
    %298 = math.exp %297 : vector<16x128xf32>
    %cst_63 = arith.constant 1.000000e+00 : f32
    %299 = vector.broadcast %cst_63 : f32 to vector<16x128xf32>
    %300 = arith.addf %299, %298 : vector<16x128xf32>
    %301 = arith.divf %299, %300 : vector<16x128xf32>
    %302 = vector.extract_strided_slice %283 {offsets = [0, 256], sizes = [16, 128], strides = [1, 1]} : vector<16x384xf32> to vector<16x128xf32>
    %303 = vector.extract_strided_slice %279 {offsets = [0, 256], sizes = [16, 128], strides = [1, 1]} : vector<16x384xf32> to vector<16x128xf32>
    %304 = arith.addf %303, %13 : vector<16x128xf32>
    %305 = arith.mulf %293, %304 : vector<16x128xf32>
    %306 = arith.addf %302, %305 : vector<16x128xf32>
    %307 = math.tanh %306 : vector<16x128xf32>
    %308 = arith.subf %259, %307 : vector<16x128xf32>
    %309 = arith.mulf %301, %308 : vector<16x128xf32>
    %310 = arith.addf %307, %309 : vector<16x128xf32>
    %311 = vector.extract_strided_slice %285 {offsets = [0, 0], sizes = [16, 128], strides = [1, 1]} : vector<16x384xf32> to vector<16x128xf32>
    %312 = vector.extract_strided_slice %281 {offsets = [0, 0], sizes = [16, 128], strides = [1, 1]} : vector<16x384xf32> to vector<16x128xf32>
    %313 = arith.addf %311, %312 : vector<16x128xf32>
    %314 = arith.negf %313 : vector<16x128xf32>
    %315 = math.exp %314 : vector<16x128xf32>
    %cst_64 = arith.constant 1.000000e+00 : f32
    %316 = vector.broadcast %cst_64 : f32 to vector<16x128xf32>
    %317 = arith.addf %316, %315 : vector<16x128xf32>
    %318 = arith.divf %316, %317 : vector<16x128xf32>
    %319 = vector.extract_strided_slice %285 {offsets = [0, 128], sizes = [16, 128], strides = [1, 1]} : vector<16x384xf32> to vector<16x128xf32>
    %320 = vector.extract_strided_slice %281 {offsets = [0, 128], sizes = [16, 128], strides = [1, 1]} : vector<16x384xf32> to vector<16x128xf32>
    %321 = arith.addf %319, %320 : vector<16x128xf32>
    %322 = arith.negf %321 : vector<16x128xf32>
    %323 = math.exp %322 : vector<16x128xf32>
    %cst_65 = arith.constant 1.000000e+00 : f32
    %324 = vector.broadcast %cst_65 : f32 to vector<16x128xf32>
    %325 = arith.addf %324, %323 : vector<16x128xf32>
    %326 = arith.divf %324, %325 : vector<16x128xf32>
    %327 = vector.extract_strided_slice %285 {offsets = [0, 256], sizes = [16, 128], strides = [1, 1]} : vector<16x384xf32> to vector<16x128xf32>
    %328 = vector.extract_strided_slice %281 {offsets = [0, 256], sizes = [16, 128], strides = [1, 1]} : vector<16x384xf32> to vector<16x128xf32>
    %329 = arith.addf %328, %16 : vector<16x128xf32>
    %330 = arith.mulf %318, %329 : vector<16x128xf32>
    %331 = arith.addf %327, %330 : vector<16x128xf32>
    %332 = math.tanh %331 : vector<16x128xf32>
    %333 = arith.subf %262, %332 : vector<16x128xf32>
    %334 = arith.mulf %326, %333 : vector<16x128xf32>
    %335 = arith.addf %332, %334 : vector<16x128xf32>
    %336 = arith.sitofp %c3_i32 : i32 to f32
    %337 = vector.broadcast %336 : f32 to vector<16x1xf32>
    %338 = arith.cmpf ogt, %8, %337 : vector<16x1xf32>
    %339 = arith.sitofp %273 : i32 to f32
    %340 = vector.broadcast %339 : f32 to vector<16x1xf32>
    %341 = arith.cmpf ogt, %8, %340 : vector<16x1xf32>
    %342 = vector.shape_cast %338 : vector<16x1xi1> to vector<16x1xi1>
    %343 = vector.broadcast %342 : vector<16x1xi1> to vector<16x128xi1>
    %344 = arith.select %343, %310, %259 : vector<16x128xi1>, vector<16x128xf32>
    %345 = vector.shape_cast %341 : vector<16x1xi1> to vector<16x1xi1>
    %346 = vector.broadcast %345 : vector<16x1xi1> to vector<16x128xi1>
    %347 = arith.select %346, %335, %262 : vector<16x128xi1>, vector<16x128xf32>
    %cst_66 = arith.constant 0.000000e+00 : f32
    %348 = vector.shape_cast %338 : vector<16x1xi1> to vector<16x1xi1>
    %349 = vector.broadcast %348 : vector<16x1xi1> to vector<16x128xi1>
    %350 = vector.broadcast %cst_66 : f32 to vector<16x128xf32>
    %351 = arith.select %349, %310, %350 : vector<16x128xi1>, vector<16x128xf32>
    %352 = arith.addf %272, %351 : vector<16x128xf32>
    %cst_67 = arith.constant 0.000000e+00 : f32
    %353 = vector.shape_cast %341 : vector<16x1xi1> to vector<16x1xi1>
    %354 = vector.broadcast %353 : vector<16x1xi1> to vector<16x128xi1>
    %355 = vector.broadcast %cst_67 : f32 to vector<16x128xf32>
    %356 = arith.select %354, %335, %355 : vector<16x128xi1>, vector<16x128xf32>
    %357 = arith.addf %352, %356 : vector<16x128xf32>
    %c4_i32 = arith.constant 4 : i32
    %c7_i32_68 = arith.constant 7 : i32
    %358 = arith.subi %c7_i32_68, %c4_i32 : i32
    %c16_i32_69 = arith.constant 16 : i32
    %359 = arith.muli %c4_i32, %c16_i32_69 : i32
    %360 = tpu.assume_multiple %359, 16 : i32
    %c16_i32_70 = arith.constant 16 : i32
    %361 = arith.muli %358, %c16_i32_70 : i32
    %362 = tpu.assume_multiple %361, 16 : i32
    %363 = arith.truncf %344 : vector<16x128xf32> to vector<16x128xbf16>
    %cst_71 = arith.constant dense<0.000000e+00> : vector<16x384xf32>
    %364 = tpu.matmul %363, %9, %cst_71 {dimension_numbers = #tpu.dot_dimension_numbers<[1], [0], [0], [1], [0, 0, 1, 1], [], []>} : vector<16x128xbf16>, vector<128x384xbf16>, vector<16x384xf32> -> vector<16x384xf32>
    %365 = arith.truncf %347 : vector<16x128xf32> to vector<16x128xbf16>
    %cst_72 = arith.constant dense<0.000000e+00> : vector<16x384xf32>
    %366 = tpu.matmul %365, %10, %cst_72 {dimension_numbers = #tpu.dot_dimension_numbers<[1], [0], [0], [1], [0, 0, 1, 1], [], []>} : vector<16x128xbf16>, vector<128x384xbf16>, vector<16x384xf32> -> vector<16x384xf32>
    %367 = arith.index_cast %360 : i32 to index
    %c0_73 = arith.constant 0 : index
    %368 = vector.load %arg10[%367, %c0_73] : memref<128x768xf32, #tpu.memory_space<vmem>>, vector<16x384xf32>
    %369 = arith.index_cast %362 : i32 to index
    %c384_74 = arith.constant 384 : index
    %370 = vector.load %arg10[%369, %c384_74] : memref<128x768xf32, #tpu.memory_space<vmem>>, vector<16x384xf32>
    %371 = vector.extract_strided_slice %368 {offsets = [0, 0], sizes = [16, 128], strides = [1, 1]} : vector<16x384xf32> to vector<16x128xf32>
    %372 = vector.extract_strided_slice %364 {offsets = [0, 0], sizes = [16, 128], strides = [1, 1]} : vector<16x384xf32> to vector<16x128xf32>
    %373 = arith.addf %371, %372 : vector<16x128xf32>
    %374 = arith.negf %373 : vector<16x128xf32>
    %375 = math.exp %374 : vector<16x128xf32>
    %cst_75 = arith.constant 1.000000e+00 : f32
    %376 = vector.broadcast %cst_75 : f32 to vector<16x128xf32>
    %377 = arith.addf %376, %375 : vector<16x128xf32>
    %378 = arith.divf %376, %377 : vector<16x128xf32>
    %379 = vector.extract_strided_slice %368 {offsets = [0, 128], sizes = [16, 128], strides = [1, 1]} : vector<16x384xf32> to vector<16x128xf32>
    %380 = vector.extract_strided_slice %364 {offsets = [0, 128], sizes = [16, 128], strides = [1, 1]} : vector<16x384xf32> to vector<16x128xf32>
    %381 = arith.addf %379, %380 : vector<16x128xf32>
    %382 = arith.negf %381 : vector<16x128xf32>
    %383 = math.exp %382 : vector<16x128xf32>
    %cst_76 = arith.constant 1.000000e+00 : f32
    %384 = vector.broadcast %cst_76 : f32 to vector<16x128xf32>
    %385 = arith.addf %384, %383 : vector<16x128xf32>
    %386 = arith.divf %384, %385 : vector<16x128xf32>
    %387 = vector.extract_strided_slice %368 {offsets = [0, 256], sizes = [16, 128], strides = [1, 1]} : vector<16x384xf32> to vector<16x128xf32>
    %388 = vector.extract_strided_slice %364 {offsets = [0, 256], sizes = [16, 128], strides = [1, 1]} : vector<16x384xf32> to vector<16x128xf32>
    %389 = arith.addf %388, %13 : vector<16x128xf32>
    %390 = arith.mulf %378, %389 : vector<16x128xf32>
    %391 = arith.addf %387, %390 : vector<16x128xf32>
    %392 = math.tanh %391 : vector<16x128xf32>
    %393 = arith.subf %344, %392 : vector<16x128xf32>
    %394 = arith.mulf %386, %393 : vector<16x128xf32>
    %395 = arith.addf %392, %394 : vector<16x128xf32>
    %396 = vector.extract_strided_slice %370 {offsets = [0, 0], sizes = [16, 128], strides = [1, 1]} : vector<16x384xf32> to vector<16x128xf32>
    %397 = vector.extract_strided_slice %366 {offsets = [0, 0], sizes = [16, 128], strides = [1, 1]} : vector<16x384xf32> to vector<16x128xf32>
    %398 = arith.addf %396, %397 : vector<16x128xf32>
    %399 = arith.negf %398 : vector<16x128xf32>
    %400 = math.exp %399 : vector<16x128xf32>
    %cst_77 = arith.constant 1.000000e+00 : f32
    %401 = vector.broadcast %cst_77 : f32 to vector<16x128xf32>
    %402 = arith.addf %401, %400 : vector<16x128xf32>
    %403 = arith.divf %401, %402 : vector<16x128xf32>
    %404 = vector.extract_strided_slice %370 {offsets = [0, 128], sizes = [16, 128], strides = [1, 1]} : vector<16x384xf32> to vector<16x128xf32>
    %405 = vector.extract_strided_slice %366 {offsets = [0, 128], sizes = [16, 128], strides = [1, 1]} : vector<16x384xf32> to vector<16x128xf32>
    %406 = arith.addf %404, %405 : vector<16x128xf32>
    %407 = arith.negf %406 : vector<16x128xf32>
    %408 = math.exp %407 : vector<16x128xf32>
    %cst_78 = arith.constant 1.000000e+00 : f32
    %409 = vector.broadcast %cst_78 : f32 to vector<16x128xf32>
    %410 = arith.addf %409, %408 : vector<16x128xf32>
    %411 = arith.divf %409, %410 : vector<16x128xf32>
    %412 = vector.extract_strided_slice %370 {offsets = [0, 256], sizes = [16, 128], strides = [1, 1]} : vector<16x384xf32> to vector<16x128xf32>
    %413 = vector.extract_strided_slice %366 {offsets = [0, 256], sizes = [16, 128], strides = [1, 1]} : vector<16x384xf32> to vector<16x128xf32>
    %414 = arith.addf %413, %16 : vector<16x128xf32>
    %415 = arith.mulf %403, %414 : vector<16x128xf32>
    %416 = arith.addf %412, %415 : vector<16x128xf32>
    %417 = math.tanh %416 : vector<16x128xf32>
    %418 = arith.subf %347, %417 : vector<16x128xf32>
    %419 = arith.mulf %411, %418 : vector<16x128xf32>
    %420 = arith.addf %417, %419 : vector<16x128xf32>
    %421 = arith.sitofp %c4_i32 : i32 to f32
    %422 = vector.broadcast %421 : f32 to vector<16x1xf32>
    %423 = arith.cmpf ogt, %8, %422 : vector<16x1xf32>
    %424 = arith.sitofp %358 : i32 to f32
    %425 = vector.broadcast %424 : f32 to vector<16x1xf32>
    %426 = arith.cmpf ogt, %8, %425 : vector<16x1xf32>
    %427 = vector.shape_cast %423 : vector<16x1xi1> to vector<16x1xi1>
    %428 = vector.broadcast %427 : vector<16x1xi1> to vector<16x128xi1>
    %429 = arith.select %428, %395, %344 : vector<16x128xi1>, vector<16x128xf32>
    %430 = vector.shape_cast %426 : vector<16x1xi1> to vector<16x1xi1>
    %431 = vector.broadcast %430 : vector<16x1xi1> to vector<16x128xi1>
    %432 = arith.select %431, %420, %347 : vector<16x128xi1>, vector<16x128xf32>
    %cst_79 = arith.constant 0.000000e+00 : f32
    %433 = vector.shape_cast %423 : vector<16x1xi1> to vector<16x1xi1>
    %434 = vector.broadcast %433 : vector<16x1xi1> to vector<16x128xi1>
    %435 = vector.broadcast %cst_79 : f32 to vector<16x128xf32>
    %436 = arith.select %434, %395, %435 : vector<16x128xi1>, vector<16x128xf32>
    %437 = arith.addf %357, %436 : vector<16x128xf32>
    %cst_80 = arith.constant 0.000000e+00 : f32
    %438 = vector.shape_cast %426 : vector<16x1xi1> to vector<16x1xi1>
    %439 = vector.broadcast %438 : vector<16x1xi1> to vector<16x128xi1>
    %440 = vector.broadcast %cst_80 : f32 to vector<16x128xf32>
    %441 = arith.select %439, %420, %440 : vector<16x128xi1>, vector<16x128xf32>
    %442 = arith.addf %437, %441 : vector<16x128xf32>
    %c5_i32 = arith.constant 5 : i32
    %c7_i32_81 = arith.constant 7 : i32
    %443 = arith.subi %c7_i32_81, %c5_i32 : i32
    %c16_i32_82 = arith.constant 16 : i32
    %444 = arith.muli %c5_i32, %c16_i32_82 : i32
    %445 = tpu.assume_multiple %444, 16 : i32
    %c16_i32_83 = arith.constant 16 : i32
    %446 = arith.muli %443, %c16_i32_83 : i32
    %447 = tpu.assume_multiple %446, 16 : i32
    %448 = arith.truncf %429 : vector<16x128xf32> to vector<16x128xbf16>
    %cst_84 = arith.constant dense<0.000000e+00> : vector<16x384xf32>
    %449 = tpu.matmul %448, %9, %cst_84 {dimension_numbers = #tpu.dot_dimension_numbers<[1], [0], [0], [1], [0, 0, 1, 1], [], []>} : vector<16x128xbf16>, vector<128x384xbf16>, vector<16x384xf32> -> vector<16x384xf32>
    %450 = arith.truncf %432 : vector<16x128xf32> to vector<16x128xbf16>
    %cst_85 = arith.constant dense<0.000000e+00> : vector<16x384xf32>
    %451 = tpu.matmul %450, %10, %cst_85 {dimension_numbers = #tpu.dot_dimension_numbers<[1], [0], [0], [1], [0, 0, 1, 1], [], []>} : vector<16x128xbf16>, vector<128x384xbf16>, vector<16x384xf32> -> vector<16x384xf32>
    %452 = arith.index_cast %445 : i32 to index
    %c0_86 = arith.constant 0 : index
    %453 = vector.load %arg10[%452, %c0_86] : memref<128x768xf32, #tpu.memory_space<vmem>>, vector<16x384xf32>
    %454 = arith.index_cast %447 : i32 to index
    %c384_87 = arith.constant 384 : index
    %455 = vector.load %arg10[%454, %c384_87] : memref<128x768xf32, #tpu.memory_space<vmem>>, vector<16x384xf32>
    %456 = vector.extract_strided_slice %453 {offsets = [0, 0], sizes = [16, 128], strides = [1, 1]} : vector<16x384xf32> to vector<16x128xf32>
    %457 = vector.extract_strided_slice %449 {offsets = [0, 0], sizes = [16, 128], strides = [1, 1]} : vector<16x384xf32> to vector<16x128xf32>
    %458 = arith.addf %456, %457 : vector<16x128xf32>
    %459 = arith.negf %458 : vector<16x128xf32>
    %460 = math.exp %459 : vector<16x128xf32>
    %cst_88 = arith.constant 1.000000e+00 : f32
    %461 = vector.broadcast %cst_88 : f32 to vector<16x128xf32>
    %462 = arith.addf %461, %460 : vector<16x128xf32>
    %463 = arith.divf %461, %462 : vector<16x128xf32>
    %464 = vector.extract_strided_slice %453 {offsets = [0, 128], sizes = [16, 128], strides = [1, 1]} : vector<16x384xf32> to vector<16x128xf32>
    %465 = vector.extract_strided_slice %449 {offsets = [0, 128], sizes = [16, 128], strides = [1, 1]} : vector<16x384xf32> to vector<16x128xf32>
    %466 = arith.addf %464, %465 : vector<16x128xf32>
    %467 = arith.negf %466 : vector<16x128xf32>
    %468 = math.exp %467 : vector<16x128xf32>
    %cst_89 = arith.constant 1.000000e+00 : f32
    %469 = vector.broadcast %cst_89 : f32 to vector<16x128xf32>
    %470 = arith.addf %469, %468 : vector<16x128xf32>
    %471 = arith.divf %469, %470 : vector<16x128xf32>
    %472 = vector.extract_strided_slice %453 {offsets = [0, 256], sizes = [16, 128], strides = [1, 1]} : vector<16x384xf32> to vector<16x128xf32>
    %473 = vector.extract_strided_slice %449 {offsets = [0, 256], sizes = [16, 128], strides = [1, 1]} : vector<16x384xf32> to vector<16x128xf32>
    %474 = arith.addf %473, %13 : vector<16x128xf32>
    %475 = arith.mulf %463, %474 : vector<16x128xf32>
    %476 = arith.addf %472, %475 : vector<16x128xf32>
    %477 = math.tanh %476 : vector<16x128xf32>
    %478 = arith.subf %429, %477 : vector<16x128xf32>
    %479 = arith.mulf %471, %478 : vector<16x128xf32>
    %480 = arith.addf %477, %479 : vector<16x128xf32>
    %481 = vector.extract_strided_slice %455 {offsets = [0, 0], sizes = [16, 128], strides = [1, 1]} : vector<16x384xf32> to vector<16x128xf32>
    %482 = vector.extract_strided_slice %451 {offsets = [0, 0], sizes = [16, 128], strides = [1, 1]} : vector<16x384xf32> to vector<16x128xf32>
    %483 = arith.addf %481, %482 : vector<16x128xf32>
    %484 = arith.negf %483 : vector<16x128xf32>
    %485 = math.exp %484 : vector<16x128xf32>
    %cst_90 = arith.constant 1.000000e+00 : f32
    %486 = vector.broadcast %cst_90 : f32 to vector<16x128xf32>
    %487 = arith.addf %486, %485 : vector<16x128xf32>
    %488 = arith.divf %486, %487 : vector<16x128xf32>
    %489 = vector.extract_strided_slice %455 {offsets = [0, 128], sizes = [16, 128], strides = [1, 1]} : vector<16x384xf32> to vector<16x128xf32>
    %490 = vector.extract_strided_slice %451 {offsets = [0, 128], sizes = [16, 128], strides = [1, 1]} : vector<16x384xf32> to vector<16x128xf32>
    %491 = arith.addf %489, %490 : vector<16x128xf32>
    %492 = arith.negf %491 : vector<16x128xf32>
    %493 = math.exp %492 : vector<16x128xf32>
    %cst_91 = arith.constant 1.000000e+00 : f32
    %494 = vector.broadcast %cst_91 : f32 to vector<16x128xf32>
    %495 = arith.addf %494, %493 : vector<16x128xf32>
    %496 = arith.divf %494, %495 : vector<16x128xf32>
    %497 = vector.extract_strided_slice %455 {offsets = [0, 256], sizes = [16, 128], strides = [1, 1]} : vector<16x384xf32> to vector<16x128xf32>
    %498 = vector.extract_strided_slice %451 {offsets = [0, 256], sizes = [16, 128], strides = [1, 1]} : vector<16x384xf32> to vector<16x128xf32>
    %499 = arith.addf %498, %16 : vector<16x128xf32>
    %500 = arith.mulf %488, %499 : vector<16x128xf32>
    %501 = arith.addf %497, %500 : vector<16x128xf32>
    %502 = math.tanh %501 : vector<16x128xf32>
    %503 = arith.subf %432, %502 : vector<16x128xf32>
    %504 = arith.mulf %496, %503 : vector<16x128xf32>
    %505 = arith.addf %502, %504 : vector<16x128xf32>
    %506 = arith.sitofp %c5_i32 : i32 to f32
    %507 = vector.broadcast %506 : f32 to vector<16x1xf32>
    %508 = arith.cmpf ogt, %8, %507 : vector<16x1xf32>
    %509 = arith.sitofp %443 : i32 to f32
    %510 = vector.broadcast %509 : f32 to vector<16x1xf32>
    %511 = arith.cmpf ogt, %8, %510 : vector<16x1xf32>
    %512 = vector.shape_cast %508 : vector<16x1xi1> to vector<16x1xi1>
    %513 = vector.broadcast %512 : vector<16x1xi1> to vector<16x128xi1>
    %514 = arith.select %513, %480, %429 : vector<16x128xi1>, vector<16x128xf32>
    %515 = vector.shape_cast %511 : vector<16x1xi1> to vector<16x1xi1>
    %516 = vector.broadcast %515 : vector<16x1xi1> to vector<16x128xi1>
    %517 = arith.select %516, %505, %432 : vector<16x128xi1>, vector<16x128xf32>
    %cst_92 = arith.constant 0.000000e+00 : f32
    %518 = vector.shape_cast %508 : vector<16x1xi1> to vector<16x1xi1>
    %519 = vector.broadcast %518 : vector<16x1xi1> to vector<16x128xi1>
    %520 = vector.broadcast %cst_92 : f32 to vector<16x128xf32>
    %521 = arith.select %519, %480, %520 : vector<16x128xi1>, vector<16x128xf32>
    %522 = arith.addf %442, %521 : vector<16x128xf32>
    %cst_93 = arith.constant 0.000000e+00 : f32
    %523 = vector.shape_cast %511 : vector<16x1xi1> to vector<16x1xi1>
    %524 = vector.broadcast %523 : vector<16x1xi1> to vector<16x128xi1>
    %525 = vector.broadcast %cst_93 : f32 to vector<16x128xf32>
    %526 = arith.select %524, %505, %525 : vector<16x128xi1>, vector<16x128xf32>
    %527 = arith.addf %522, %526 : vector<16x128xf32>
    %c6_i32 = arith.constant 6 : i32
    %c7_i32_94 = arith.constant 7 : i32
    %528 = arith.subi %c7_i32_94, %c6_i32 : i32
    %c16_i32_95 = arith.constant 16 : i32
    %529 = arith.muli %c6_i32, %c16_i32_95 : i32
    %530 = tpu.assume_multiple %529, 16 : i32
    %c16_i32_96 = arith.constant 16 : i32
    %531 = arith.muli %528, %c16_i32_96 : i32
    %532 = tpu.assume_multiple %531, 16 : i32
    %533 = arith.truncf %514 : vector<16x128xf32> to vector<16x128xbf16>
    %cst_97 = arith.constant dense<0.000000e+00> : vector<16x384xf32>
    %534 = tpu.matmul %533, %9, %cst_97 {dimension_numbers = #tpu.dot_dimension_numbers<[1], [0], [0], [1], [0, 0, 1, 1], [], []>} : vector<16x128xbf16>, vector<128x384xbf16>, vector<16x384xf32> -> vector<16x384xf32>
    %535 = arith.truncf %517 : vector<16x128xf32> to vector<16x128xbf16>
    %cst_98 = arith.constant dense<0.000000e+00> : vector<16x384xf32>
    %536 = tpu.matmul %535, %10, %cst_98 {dimension_numbers = #tpu.dot_dimension_numbers<[1], [0], [0], [1], [0, 0, 1, 1], [], []>} : vector<16x128xbf16>, vector<128x384xbf16>, vector<16x384xf32> -> vector<16x384xf32>
    %537 = arith.index_cast %530 : i32 to index
    %c0_99 = arith.constant 0 : index
    %538 = vector.load %arg10[%537, %c0_99] : memref<128x768xf32, #tpu.memory_space<vmem>>, vector<16x384xf32>
    %539 = arith.index_cast %532 : i32 to index
    %c384_100 = arith.constant 384 : index
    %540 = vector.load %arg10[%539, %c384_100] : memref<128x768xf32, #tpu.memory_space<vmem>>, vector<16x384xf32>
    %541 = vector.extract_strided_slice %538 {offsets = [0, 0], sizes = [16, 128], strides = [1, 1]} : vector<16x384xf32> to vector<16x128xf32>
    %542 = vector.extract_strided_slice %534 {offsets = [0, 0], sizes = [16, 128], strides = [1, 1]} : vector<16x384xf32> to vector<16x128xf32>
    %543 = arith.addf %541, %542 : vector<16x128xf32>
    %544 = arith.negf %543 : vector<16x128xf32>
    %545 = math.exp %544 : vector<16x128xf32>
    %cst_101 = arith.constant 1.000000e+00 : f32
    %546 = vector.broadcast %cst_101 : f32 to vector<16x128xf32>
    %547 = arith.addf %546, %545 : vector<16x128xf32>
    %548 = arith.divf %546, %547 : vector<16x128xf32>
    %549 = vector.extract_strided_slice %538 {offsets = [0, 128], sizes = [16, 128], strides = [1, 1]} : vector<16x384xf32> to vector<16x128xf32>
    %550 = vector.extract_strided_slice %534 {offsets = [0, 128], sizes = [16, 128], strides = [1, 1]} : vector<16x384xf32> to vector<16x128xf32>
    %551 = arith.addf %549, %550 : vector<16x128xf32>
    %552 = arith.negf %551 : vector<16x128xf32>
    %553 = math.exp %552 : vector<16x128xf32>
    %cst_102 = arith.constant 1.000000e+00 : f32
    %554 = vector.broadcast %cst_102 : f32 to vector<16x128xf32>
    %555 = arith.addf %554, %553 : vector<16x128xf32>
    %556 = arith.divf %554, %555 : vector<16x128xf32>
    %557 = vector.extract_strided_slice %538 {offsets = [0, 256], sizes = [16, 128], strides = [1, 1]} : vector<16x384xf32> to vector<16x128xf32>
    %558 = vector.extract_strided_slice %534 {offsets = [0, 256], sizes = [16, 128], strides = [1, 1]} : vector<16x384xf32> to vector<16x128xf32>
    %559 = arith.addf %558, %13 : vector<16x128xf32>
    %560 = arith.mulf %548, %559 : vector<16x128xf32>
    %561 = arith.addf %557, %560 : vector<16x128xf32>
    %562 = math.tanh %561 : vector<16x128xf32>
    %563 = arith.subf %514, %562 : vector<16x128xf32>
    %564 = arith.mulf %556, %563 : vector<16x128xf32>
    %565 = arith.addf %562, %564 : vector<16x128xf32>
    %566 = vector.extract_strided_slice %540 {offsets = [0, 0], sizes = [16, 128], strides = [1, 1]} : vector<16x384xf32> to vector<16x128xf32>
    %567 = vector.extract_strided_slice %536 {offsets = [0, 0], sizes = [16, 128], strides = [1, 1]} : vector<16x384xf32> to vector<16x128xf32>
    %568 = arith.addf %566, %567 : vector<16x128xf32>
    %569 = arith.negf %568 : vector<16x128xf32>
    %570 = math.exp %569 : vector<16x128xf32>
    %cst_103 = arith.constant 1.000000e+00 : f32
    %571 = vector.broadcast %cst_103 : f32 to vector<16x128xf32>
    %572 = arith.addf %571, %570 : vector<16x128xf32>
    %573 = arith.divf %571, %572 : vector<16x128xf32>
    %574 = vector.extract_strided_slice %540 {offsets = [0, 128], sizes = [16, 128], strides = [1, 1]} : vector<16x384xf32> to vector<16x128xf32>
    %575 = vector.extract_strided_slice %536 {offsets = [0, 128], sizes = [16, 128], strides = [1, 1]} : vector<16x384xf32> to vector<16x128xf32>
    %576 = arith.addf %574, %575 : vector<16x128xf32>
    %577 = arith.negf %576 : vector<16x128xf32>
    %578 = math.exp %577 : vector<16x128xf32>
    %cst_104 = arith.constant 1.000000e+00 : f32
    %579 = vector.broadcast %cst_104 : f32 to vector<16x128xf32>
    %580 = arith.addf %579, %578 : vector<16x128xf32>
    %581 = arith.divf %579, %580 : vector<16x128xf32>
    %582 = vector.extract_strided_slice %540 {offsets = [0, 256], sizes = [16, 128], strides = [1, 1]} : vector<16x384xf32> to vector<16x128xf32>
    %583 = vector.extract_strided_slice %536 {offsets = [0, 256], sizes = [16, 128], strides = [1, 1]} : vector<16x384xf32> to vector<16x128xf32>
    %584 = arith.addf %583, %16 : vector<16x128xf32>
    %585 = arith.mulf %573, %584 : vector<16x128xf32>
    %586 = arith.addf %582, %585 : vector<16x128xf32>
    %587 = math.tanh %586 : vector<16x128xf32>
    %588 = arith.subf %517, %587 : vector<16x128xf32>
    %589 = arith.mulf %581, %588 : vector<16x128xf32>
    %590 = arith.addf %587, %589 : vector<16x128xf32>
    %591 = arith.sitofp %c6_i32 : i32 to f32
    %592 = vector.broadcast %591 : f32 to vector<16x1xf32>
    %593 = arith.cmpf ogt, %8, %592 : vector<16x1xf32>
    %594 = arith.sitofp %528 : i32 to f32
    %595 = vector.broadcast %594 : f32 to vector<16x1xf32>
    %596 = arith.cmpf ogt, %8, %595 : vector<16x1xf32>
    %597 = vector.shape_cast %593 : vector<16x1xi1> to vector<16x1xi1>
    %598 = vector.broadcast %597 : vector<16x1xi1> to vector<16x128xi1>
    %599 = arith.select %598, %565, %514 : vector<16x128xi1>, vector<16x128xf32>
    %600 = vector.shape_cast %596 : vector<16x1xi1> to vector<16x1xi1>
    %601 = vector.broadcast %600 : vector<16x1xi1> to vector<16x128xi1>
    %602 = arith.select %601, %590, %517 : vector<16x128xi1>, vector<16x128xf32>
    %cst_105 = arith.constant 0.000000e+00 : f32
    %603 = vector.shape_cast %593 : vector<16x1xi1> to vector<16x1xi1>
    %604 = vector.broadcast %603 : vector<16x1xi1> to vector<16x128xi1>
    %605 = vector.broadcast %cst_105 : f32 to vector<16x128xf32>
    %606 = arith.select %604, %565, %605 : vector<16x128xi1>, vector<16x128xf32>
    %607 = arith.addf %527, %606 : vector<16x128xf32>
    %cst_106 = arith.constant 0.000000e+00 : f32
    %608 = vector.shape_cast %596 : vector<16x1xi1> to vector<16x1xi1>
    %609 = vector.broadcast %608 : vector<16x1xi1> to vector<16x128xi1>
    %610 = vector.broadcast %cst_106 : f32 to vector<16x128xf32>
    %611 = arith.select %609, %590, %610 : vector<16x128xi1>, vector<16x128xf32>
    %612 = arith.addf %607, %611 : vector<16x128xf32>
    %c7_i32_107 = arith.constant 7 : i32
    %c7_i32_108 = arith.constant 7 : i32
    %613 = arith.subi %c7_i32_108, %c7_i32_107 : i32
    %c16_i32_109 = arith.constant 16 : i32
    %614 = arith.muli %c7_i32_107, %c16_i32_109 : i32
    %615 = tpu.assume_multiple %614, 16 : i32
    %c16_i32_110 = arith.constant 16 : i32
    %616 = arith.muli %613, %c16_i32_110 : i32
    %617 = tpu.assume_multiple %616, 16 : i32
    %618 = arith.truncf %599 : vector<16x128xf32> to vector<16x128xbf16>
    %cst_111 = arith.constant dense<0.000000e+00> : vector<16x384xf32>
    %619 = tpu.matmul %618, %9, %cst_111 {dimension_numbers = #tpu.dot_dimension_numbers<[1], [0], [0], [1], [0, 0, 1, 1], [], []>} : vector<16x128xbf16>, vector<128x384xbf16>, vector<16x384xf32> -> vector<16x384xf32>
    %620 = arith.truncf %602 : vector<16x128xf32> to vector<16x128xbf16>
    %cst_112 = arith.constant dense<0.000000e+00> : vector<16x384xf32>
    %621 = tpu.matmul %620, %10, %cst_112 {dimension_numbers = #tpu.dot_dimension_numbers<[1], [0], [0], [1], [0, 0, 1, 1], [], []>} : vector<16x128xbf16>, vector<128x384xbf16>, vector<16x384xf32> -> vector<16x384xf32>
    %622 = arith.index_cast %615 : i32 to index
    %c0_113 = arith.constant 0 : index
    %623 = vector.load %arg10[%622, %c0_113] : memref<128x768xf32, #tpu.memory_space<vmem>>, vector<16x384xf32>
    %624 = arith.index_cast %617 : i32 to index
    %c384_114 = arith.constant 384 : index
    %625 = vector.load %arg10[%624, %c384_114] : memref<128x768xf32, #tpu.memory_space<vmem>>, vector<16x384xf32>
    %626 = vector.extract_strided_slice %623 {offsets = [0, 0], sizes = [16, 128], strides = [1, 1]} : vector<16x384xf32> to vector<16x128xf32>
    %627 = vector.extract_strided_slice %619 {offsets = [0, 0], sizes = [16, 128], strides = [1, 1]} : vector<16x384xf32> to vector<16x128xf32>
    %628 = arith.addf %626, %627 : vector<16x128xf32>
    %629 = arith.negf %628 : vector<16x128xf32>
    %630 = math.exp %629 : vector<16x128xf32>
    %cst_115 = arith.constant 1.000000e+00 : f32
    %631 = vector.broadcast %cst_115 : f32 to vector<16x128xf32>
    %632 = arith.addf %631, %630 : vector<16x128xf32>
    %633 = arith.divf %631, %632 : vector<16x128xf32>
    %634 = vector.extract_strided_slice %623 {offsets = [0, 128], sizes = [16, 128], strides = [1, 1]} : vector<16x384xf32> to vector<16x128xf32>
    %635 = vector.extract_strided_slice %619 {offsets = [0, 128], sizes = [16, 128], strides = [1, 1]} : vector<16x384xf32> to vector<16x128xf32>
    %636 = arith.addf %634, %635 : vector<16x128xf32>
    %637 = arith.negf %636 : vector<16x128xf32>
    %638 = math.exp %637 : vector<16x128xf32>
    %cst_116 = arith.constant 1.000000e+00 : f32
    %639 = vector.broadcast %cst_116 : f32 to vector<16x128xf32>
    %640 = arith.addf %639, %638 : vector<16x128xf32>
    %641 = arith.divf %639, %640 : vector<16x128xf32>
    %642 = vector.extract_strided_slice %623 {offsets = [0, 256], sizes = [16, 128], strides = [1, 1]} : vector<16x384xf32> to vector<16x128xf32>
    %643 = vector.extract_strided_slice %619 {offsets = [0, 256], sizes = [16, 128], strides = [1, 1]} : vector<16x384xf32> to vector<16x128xf32>
    %644 = arith.addf %643, %13 : vector<16x128xf32>
    %645 = arith.mulf %633, %644 : vector<16x128xf32>
    %646 = arith.addf %642, %645 : vector<16x128xf32>
    %647 = math.tanh %646 : vector<16x128xf32>
    %648 = arith.subf %599, %647 : vector<16x128xf32>
    %649 = arith.mulf %641, %648 : vector<16x128xf32>
    %650 = arith.addf %647, %649 : vector<16x128xf32>
    %651 = vector.extract_strided_slice %625 {offsets = [0, 0], sizes = [16, 128], strides = [1, 1]} : vector<16x384xf32> to vector<16x128xf32>
    %652 = vector.extract_strided_slice %621 {offsets = [0, 0], sizes = [16, 128], strides = [1, 1]} : vector<16x384xf32> to vector<16x128xf32>
    %653 = arith.addf %651, %652 : vector<16x128xf32>
    %654 = arith.negf %653 : vector<16x128xf32>
    %655 = math.exp %654 : vector<16x128xf32>
    %cst_117 = arith.constant 1.000000e+00 : f32
    %656 = vector.broadcast %cst_117 : f32 to vector<16x128xf32>
    %657 = arith.addf %656, %655 : vector<16x128xf32>
    %658 = arith.divf %656, %657 : vector<16x128xf32>
    %659 = vector.extract_strided_slice %625 {offsets = [0, 128], sizes = [16, 128], strides = [1, 1]} : vector<16x384xf32> to vector<16x128xf32>
    %660 = vector.extract_strided_slice %621 {offsets = [0, 128], sizes = [16, 128], strides = [1, 1]} : vector<16x384xf32> to vector<16x128xf32>
    %661 = arith.addf %659, %660 : vector<16x128xf32>
    %662 = arith.negf %661 : vector<16x128xf32>
    %663 = math.exp %662 : vector<16x128xf32>
    %cst_118 = arith.constant 1.000000e+00 : f32
    %664 = vector.broadcast %cst_118 : f32 to vector<16x128xf32>
    %665 = arith.addf %664, %663 : vector<16x128xf32>
    %666 = arith.divf %664, %665 : vector<16x128xf32>
    %667 = vector.extract_strided_slice %625 {offsets = [0, 256], sizes = [16, 128], strides = [1, 1]} : vector<16x384xf32> to vector<16x128xf32>
    %668 = vector.extract_strided_slice %621 {offsets = [0, 256], sizes = [16, 128], strides = [1, 1]} : vector<16x384xf32> to vector<16x128xf32>
    %669 = arith.addf %668, %16 : vector<16x128xf32>
    %670 = arith.mulf %658, %669 : vector<16x128xf32>
    %671 = arith.addf %667, %670 : vector<16x128xf32>
    %672 = math.tanh %671 : vector<16x128xf32>
    %673 = arith.subf %602, %672 : vector<16x128xf32>
    %674 = arith.mulf %666, %673 : vector<16x128xf32>
    %675 = arith.addf %672, %674 : vector<16x128xf32>
    %676 = arith.sitofp %c7_i32_107 : i32 to f32
    %677 = vector.broadcast %676 : f32 to vector<16x1xf32>
    %678 = arith.cmpf ogt, %8, %677 : vector<16x1xf32>
    %679 = arith.sitofp %613 : i32 to f32
    %680 = vector.broadcast %679 : f32 to vector<16x1xf32>
    %681 = arith.cmpf ogt, %8, %680 : vector<16x1xf32>
    %682 = vector.shape_cast %678 : vector<16x1xi1> to vector<16x1xi1>
    %683 = vector.broadcast %682 : vector<16x1xi1> to vector<16x128xi1>
    %684 = arith.select %683, %650, %599 : vector<16x128xi1>, vector<16x128xf32>
    %685 = vector.shape_cast %681 : vector<16x1xi1> to vector<16x1xi1>
    %686 = vector.broadcast %685 : vector<16x1xi1> to vector<16x128xi1>
    %687 = arith.select %686, %675, %602 : vector<16x128xi1>, vector<16x128xf32>
    %cst_119 = arith.constant 0.000000e+00 : f32
    %688 = vector.shape_cast %678 : vector<16x1xi1> to vector<16x1xi1>
    %689 = vector.broadcast %688 : vector<16x1xi1> to vector<16x128xi1>
    %690 = vector.broadcast %cst_119 : f32 to vector<16x128xf32>
    %691 = arith.select %689, %650, %690 : vector<16x128xi1>, vector<16x128xf32>
    %692 = arith.addf %612, %691 : vector<16x128xf32>
    %cst_120 = arith.constant 0.000000e+00 : f32
    %693 = vector.shape_cast %681 : vector<16x1xi1> to vector<16x1xi1>
    %694 = vector.broadcast %693 : vector<16x1xi1> to vector<16x128xi1>
    %695 = vector.broadcast %cst_120 : f32 to vector<16x128xf32>
    %696 = arith.select %694, %675, %695 : vector<16x128xi1>, vector<16x128xf32>
    %697 = arith.addf %692, %696 : vector<16x128xf32>
    %c8_i32 = arith.constant 8 : i32
    %cst_121 = arith.constant 1.000000e+00 : f32
    %698 = vector.broadcast %cst_121 : f32 to vector<16x1xf32>
    %699 = arith.maximumf %8, %698 : vector<16x1xf32>
    %cst_122 = arith.constant 1.000000e+00 : f32
    %700 = vector.broadcast %cst_122 : f32 to vector<16x1xf32>
    %701 = arith.divf %700, %699 : vector<16x1xf32>
    %cst_123 = arith.constant 5.000000e-01 : f32
    %702 = vector.broadcast %cst_123 : f32 to vector<16x1xf32>
    %703 = arith.mulf %702, %701 : vector<16x1xf32>
    %704 = vector.broadcast %703 : vector<16x1xf32> to vector<16x128xf32>
    %705 = arith.mulf %697, %704 : vector<16x128xf32>
    %c0_124 = arith.constant 0 : index
    %c0_125 = arith.constant 0 : index
    %706 = vector.load %arg9[%c0_124, %c0_125] : memref<16x128xf32, #tpu.memory_space<vmem>>, vector<16x128xf32>
    tpu.vector_store %arg9[%c0_124, %c0_125], %705 {strides = array<i32>} : memref<16x128xf32, #tpu.memory_space<vmem>>, vector<16x128xf32>,
    return
  }
  func.func @transform_0(%arg0: i32) -> (i32, i32, i32) {
    %c0_i32 = arith.constant 0 : i32
    %c0_i32_0 = arith.constant 0 : i32
    %c0_i32_1 = arith.constant 0 : i32
    return %arg0, %c0_i32, %c0_i32_0 : i32, i32, i32
  }
  func.func @transform_1(%arg0: i32) -> (i32, i32) {
    %c0_i32 = arith.constant 0 : i32
    %c0_i32_0 = arith.constant 0 : i32
    return %arg0, %c0_i32 : i32, i32
  }
  func.func @transform_2(%arg0: i32) -> (i32, i32) {
    %c0_i32 = arith.constant 0 : i32
    %c0_i32_0 = arith.constant 0 : i32
    %c0_i32_1 = arith.constant 0 : i32
    return %c0_i32, %c0_i32_0 : i32, i32
  }
  func.func @transform_3(%arg0: i32) -> (i32, i32) {
    %c0_i32 = arith.constant 0 : i32
    %c0_i32_0 = arith.constant 0 : i32
    %c0_i32_1 = arith.constant 0 : i32
    return %c0_i32, %c0_i32_0 : i32, i32
  }
  func.func @transform_4(%arg0: i32) -> (i32, i32) {
    %c0_i32 = arith.constant 0 : i32
    %c0_i32_0 = arith.constant 0 : i32
    %c0_i32_1 = arith.constant 0 : i32
    return %c0_i32, %c0_i32_0 : i32, i32
  }
  func.func @transform_5(%arg0: i32) -> (i32, i32) {
    %c0_i32 = arith.constant 0 : i32
    %c0_i32_0 = arith.constant 0 : i32
    %c0_i32_1 = arith.constant 0 : i32
    return %c0_i32, %c0_i32_0 : i32, i32
  }
  func.func @transform_6(%arg0: i32) -> (i32, i32) {
    %c0_i32 = arith.constant 0 : i32
    %c0_i32_0 = arith.constant 0 : i32
    %c0_i32_1 = arith.constant 0 : i32
    return %c0_i32, %c0_i32_0 : i32, i32
  }
  func.func @transform_7(%arg0: i32) -> (i32, i32) {
    %c0_i32 = arith.constant 0 : i32
    %c0_i32_0 = arith.constant 0 : i32
    %c0_i32_1 = arith.constant 0 : i32
    return %c0_i32, %c0_i32_0 : i32, i32
  }
  func.func @transform_8(%arg0: i32) -> (i32, i32) {
    %c0_i32 = arith.constant 0 : i32
    %c0_i32_0 = arith.constant 0 : i32
    return %arg0, %c0_i32 : i32, i32
  }
}

</mosaic_0001>

<bundles_post_ra>
// kernel: tpu_custom_call.1
= control target key start
LH: loop header
LB: loop body
LE: loop exit
PB: predicated region body
PF: predicated region fallthrough
CT: control target
= control target key end

     0   :  { %13 = vsyncpa [#allocation4], 0  ;;  %s6877_s0 = inlined_call_operand.hbm [shape: bf16[1,128,128], index: 0, kind: input, shape index: {}]   ;;  %s6878_s1 = inlined_call_operand.vmem [shape: f32[16,1], index: 1, kind: input, shape index: {}]   ;;  %s6879_s2 = inlined_call_operand.hbm [shape: bf16[128,768], index: 2, kind: input, shape index: {}]   ;;  %s6880_s3 = inlined_call_operand.vmem [shape: f32[1,768], index: 3, kind: input, shape index: {}]   ;;  %s6881_s4 = inlined_call_operand.hbm [shape: bf16[128,384], index: 4, kind: input, shape index: {}]   ;;  %s6882_s5 = inlined_call_operand.hbm [shape: bf16[128,384], index: 5, kind: input, shape index: {}]   ;;  %s6883_s6 = inlined_call_operand.vmem [shape: f32[1,128], index: 6, kind: input, shape index: {}]   ;;  %s6884_s7 = inlined_call_operand.vmem [shape: f32[1,128], index: 7, kind: input, shape index: {}]   ;;  %s6885_s8 = inlined_call_operand.hbm [shape: f32[16,128], index: 8, kind: output, shape index: {}]  }
   0x1   :  { %14 = vsyncpa [#allocation7], 0 }
   0x2   :  { %15 = vsyncpa [#allocation10], 0 }
   0x3   :  { %16 = vsyncpa [#allocation5], 0  ;;  %s5037_s27 = smov [#allocation6]   ;;  %s4919_s9 = scalar_lea.hbm %s6879_s2, 6144 }
   0x4   :  { %s36_s28 = sshll.u32 %s5037_s27, 4  ;;  %p4920_p0 = scmp.ne.s32.totalorder %s6879_s2, %s4919_s9  ;;  %s37_s28 = int_to_ptr.vmem [resolvable:$true] %s36_s28 }
   0x5   :  { %p4923_p1 = scmp.lt.u32.totalorder %s4919_s9, %s6879_s2 }
   0x7   :  { %p4925_p2 = pnand %p4923_p1, %p4920_p0 }
   0x9   :  { %4928 = shalt.err (!%p4925_p2)
}
   0xa   :  { %s4929_s14 = scalar_lea.vmem %s37_s28, 6144  ;;  %p4934_p4 = scmp.lt.s32.totalorder %s37_s28, %s37_s28 }
   0xb   :  { %p4930_p3 = scmp.ne.s32.totalorder %s37_s28, %s4929_s14  ;;  %p4935_p5 = scmp.lt.s32.totalorder %s4929_s14, %s4929_s14 }
   0xd   :  { %p4936_p6 = por %p4935_p5, %p4934_p4 }
   0xf   :  { %p4937_p7 = pnand %p4936_p6, %p4930_p3 }
  0x11   :  { %4940 = shalt.err (!%p4937_p7)
}
  0x12   :  { %s5038_s15 = smov 384   ;;  %s5039_s16 = smov 24  }
  0x13   :  { %42 = dma.hbm_to_vmem [thread:$0]  %s6879_s2, 6144, %s37_s28, [#allocation7], %s5038_s15, %s5038_s15, %s5039_s16  }
  0x14   :  { %s5040_s19 = smov [#allocation3]   ;;  %s4941_s23 = scalar_lea.hbm %s6877_s0, 1024 }
  0x15   :  { %s22_s20 = sshll.u32 %s5040_s19, 4  ;;  %p4942_p8 = scmp.ne.s32.totalorder %s6877_s0, %s4941_s23  ;;  %s23_s20 = int_to_ptr.vmem [resolvable:$true] %s22_s20 }
  0x16   :  { %p4945_p9 = scmp.lt.u32.totalorder %s4941_s23, %s6877_s0 }
  0x18   :  { %p4947_p10 = pnand %p4945_p9, %p4942_p8 }
  0x1a   :  { %4950 = shalt.err (!%p4947_p10)
}
  0x1b   :  { %s4951_s29 = scalar_lea.vmem %s23_s20, 1024  ;;  %p4956_p12 = scmp.lt.s32.totalorder %s23_s20, %s23_s20 }
  0x1c   :  { %p4952_p11 = scmp.ne.s32.totalorder %s23_s20, %s4951_s29  ;;  %p4957_p13 = scmp.lt.s32.totalorder %s4951_s29, %s4951_s29 }
  0x1e   :  { %p4958_p0 = por %p4957_p13, %p4956_p12 }
  0x20   :  { %p4959_p1 = pnand %p4958_p0, %p4952_p11 }
  0x22   :  { %4962 = shalt.err (!%p4959_p1)
}
  0x23   :  { %s5041_s2 = smov 64   ;;  %s5042_s28 = smov 4  }
  0x24   :  { %28 = dma.hbm_to_vmem [thread:$0]  %s6877_s0, 1024, %s23_s20, [#allocation4], %s5041_s2, %s5041_s2, %s5042_s28  }
  0x25   :  { %s5043_s10 = smov [#allocation8]   ;;  %s4963_s14 = scalar_lea.hbm %s6881_s4, 3072 }
  0x26   :  { %s50_s11 = sshll.u32 %s5043_s10, 4  ;;  %p4964_p2 = scmp.ne.s32.totalorder %s6881_s4, %s4963_s14  ;;  %s51_s11 = int_to_ptr.vmem [resolvable:$true] %s50_s11 }
  0x27   :  { %p4967_p3 = scmp.lt.u32.totalorder %s4963_s14, %s6881_s4 }
  0x29   :  { %p4969_p4 = pnand %p4967_p3, %p4964_p2 }
  0x2b   :  { %4972 = shalt.err (!%p4969_p4)
}
  0x2c   :  { %s4973_s19 = scalar_lea.vmem %s51_s11, 3072  ;;  %p4978_p6 = scmp.lt.s32.totalorder %s51_s11, %s51_s11 }
  0x2d   :  { %p4974_p5 = scmp.ne.s32.totalorder %s51_s11, %s4973_s19  ;;  %p4979_p7 = scmp.lt.s32.totalorder %s4973_s19, %s4973_s19 }
  0x2f   :  { %p4980_p8 = por %p4979_p7, %p4978_p6 }
  0x31   :  { %p4981_p9 = pnand %p4980_p8, %p4974_p5 }
  0x33   :  { %4984 = shalt.err (!%p4981_p9)
}
  0x34   :  { %s5044_s0 = smov 192   ;;  %s5045_s20 = smov 12  }
  0x35   :  { %56 = dma.hbm_to_vmem [thread:$0]  %s6881_s4, 3072, %s51_s11, [#allocation7], %s5044_s0, %s5044_s0, %s5045_s20  }
  0x36   :  { %s5046_s23 = smov [#allocation9]   ;;  %s4985_s27 = scalar_lea.hbm %s6882_s5, 3072 }
  0x37   :  { %s62_s24 = sshll.u32 %s5046_s23, 4  ;;  %p4986_p10 = scmp.ne.s32.totalorder %s6882_s5, %s4985_s27  ;;  %s63_s24 = int_to_ptr.vmem [resolvable:$true] %s62_s24 }
  0x38   :  { %p4989_p11 = scmp.lt.u32.totalorder %s4985_s27, %s6882_s5 }
  0x3a   :  { %p4991_p12 = pnand %p4989_p11, %p4986_p10 }
  0x3c   :  { %4994 = shalt.err (!%p4991_p12)
}
  0x3d   :  { %s4995_s9 = scalar_lea.vmem %s63_s24, 3072  ;;  %p5000_p0 = scmp.lt.s32.totalorder %s63_s24, %s63_s24 }
  0x3e   :  { %p4996_p13 = scmp.ne.s32.totalorder %s63_s24, %s4995_s9  ;;  %p5001_p1 = scmp.lt.s32.totalorder %s4995_s9, %s4995_s9 }
  0x40   :  { %p5002_p2 = por %p5001_p1, %p5000_p0 }
  0x42   :  { %p5003_p3 = pnand %p5002_p2, %p4996_p13 }
  0x44   :  { %5006 = shalt.err (!%p5003_p3)
}
  0x45   :  { %68 = dma.hbm_to_vmem [thread:$0]  %s6882_s5, 3072, %s63_s24, [#allocation10], %s5044_s0, %s5044_s0, %s5045_s20  }
  0x46   :  { %5029 = dma.done.wait [#allocation4], 1024  }
  0x47   :  { %5030 = vsyncadd [#allocation4], 4294966272 }
  0x48   :  { %5031 = dma.done.wait [#allocation7], 9216  }
  0x49   :  { %5032 = vsyncadd [#allocation7], 4294958080 }
  0x4a   :  { %5033 = dma.done.wait [#allocation10], 3072  }
  0x4b   :  { %5034 = vsyncadd [#allocation10], 4294964224  ;;  %v6886_v0 = vmov 0   ;;  %v4351_v1 = vld [vmem:[#allocation6 + $0x4] ss:$24 sps:$4 sm:$0xff]   ;;  %v6888_v37 = vmov 0.0  }
  0x4c   :  { %502 = vmatprep.mubr.bf16.mxu0 %v6886_v0  ;;  %615 = vmatprep.mubr.bf16.mxu1 %v6886_v0  ;;  %v4353_v2 = vld [vmem:[#allocation6 + $0xc] ss:$24 sps:$4 sm:$0xff]   ;;  %v4355_v3 = vld [vmem:[#allocation6] ss:$24 sps:$4 sm:$0xff]   ;;  %v4359_v6 = vld [vmem:[#allocation6 + $0x3c] ss:$24 sps:$4 sm:$0xff]  }
  0x4d   :  { %4349 = vset.pattern.permute.xlu0 %v6886_v0  ;;  %4350 = vset.pattern.permute.xlu1 %v6886_v0  ;;  %v4356_v4 = vld [vmem:[#allocation6 + $0x8] ss:$24 sps:$4 sm:$0xff]   ;;  %v4357_v5 = vld [vmem:[#allocation6 + $0x34] ss:$24 sps:$4 sm:$0xff]   ;;  %v4362_v8 = vld [vmem:[#allocation6 + $0x38] ss:$24 sps:$4 sm:$0xff]  }
  0x4e   :  { %470 = vmatprep.subr.bf16.mxu0 %v4351_v1  ;;  %583 = vmatprep.subr.bf16.mxu1 %v4353_v2  ;;  %v4361_v7 = vld [vmem:[#allocation6 + $0x30] ss:$24 sps:$4 sm:$0xff]   ;;  %v4363_v9 = vld [vmem:[#allocation6 + $0x64] ss:$24 sps:$4 sm:$0xff]   ;;  %v4367_v11 = vld [vmem:[#allocation6 + $0x60] ss:$24 sps:$4 sm:$0xff]  }
  0x4f   :  { %471 = vmatpush1.bf16.msra.mxu0 %v4355_v3  ;;  %584 = vmatpush1.bf16.msra.mxu1 %v4356_v4  ;;  %v4365_v10 = vld [vmem:[#allocation6 + $0x6c] ss:$24 sps:$4 sm:$0xff]   ;;  %v4368_v12 = vld [vmem:[#allocation6 + $0x68] ss:$24 sps:$4 sm:$0xff]   ;;  %v4371_v14 = vld [vmem:[#allocation6 + $0x9c] ss:$24 sps:$4 sm:$0xff]  }
  0x50   :  { %472 = vmatprep.subr.bf16.mxu0 %v4357_v5  ;;  %585 = vmatprep.subr.bf16.mxu1 %v4359_v6  ;;  %v4369_v13 = vld [vmem:[#allocation6 + $0x94] ss:$24 sps:$4 sm:$0xff]   ;;  %v4373_v15 = vld [vmem:[#allocation6 + $0x90] ss:$24 sps:$4 sm:$0xff]   ;;  %v4375_v17 = vld [vmem:[#allocation6 + $0xc4] ss:$24 sps:$4 sm:$0xff]  }
  0x51   :  { %v4374_v16 = vld [vmem:[#allocation6 + $0x98] ss:$24 sps:$4 sm:$0xff]   ;;  %v4377_v18 = vld [vmem:[#allocation6 + $0xcc] ss:$24 sps:$4 sm:$0xff]   ;;  %v4380_v20 = vld [vmem:[#allocation6 + $0xc8] ss:$24 sps:$4 sm:$0xff]  }
  0x52   :  { %v4379_v19 = vld [vmem:[#allocation6 + $0xc0] ss:$24 sps:$4 sm:$0xff]   ;;  %v4381_v21 = vld [vmem:[#allocation6 + $0xf4] ss:$24 sps:$4 sm:$0xff]   ;;  %v4385_v23 = vld [vmem:[#allocation6 + $0xf0] ss:$24 sps:$4 sm:$0xff]  }
  0x53   :  { %473 = vmatpush1.bf16.msra.mxu0 %v4361_v7  ;;  %586 = vmatpush1.bf16.msra.mxu1 %v4362_v8  ;;  %v4383_v22 = vld [vmem:[#allocation6 + $0xfc] ss:$24 sps:$4 sm:$0xff]   ;;  %v4386_v24 = vld [vmem:[#allocation6 + $0xf8] ss:$24 sps:$4 sm:$0xff]   ;;  %v4389_v26 = vld [vmem:[#allocation6 + $0x12c] ss:$24 sps:$4 sm:$0xff]  }
  0x54   :  { %474 = vmatprep.subr.bf16.mxu0 %v4363_v9  ;;  %587 = vmatprep.subr.bf16.mxu1 %v4365_v10  ;;  %v4387_v25 = vld [vmem:[#allocation6 + $0x124] ss:$24 sps:$4 sm:$0xff]   ;;  %v4391_v27 = vld [vmem:[#allocation6 + $0x120] ss:$24 sps:$4 sm:$0xff]   ;;  %v4393_v29 = vld [vmem:[#allocation6 + $0x154] ss:$24 sps:$4 sm:$0xff]  }
  0x55   :  { %v4392_v28 = vld [vmem:[#allocation6 + $0x128] ss:$24 sps:$4 sm:$0xff]   ;;  %v4395_v30 = vld [vmem:[#allocation6 + $0x15c] ss:$24 sps:$4 sm:$0xff]   ;;  %v4398_v32 = vld [vmem:[#allocation6 + $0x158] ss:$24 sps:$4 sm:$0xff]  }
  0x56   :  { %v4397_v31 = vld [vmem:[#allocation6 + $0x150] ss:$24 sps:$4 sm:$0xff]   ;;  %v4402_v33 = vld [vmem:[#allocation6 + $0x14] ss:$24 sps:$4 sm:$0xff]   ;;  %v5150_v34 = vld [vmem:[#allocation3] sm:$0xff]   ;;  %vm5049_vm8 = vmmov 0  }
  0x57   :  { %475 = vmatpush1.bf16.msra.mxu0 %v4367_v11  ;;  %588 = vmatpush1.bf16.msra.mxu1 %v4368_v12  ;;  %v4400_v35 = vld [vmem:[#allocation6 + $0x10] ss:$24 sps:$4 sm:$0xff]   ;;  %v4406_v36 = vld [vmem:[#allocation6 + $0x44] ss:$24 sps:$4 sm:$0xff]   ;;  %v4404_v39 = vld [vmem:[#allocation6 + $0x40] ss:$24 sps:$4 sm:$0xff]  }
  0x58   :  { %476 = vmatprep.subr.bf16.mxu0 %v4369_v13  ;;  %589 = vmatprep.subr.bf16.mxu1 %v4371_v14  ;;  %v5153_v38 = vld [vmem:[#allocation8 + $0x8] ss:$12 sps:$4 sm:$0xff]   ;;  %v5160_v41 = vld [vmem:[#allocation8 + $0x20] ss:$12 sps:$4 sm:$0xff]   ;;  %v4414_v44 = vld [vmem:[#allocation6 + $0xa4] ss:$24 sps:$4 sm:$0xff]  }
  0x59   :  { %v4410_v40 = vld [vmem:[#allocation6 + $0x74] ss:$24 sps:$4 sm:$0xff]   ;;  %v4408_v43 = vld [vmem:[#allocation6 + $0x70] ss:$24 sps:$4 sm:$0xff]   ;;  %v5166_v45 = vld [vmem:[#allocation8 + $0x38] ss:$12 sps:$4 sm:$0xff]  }
  0x5a   :  { %v5162_v42 = vld [vmem:[#allocation3 + $0x8] sm:$0xff]   ;;  %v4412_v46 = vld [vmem:[#allocation6 + $0xa0] ss:$24 sps:$4 sm:$0xff]   ;;  %v5174_v48 = vld [vmem:[#allocation8 + $0x50] ss:$12 sps:$4 sm:$0xff]  }
  0x5b   :  { %477 = vmatpush1.bf16.msra.mxu0 %v4373_v15  ;;  %590 = vmatpush1.bf16.msra.mxu1 %v4374_v16  ;;  %v4418_v47 = vld [vmem:[#allocation6 + $0xd4] ss:$24 sps:$4 sm:$0xff]   ;;  %v4416_v50 = vld [vmem:[#allocation6 + $0xd0] ss:$24 sps:$4 sm:$0xff]   ;;  %v4424_v51 = vld [vmem:[#allocation6 + $0x104] ss:$24 sps:$4 sm:$0xff]  }
  0x5c   :  { %478 = vmatprep.subr.bf16.mxu0 %v4375_v17  ;;  %591 = vmatprep.subr.bf16.mxu1 %v4377_v18  ;;  %v5176_v49 = vld [vmem:[#allocation3 + $0x10] sm:$0xff]   ;;  %v4422_v53 = vld [vmem:[#allocation6 + $0x100] ss:$24 sps:$4 sm:$0xff]   ;;  %v4436_v58 = vld [vmem:[#allocation6 + $0x164] ss:$24 sps:$4 sm:$0xff]  }
  0x5d   :  { %v5180_v52 = vld [vmem:[#allocation8 + $0x68] ss:$12 sps:$4 sm:$0xff]   ;;  %v5188_v55 = vld [vmem:[#allocation8 + $0x80] ss:$12 sps:$4 sm:$0xff]   ;;  %v5190_v56 = vld [vmem:[#allocation3 + $0x18] sm:$0xff]  }
  0x5e   :  { %v4430_v54 = vld [vmem:[#allocation6 + $0x134] ss:$24 sps:$4 sm:$0xff]   ;;  %v4428_v57 = vld [vmem:[#allocation6 + $0x130] ss:$24 sps:$4 sm:$0xff]   ;;  %v5194_v59 = vld [vmem:[#allocation8 + $0x98] ss:$12 sps:$4 sm:$0xff]  }
  0x5f   :  { %479 = vmatpush1.bf16.msra.mxu0 %v4379_v19  ;;  %592 = vmatpush1.bf16.msra.mxu1 %v4380_v20  ;;  %v4434_v60 = vld [vmem:[#allocation6 + $0x160] ss:$24 sps:$4 sm:$0xff]   ;;  %v5202_v61 = vld [vmem:[#allocation8 + $0xb0] ss:$12 sps:$4 sm:$0xff]   ;;  %v5218_v2 = vld [vmem:[#allocation3 + $0x28] sm:$0xff]  }
  0x60   :  { %480 = vmatprep.subr.bf16.mxu0 %v4381_v21  ;;  %593 = vmatprep.subr.bf16.mxu1 %v4383_v22  ;;  %v5204_v62 = vld [vmem:[#allocation8 + $0x4] ss:$12 sps:$4 sm:$0xff]   ;;  %v5232_v4 = vld [vmem:[%s6878_s1 + $0x8] sm:$0xff]  ;;  %v5252_v12 = vld [vmem:[#allocation3 + $0x38] sm:$0xff]  }
  0x61   :  { %v5206_v63 = vld [vmem:[#allocation3 + $0x20] sm:$0xff]   ;;  %v5236_v5 = vld [vmem:[#allocation3 + $0x30] sm:$0xff]   ;;  %vm1512_vm2 = vcmp.gt.f32.partialorder %v5232_v4, 0.0  ;;  %vm1514_vm3 = vcmp.gt.f32.partialorder %v5232_v4, 7.0  ;;  %vm1816_vm5 = vcmp.gt.f32.partialorder %v5232_v4, 1.0  ;;  %vm1818_vm12 = vcmp.gt.f32.partialorder %v5232_v4, 6.0 }
  0x62   :  { %v5209_v1 = vld [vmem:[#allocation9 + $0x4] ss:$12 sps:$4 sm:$0xff]   ;;  %v1516_v8 = vsel %vm1512_vm2, 1, %v6886_v0  ;;  %v1528_v9 = vsel %vm1514_vm3, 1, %v6886_v0  ;;  %v1820_v11 = vsel %vm1816_vm5, 1, %v6886_v0  ;;  %vm2124_vm13 = vcmp.gt.f32.partialorder %v5232_v4, 2.0 }
  0x63   :  { %481 = vmatpush1.bf16.msra.mxu0 %v4385_v23  ;;  %594 = vmatpush1.bf16.msra.mxu1 %v4386_v24  ;;  %v5227_v3 = vld [vmem:[%s6878_s1] sm:$0xff]  ;;  %v5268_v18 = vld [vmem:[#allocation9 + $0x1c] ss:$12 sps:$4 sm:$0xff]   ;;  %vm2126_vm14 = vcmp.gt.f32.partialorder %v5232_v4, 5.0  ;;  %vm2432_vm15 = vcmp.gt.f32.partialorder %v5232_v4, 3.0 }
  0x64   :  { %482 = vmatprep.subr.bf16.mxu0 %v4387_v25  ;;  %595 = vmatprep.subr.bf16.mxu1 %v4389_v26  ;;  %vm1511_vm0 = vcmp.gt.f32.partialorder %v5227_v3, 0.0  ;;  %vm1513_vm1 = vcmp.gt.f32.partialorder %v5227_v3, 7.0  ;;  %vm1815_vm4 = vcmp.gt.f32.partialorder %v5227_v3, 1.0  ;;  %vm1817_vm6 = vcmp.gt.f32.partialorder %v5227_v3, 6.0  ;;  %v5264_v16 = vld [vmem:[#allocation9] ss:$12 sps:$4 sm:$0xff]  }
  0x65   :  { %v1515_v6 = vsel %vm1511_vm0, 1, %v6886_v0  ;;  %v1527_v7 = vsel %vm1513_vm1, 1, %v6886_v0  ;;  %v1819_v10 = vsel %vm1815_vm4, 1, %v6886_v0  ;;  %v1831_v13 = vsel %vm1817_vm6, 1, %v6886_v0  ;;  %v5266_v17 = vld [vmem:[#allocation8] ss:$12 sps:$4 sm:$0xff]  }
  0x66   :  { %1518 = vperm.xlu0 %4349, %v1515_v6   ;;  %1530 = vperm.xlu1 %4350, %v1527_v7   ;;  %vm2123_vm7 = vcmp.gt.f32.partialorder %v5227_v3, 2.0  ;;  %v3575_v15 = vmax.f32 %v5227_v3, 1.0  ;;  %vm2125_vm9 = vcmp.gt.f32.partialorder %v5227_v3, 5.0  ;;  %v5271_v19 = vld [vmem:[#allocation8 + $0x1c] ss:$12 sps:$4 sm:$0xff]   ;;  %vm2431_vm10 = vcmp.gt.f32.partialorder %v5227_v3, 3.0 }
  0x67   :  { %483 = vmatpush1.bf16.msra.mxu0 %v4391_v27  ;;  %596 = vmatpush1.bf16.msra.mxu1 %v4392_v28  ;;  %v2127_v14 = vsel %vm2123_vm7, 1, %v6886_v0  ;;  %v5277_v20 = vld [vmem:[#allocation9 + $0x18] ss:$12 sps:$4 sm:$0xff]   ;;  %v2139_v22 = vsel %vm2125_vm9, 1, %v6886_v0  ;;  %v5284_v23 = vld [vmem:[#allocation9 + $0x34] ss:$12 sps:$4 sm:$0xff]  }
  0x68   :  { %484 = vmatprep.subr.bf16.mxu0 %v4393_v29  ;;  %597 = vmatprep.subr.bf16.mxu1 %v4395_v30  ;;  %4495 = vrcp.f32 %v3575_v15  ;;  %v5279_v21 = vld [vmem:[#allocation8 + $0x18] ss:$12 sps:$4 sm:$0xff]   ;;  %v5286_v24 = vld [vmem:[#allocation8 + $0x34] ss:$12 sps:$4 sm:$0xff]   ;;  %v5292_v25 = vld [vmem:[#allocation9 + $0x30] ss:$12 sps:$4 sm:$0xff]  }
  0x69   :  { %v2435_v26 = vsel %vm2431_vm10, 1, %v6886_v0  ;;  %v5297_v27 = vld [vmem:[#allocation9 + $0x4c] ss:$12 sps:$4 sm:$0xff]   ;;  %v5300_v28 = vld [vmem:[#allocation8 + $0x30] ss:$12 sps:$4 sm:$0xff]   ;;  %vm2433_vm11 = vcmp.gt.f32.partialorder %v5227_v3, 4.0 }
  0x6a   :  { %1521 = vperm.xlu0 %4349, %v1516_v8   ;;  %1533 = vperm.xlu1 %4350, %v1528_v9   ;;  %v5303_v29 = vld [vmem:[#allocation8 + $0x4c] ss:$12 sps:$4 sm:$0xff]   ;;  %v5373_v3 = vld [vmem:[#allocation9 + $0x8] ss:$12 sps:$4 sm:$0xff]   ;;  %v5413_v9 = vld [vmem:[#allocation9 + $0xb0] ss:$12 sps:$4 sm:$0xff]  }
  0x6b   :  { %485 = vmatpush1.bf16.msra.mxu0 %v4397_v31  ;;  %598 = vmatpush1.bf16.msra.mxu1 %v4398_v32  ;;  %v5307_v31 = vld [vmem:[#allocation9 + $0x48] ss:$12 sps:$4 sm:$0xff]   ;;  %v2447_v32 = vsel %vm2433_vm11, 1, %v6886_v0  ;;  %v5381_v6 = vld [vmem:[#allocation9 + $0x20] ss:$12 sps:$4 sm:$0xff]   ;;  %vm2434_vm0 = vcmp.gt.f32.partialorder %v5232_v4, 4.0 }
  0x6c   :  { %696 = vmatprep.subr.bf16.mxu0 %v4402_v33  ;;  %3949 = vmatprep.subr.bf16.mxu1 %v6888_v37  ;;  %v5312_v33 = vld [vmem:[#allocation9 + $0x64] ss:$12 sps:$4 sm:$0xff]   ;;  %v5403_v8 = vld [vmem:[#allocation9 + $0x80] ss:$12 sps:$4 sm:$0xff]  }
  0x6d   :  { %v5388_v7 = vld [vmem:[#allocation9 + $0x38] ss:$12 sps:$4 sm:$0xff]  }
  0x6e   :  { %503 = vmatmul.mubr.bf16.vlgmr.msra.gmra.mrb[0].mxu0 %v5150_v34  ;;  %616 = vmatmul.mubr.bf16.vlgmr.msra.gmra.mrb[0].mxu1 %v5150_v34 }
  0x6f   :  { %697 = vmatpush1.bf16.msra.mxu0 %v4400_v35  ;;  %512 = vmatprep.mubr.bf16.mxu0 %v6886_v0  ;;  %v5318_v35 = vld [vmem:[#allocation8 + $0x64] ss:$12 sps:$4 sm:$0xff]  }
  0x70   :  { %625 = vmatprep.mubr.bf16.mxu1 %v6886_v0  ;;  %698 = vmatprep.subr.bf16.mxu0 %v4406_v36 }
  0x71   :  { %3950 = vmatpush3.bf16.msra.mxu1 %v5153_v38  ;;  %1822 = vperm.xlu0 %4349, %v1819_v10  }
  0x72   :  { %3951 = vmatprep.subr.bf16.mxu1 %v6888_v37  ;;  %1825 = vperm.xlu1 %4350, %v1820_v11   ;;  %v4496_v30 = vpop.eup %4495 }
  0x73   :  { %699 = vmatpush1.bf16.msra.mxu0 %v4404_v39  ;;  %v3581_v36 = vmul.f32 0.5, %v4496_v30  ;;  %v5321_v39 = vld [vmem:[#allocation9 + $0x60] ss:$12 sps:$4 sm:$0xff]  }
  0x74   :  { %700 = vmatprep.subr.bf16.mxu0 %v4410_v40  ;;  %v5324_v40 = vld [vmem:[#allocation9 + $0x7c] ss:$12 sps:$4 sm:$0xff]  }
  0x75   :  { %3952 = vmatpush3.bf16.msra.mxu1 %v5160_v41  ;;  %1834 = vperm.xlu0 %4349, %v1831_v13  }
  0x76   :  { %513 = vmatmul.mubr.bf16.gmra.mrb[4].mxu0 %v5162_v42  ;;  %626 = vmatmul.mubr.bf16.gmra.mrb[4].mxu1 %v5162_v42 }
  0x77   :  { %522 = vmatprep.mubr.bf16.mxu0 %v6886_v0  ;;  %635 = vmatprep.mubr.bf16.mxu1 %v6886_v0 }
  0x78   :  { %701 = vmatpush1.bf16.msra.mxu0 %v4408_v43  ;;  %3953 = vmatprep.subr.bf16.mxu1 %v6888_v37  ;;  %v5330_v43 = vld [vmem:[#allocation8 + $0x7c] ss:$12 sps:$4 sm:$0xff]  }
  0x79   :  { %702 = vmatprep.subr.bf16.mxu0 %v4414_v44  ;;  %3954 = vmatpush3.bf16.msra.mxu1 %v5166_v45  ;;  %v5334_v44 = vld [vmem:[#allocation9 + $0x78] ss:$12 sps:$4 sm:$0xff]  }
  0x7a   :  { %3955 = vmatprep.subr.bf16.mxu1 %v6888_v37  ;;  %2130 = vperm.xlu0 %4349, %v2127_v14  }
  0x7c   :  { %703 = vmatpush1.bf16.msra.mxu0 %v4412_v46  ;;  %v5338_v46 = vld [vmem:[#allocation9 + $0x94] ss:$12 sps:$4 sm:$0xff]  }
  0x7d   :  { %704 = vmatprep.subr.bf16.mxu0 %v4418_v47  ;;  %3956 = vmatpush3.bf16.msra.mxu1 %v5174_v48  ;;  %v5341_v47 = vld [vmem:[#allocation8 + $0x78] ss:$12 sps:$4 sm:$0xff]  }
  0x7e   :  { %523 = vmatmul.mubr.bf16.gmra.mrb[8].mxu0 %v5176_v49  ;;  %636 = vmatmul.mubr.bf16.gmra.mrb[8].mxu1 %v5176_v49  ;;  %6965 = vst [vmem:[#allocation16_spill] sm:$0xff] %v5341_v47 }
  0x7f   :  { %532 = vmatprep.mubr.bf16.mxu0 %v6886_v0  ;;  %645 = vmatprep.mubr.bf16.mxu1 %v6886_v0 }
  0x80   :  { %705 = vmatpush1.bf16.msra.mxu0 %v4416_v50  ;;  %3957 = vmatprep.subr.bf16.mxu1 %v6888_v37  ;;  %v5344_v50 = vld [vmem:[#allocation8 + $0x94] ss:$12 sps:$4 sm:$0xff]  }
  0x81   :  { %706 = vmatprep.subr.bf16.mxu0 %v4424_v51  ;;  %3958 = vmatpush3.bf16.msra.mxu1 %v5180_v52  ;;  %6966 = vst [vmem:[#allocation17_spill] sm:$0xff] %v5344_v50  ;;  %v5350_v51 = vld [vmem:[#allocation9 + $0xac] ss:$12 sps:$4 sm:$0xff]  }
  0x82   :  { %3959 = vmatprep.subr.bf16.mxu1 %v6888_v37  ;;  %2142 = vperm.xlu0 %4349, %v2139_v22  }
  0x84   :  { %707 = vmatpush1.bf16.msra.mxu0 %v4422_v53  ;;  %v5353_v53 = vld [vmem:[#allocation8 + $0x90] ss:$12 sps:$4 sm:$0xff]  }
  0x85   :  { %708 = vmatprep.subr.bf16.mxu0 %v4430_v54  ;;  %3960 = vmatpush3.bf16.msra.mxu1 %v5188_v55  ;;  %6967 = vst [vmem:[#allocation18_spill] sm:$0xff] %v5353_v53  ;;  %v5356_v54 = vld [vmem:[#allocation8 + $0xac] ss:$12 sps:$4 sm:$0xff]  }
  0x86   :  { %533 = vmatmul.mubr.bf16.gmra.mrb[12].mxu0 %v5190_v56  ;;  %646 = vmatmul.mubr.bf16.gmra.mrb[12].mxu1 %v5190_v56  ;;  %6968 = vst [vmem:[#allocation19_spill] sm:$0xff] %v5356_v54 }
  0x87   :  { %542 = vmatprep.mubr.bf16.mxu0 %v6886_v0  ;;  %655 = vmatprep.mubr.bf16.mxu1 %v6886_v0 }
  0x88   :  { %709 = vmatpush1.bf16.msra.mxu0 %v4428_v57  ;;  %3961 = vmatprep.subr.bf16.mxu1 %v6888_v37  ;;  %v1832_v57 = vsel %vm1818_vm12, 1, %v6886_v0 }
  0x89   :  { %710 = vmatprep.subr.bf16.mxu0 %v4436_v58  ;;  %3962 = vmatpush3.bf16.msra.mxu1 %v5194_v59  ;;  %v5362_v58 = vld [vmem:[#allocation9 + $0xa8] ss:$12 sps:$4 sm:$0xff]  }
  0x8a   :  { %3963 = vmatprep.subr.bf16.mxu1 %v6888_v37  ;;  %2438 = vperm.xlu0 %4349, %v2435_v26  }
  0x8b   :  { %1837 = vperm.xlu1 %4350, %v1832_v57  }
  0x8c   :  { %711 = vmatpush1.bf16.msra.mxu0 %v4434_v60  ;;  %v5368_v60 = vld [vmem:[#allocation8 + $0xa8] ss:$12 sps:$4 sm:$0xff]  }
  0x8d   :  { %3964 = vmatpush3.bf16.msra.mxu1 %v5202_v61  ;;  %1113 = vmatprep.subr.bf16.mxu0 %v5204_v62  ;;  %6969 = vst [vmem:[#allocation20_spill] sm:$0xff] %v5368_v60 }
  0x8e   :  { %543 = vmatmul.mubr.bf16.gmra.mrb[16].mxu0 %v5206_v63  ;;  %656 = vmatmul.mubr.bf16.gmra.mrb[16].mxu1 %v5206_v63 }
  0x8f   :  { %552 = vmatprep.mubr.bf16.mxu0 %v6886_v0  ;;  %665 = vmatprep.mubr.bf16.mxu1 %v6886_v0 }
  0x90   :  { %1325 = vmatprep.subr.bf16.mxu1 %v5209_v1  ;;  %2450 = vperm.xlu0 %4349, %v2447_v32  }
  0x94   :  { %3585 = vperm.xlu0 %4349, %v3581_v36  }
  0x96   :  { %553 = vmatmul.mubr.bf16.gmra.mrb[20].mxu0 %v5218_v2  ;;  %666 = vmatmul.mubr.bf16.gmra.mrb[20].mxu1 %v5218_v2 }
  0x97   :  { %562 = vmatprep.mubr.bf16.mxu0 %v6886_v0  ;;  %675 = vmatprep.mubr.bf16.mxu1 %v6886_v0 }
  0x9e   :  { %563 = vmatmul.mubr.bf16.gmra.mrb[24].mxu0 %v5236_v5  ;;  %676 = vmatmul.mubr.bf16.gmra.mrb[24].mxu1 %v5236_v5 }
  0x9f   :  { %572 = vmatprep.mubr.bf16.mxu0 %v6886_v0  ;;  %685 = vmatprep.mubr.bf16.mxu1 %v6886_v0 }
  0xa6   :  { %573 = vmatmul.mubr.bf16.gmra.mrb[28].mxu0 %v5252_v12  ;;  %686 = vmatmul.mubr.bf16.gmra.mrb[28].mxu1 %v5252_v12 }
  0xa7   :  { %728 = vmatprep.mubr.bf16.mxu0 %v6886_v0  ;;  %3965 = vmatprep.mubr.msk.bf16.mxu1 %vm5049_vm8, %v6888_v37 }
  0xae   :  { %729 = vmatmul.mubr.bf16.vlgmr.msra.gmra.mrb[32].mxu0 %v5150_v34  ;;  %3966 = vmatmul.mubr.bf16.vlgmr.msra.gmra.mrb[32].mxu1 %v6886_v0  ;;  %v5315_v34 = vld [vmem:[#allocation8 + $0x48] ss:$12 sps:$4 sm:$0xff]  }
  0xaf   :  { %1326 = vmatpush1.bf16.msra.mxu1 %v5264_v16  ;;  %1114 = vmatpush1.bf16.msra.mxu0 %v5266_v17 }
  0xb0   :  { %1327 = vmatprep.subr.bf16.mxu1 %v5268_v18  ;;  %738 = vmatprep.mubr.bf16.mxu0 %v6886_v0 }
  0xb1   :  { %1115 = vmatprep.subr.bf16.mxu0 %v5271_v19  ;;  %1357 = vmatprep.mubr.bf16.mxu1 %v6886_v0 }
  0xb3   :  { %1328 = vmatpush1.bf16.msra.mxu1 %v5277_v20  ;;  %1116 = vmatpush1.bf16.msra.mxu0 %v5279_v21 }
  0xb4   :  { %1329 = vmatprep.subr.bf16.mxu1 %v5284_v23  ;;  %1117 = vmatprep.subr.bf16.mxu0 %v5286_v24 }
  0xb6   :  { %739 = vmatmul.mubr.bf16.gmra.mrb[36].mxu0 %v5162_v42  ;;  %v5327_v42 = vld [vmem:[#allocation8 + $0x60] ss:$12 sps:$4 sm:$0xff]  }
  0xb7   :  { %1330 = vmatpush1.bf16.msra.mxu1 %v5292_v25  ;;  %748 = vmatprep.mubr.bf16.mxu0 %v6886_v0 }
  0xb8   :  { %1331 = vmatprep.subr.bf16.mxu1 %v5297_v27  ;;  %1118 = vmatpush1.bf16.msra.mxu0 %v5300_v28 }
  0xb9   :  { %1119 = vmatprep.subr.bf16.mxu0 %v5303_v29 }
  0xbb   :  { %1332 = vmatpush1.bf16.msra.mxu1 %v5307_v31 }
  0xbc   :  { %1333 = vmatprep.subr.bf16.mxu1 %v5312_v33  ;;  %1120 = vmatpush1.bf16.msra.mxu0 %v5315_v34 }
  0xbd   :  { %1121 = vmatprep.subr.bf16.mxu0 %v5318_v35 }
  0xbe   :  { %749 = vmatmul.mubr.bf16.gmra.mrb[40].mxu0 %v5176_v49  ;;  %v5347_v49 = vld [vmem:[#allocation9 + $0x90] ss:$12 sps:$4 sm:$0xff]  }
  0xbf   :  { %1334 = vmatpush1.bf16.msra.mxu1 %v5321_v39  ;;  %758 = vmatprep.mubr.bf16.mxu0 %v6886_v0 }
  0xc0   :  { %1335 = vmatprep.subr.bf16.mxu1 %v5324_v40  ;;  %1122 = vmatpush1.bf16.msra.mxu0 %v5327_v42 }
  0xc1   :  { %1123 = vmatprep.subr.bf16.mxu0 %v5330_v43 }
  0xc3   :  { %1336 = vmatpush1.bf16.msra.mxu1 %v5334_v44 }
  0xc4   :  { %1337 = vmatprep.subr.bf16.mxu1 %v5338_v46  ;;  %1124 = vmatpush1.bf16.msra.mxu0 %v5341_v47 }
  0xc5   :  { %1125 = vmatprep.subr.bf16.mxu0 %v5344_v50 }
  0xc6   :  { %759 = vmatmul.mubr.bf16.gmra.mrb[44].mxu0 %v5190_v56  ;;  %v2128_v56 = vsel %vm2124_vm13, 1, %v6886_v0 }
  0xc7   :  { %1338 = vmatpush1.bf16.msra.mxu1 %v5347_v49  ;;  %768 = vmatprep.mubr.bf16.mxu0 %v6886_v0 }
  0xc8   :  { %1339 = vmatprep.subr.bf16.mxu1 %v5350_v51  ;;  %1126 = vmatpush1.bf16.msra.mxu0 %v5353_v53 }
  0xc9   :  { %1127 = vmatprep.subr.bf16.mxu0 %v5356_v54  ;;  %2133 = vperm.xlu1 %4350, %v2128_v56  }
  0xcb   :  { %1340 = vmatpush1.bf16.msra.mxu1 %v5362_v58 }
  0xcc   :  { %3969 = vmatprep.subr.bf16.mxu1 %v6888_v37  ;;  %1128 = vmatpush1.bf16.msra.mxu0 %v5368_v60 }
  0xcd   :  { %1544 = vmatprep.subr.bf16.mxu0 %v5204_v62  ;;  %v5393_v62 = vld [vmem:[#allocation9 + $0x50] ss:$12 sps:$4 sm:$0xff]  }
  0xce   :  { %769 = vmatmul.mubr.bf16.gmra.mrb[48].mxu0 %v5206_v63  ;;  %1358 = vmatmul.mubr.bf16.vlgmr.msra.gmra.mrb[36].mxu1 %v6886_v0  ;;  %v5398_v63 = vld [vmem:[#allocation9 + $0x68] ss:$12 sps:$4 sm:$0xff]  }
  0xcf   :  { %3970 = vmatpush3.bf16.msra.mxu1 %v5373_v3  ;;  %778 = vmatprep.mubr.bf16.mxu0 %v6886_v0 }
  0xd0   :  { %3971 = vmatprep.subr.bf16.mxu1 %v6888_v37  ;;  %3985 = vmatprep.mubr.msk.bf16.mxu1 %vm5049_vm8, %v6888_v37 }
  0xd3   :  { %3972 = vmatpush3.bf16.msra.mxu1 %v5381_v6 }
  0xd4   :  { %3973 = vmatprep.subr.bf16.mxu1 %v6888_v37 }
  0xd6   :  { %779 = vmatmul.mubr.bf16.gmra.mrb[52].mxu0 %v5218_v2  ;;  %v5408_v2 = vld [vmem:[#allocation9 + $0x98] ss:$12 sps:$4 sm:$0xff]  }
  0xd7   :  { %3974 = vmatpush3.bf16.msra.mxu1 %v5388_v7  ;;  %788 = vmatprep.mubr.bf16.mxu0 %v6886_v0 }
  0xd8   :  { %3975 = vmatprep.subr.bf16.mxu1 %v6888_v37 }
  0xdb   :  { %3976 = vmatpush3.bf16.msra.mxu1 %v5393_v62 }
  0xdc   :  { %3977 = vmatprep.subr.bf16.mxu1 %v6888_v37 }
  0xde   :  { %789 = vmatmul.mubr.bf16.gmra.mrb[56].mxu0 %v5236_v5 }
  0xdf   :  { %3978 = vmatpush3.bf16.msra.mxu1 %v5398_v63  ;;  %798 = vmatprep.mubr.bf16.mxu0 %v6886_v0 }
  0xe0   :  { %3979 = vmatprep.subr.bf16.mxu1 %v6888_v37 }
  0xe3   :  { %3980 = vmatpush3.bf16.msra.mxu1 %v5403_v8 }
  0xe4   :  { %3981 = vmatprep.subr.bf16.mxu1 %v6888_v37 }
  0xe6   :  { %799 = vmatmul.mubr.bf16.gmra.mrb[60].mxu0 %v5252_v12 }
  0xe7   :  { %3982 = vmatpush3.bf16.msra.mxu1 %v5408_v2  ;;  %1145 = vmatprep.mubr.bf16.mxu0 %v6886_v0 }
  0xe8   :  { %3983 = vmatprep.subr.bf16.mxu1 %v6888_v37 }
  0xeb   :  { %3984 = vmatpush3.bf16.msra.mxu1 %v5413_v9 }
  0xec   :  { %3989 = vmatprep.subr.bf16.mxu1 %v6888_v37 }
  0xee   :  { %3986 = vmatmul.mubr.bf16.vlgmr.msra.gmra.mrb[40].mxu1 %v6886_v0  ;;  %1146 = vmatmul.mubr.bf16.vlgmr.msra.gmra.mrb[0].mxu0 %v6886_v0 }
  0xef   :  { %1545 = vmatpush1.bf16.msra.mxu0 %v5266_v17  ;;  %3990 = vmatpush3.bf16.msra.mxu1 %v5153_v38  ;;  %v3576_v38 = vmax.f32 %v5232_v4, 1.0  ;;  %v5469_v4 = vld [vmem:[%s6880_s3] sm:$0x3f] }
  0xf0   :  { %1546 = vmatprep.subr.bf16.mxu0 %v5271_v19  ;;  %3991 = vmatprep.subr.bf16.mxu1 %v6888_v37 }
  0xf1   :  { %1576 = vmatprep.mubr.bf16.mxu0 %v6886_v0  ;;  %4005 = vmatprep.mubr.msk.bf16.mxu1 %vm5049_vm8, %v6888_v37  ;;  %4497 = vrcp.f32 %v3576_v38 }
  0xf3   :  { %1547 = vmatpush1.bf16.msra.mxu0 %v5279_v21  ;;  %3992 = vmatpush3.bf16.msra.mxu1 %v5160_v41  ;;  %v2140_v41 = vsel %vm2126_vm14, 1, %v6886_v0 }
  0xf4   :  { %1548 = vmatprep.subr.bf16.mxu0 %v5286_v24  ;;  %3993 = vmatprep.subr.bf16.mxu1 %v6888_v37 }
  0xf5   :  { %2145 = vperm.xlu1 %4350, %v2140_v41  }
  0xf7   :  { %1549 = vmatpush1.bf16.msra.mxu0 %v5300_v28  ;;  %3994 = vmatpush3.bf16.msra.mxu1 %v5166_v45  ;;  %v2436_v45 = vsel %vm2432_vm15, 1, %v6886_v0 }
  0xf8   :  { %1550 = vmatprep.subr.bf16.mxu0 %v5303_v29  ;;  %3995 = vmatprep.subr.bf16.mxu1 %v6888_v37 }
  0xf9   :  { %2441 = vperm.xlu1 %4350, %v2436_v45  }
  0xfb   :  { %1551 = vmatpush1.bf16.msra.mxu0 %v5315_v34  ;;  %3996 = vmatpush3.bf16.msra.mxu1 %v5174_v48  ;;  %v2448_v48 = vsel %vm2434_vm0, 1, %v6886_v0 }
  0xfc   :  { %1552 = vmatprep.subr.bf16.mxu0 %v5318_v35  ;;  %3997 = vmatprep.subr.bf16.mxu1 %v6888_v37 }
  0xfd   :  { %2453 = vperm.xlu1 %4350, %v2448_v48  }
  0xff   :  { %1553 = vmatpush1.bf16.msra.mxu0 %v5327_v42  ;;  %3998 = vmatpush3.bf16.msra.mxu1 %v5180_v52  ;;  %v4498_v52 = vpop.eup %4497 }
 0x100   :  { %1554 = vmatprep.subr.bf16.mxu0 %v5330_v43  ;;  %3999 = vmatprep.subr.bf16.mxu1 %v6888_v37 }
 0x103   :  { %1555 = vmatpush1.bf16.msra.mxu0 %v5341_v47  ;;  %4000 = vmatpush3.bf16.msra.mxu1 %v5188_v55  ;;  %v3582_v55 = vmul.f32 0.5, %v4498_v52 }
 0x104   :  { %1556 = vmatprep.subr.bf16.mxu0 %v5344_v50  ;;  %4001 = vmatprep.subr.bf16.mxu1 %v6888_v37 }
 0x105   :  { %3590 = vperm.xlu1 %4350, %v3582_v55  }
 0x107   :  { %1557 = vmatpush1.bf16.msra.mxu0 %v5353_v53  ;;  %4002 = vmatpush3.bf16.msra.mxu1 %v5194_v59  ;;  %v152_v59 = vlaneseq }
 0x108   :  { %1558 = vmatprep.subr.bf16.mxu0 %v5356_v54  ;;  %4003 = vmatprep.subr.bf16.mxu1 %v6888_v37 }
 0x109   :  { %v5463_v5 = vshrl.u32 %v152_v59, 7 }
 0x10b   :  { %1559 = vmatpush1.bf16.msra.mxu0 %v5368_v60  ;;  %4004 = vmatpush3.bf16.msra.mxu1 %v5202_v61  ;;  %v166_v10 = vsub.s32 3, %v5463_v5  ;;  %v162_v14 = vsub.s32 2, %v5463_v5 }
 0x10c   :  { %1629 = vmatprep.subr.bf16.mxu0 %v5209_v1  ;;  %4009 = vmatprep.subr.bf16.mxu1 %v6888_v37 }
 0x10d   :  { %v5472_v61 = vrot.slane %v5469_v4, %v166_v10  ;;  %v5486_v26 = vrot.slane %v5469_v4, %v162_v14 }
 0x141   :  { %v5474_v1 = vpop.f32.mrb[0].mxu1 }
 0x142   :  { %v619_v11 = vpop.f32.mrb[1].mxu1 }
 0x143   :  { %v5477_v12 = vadd.f32 %v619_v11, %v5472_v61  ;;  %v5479_v13 = vpop.f32.mrb[2].mxu1 }
 0x144   :  { %v623_v15 = vpop.f32.mrb[3].mxu1 }
 0x145   :  { %6970 = vst [vmem:[#allocation21_spill] sm:$0xff] %v5477_v12  ;;  %v5483_v22 = vadd.f32 %v623_v15, %v5472_v61 }
 0x147   :  { %6971 = vst [vmem:[#allocation22_spill] sm:$0xff] %v5483_v22 }
 0x149   :  { %v627_v30 = vpop.f32.mrb[4].mxu1 }
 0x14a   :  { %v5489_v32 = vadd.f32 %v627_v30, %v5486_v26  ;;  %v629_v36 = vpop.f32.mrb[5].mxu1 }
 0x14b   :  { %v5492_v57 = vadd.f32 %v629_v36, %v5472_v61  ;;  %v631_v56 = vpop.f32.mrb[6].mxu1 }
 0x14c   :  { %6972 = vst [vmem:[#allocation23_spill] sm:$0xff] %v5489_v32  ;;  %v5495_v38 = vadd.f32 %v631_v56, %v5486_v26  ;;  %v633_v41 = vpop.f32.mrb[7].mxu1 }
 0x14d   :  { %6973 = vst [vmem:[#allocation24_spill] sm:$0xff] %v5492_v57  ;;  %v5498_v45 = vadd.f32 %v633_v41, %v5472_v61 }
 0x14e   :  { %6974 = vst [vmem:[#allocation25_spill] sm:$0xff] %v5495_v38 }
 0x14f   :  { %6975 = vst [vmem:[#allocation26_spill] sm:$0xff] %v5498_v45 }
 0x151   :  { %v637_v48 = vpop.f32.mrb[8].mxu1 }
 0x152   :  { %v5501_v52 = vadd.f32 %v637_v48, %v5486_v26  ;;  %v639_v55 = vpop.f32.mrb[9].mxu1 }
 0x153   :  { %v5504_v59 = vadd.f32 %v639_v55, %v5472_v61  ;;  %v641_v10 = vpop.f32.mrb[10].mxu1 }
 0x154   :  { %6976 = vst [vmem:[#allocation27_spill] sm:$0xff] %v5501_v52  ;;  %v5507_v11 = vadd.f32 %v641_v10, %v5486_v26  ;;  %v643_v14 = vpop.f32.mrb[11].mxu1 }
 0x155   :  { %6977 = vst [vmem:[#allocation28_spill] sm:$0xff] %v5504_v59  ;;  %v5510_v15 = vadd.f32 %v643_v14, %v5472_v61 }
 0x156   :  { %6978 = vst [vmem:[#allocation29_spill] sm:$0xff] %v5507_v11 }
 0x157   :  { %6979 = vst [vmem:[#allocation30_spill] sm:$0xff] %v5510_v15 }
 0x159   :  { %v647_v30 = vpop.f32.mrb[12].mxu1 }
 0x15a   :  { %v5513_v36 = vadd.f32 %v647_v30, %v5486_v26  ;;  %v649_v56 = vpop.f32.mrb[13].mxu1 }
 0x15b   :  { %v5516_v41 = vadd.f32 %v649_v56, %v5472_v61  ;;  %v651_v48 = vpop.f32.mrb[14].mxu1 }
 0x15c   :  { %6980 = vst [vmem:[#allocation31_spill] sm:$0xff] %v5513_v36  ;;  %v5519_v55 = vadd.f32 %v651_v48, %v5486_v26  ;;  %v653_v0 = vpop.f32.mrb[15].mxu1 }
 0x15d   :  { %6981 = vst [vmem:[#allocation32_spill] sm:$0xff] %v5516_v41  ;;  %v5522_v10 = vadd.f32 %v653_v0, %v5472_v61 }
 0x15e   :  { %6982 = vst [vmem:[#allocation33_spill] sm:$0xff] %v5519_v55 }
 0x15f   :  { %6983 = vst [vmem:[#allocation34_spill] sm:$0xff] %v5522_v10 }
 0x161   :  { %v657_v37 = vpop.f32.mrb[16].mxu1 }
 0x162   :  { %v5525_v14 = vadd.f32 %v657_v37, %v5486_v26  ;;  %v659_v22 = vpop.f32.mrb[17].mxu1 }
 0x163   :  { %v5528_v30 = vadd.f32 %v659_v22, %v5472_v61  ;;  %v661_v12 = vpop.f32.mrb[18].mxu1 }
 0x164   :  { %6984 = vst [vmem:[#allocation35_spill] sm:$0xff] %v5525_v14  ;;  %v5531_v56 = vadd.f32 %v661_v12, %v5486_v26  ;;  %v663_v45 = vpop.f32.mrb[19].mxu1 }
 0x165   :  { %6985 = vst [vmem:[#allocation36_spill] sm:$0xff] %v5528_v30  ;;  %v5534_v48 = vadd.f32 %v663_v45, %v5472_v61 }
 0x166   :  { %6986 = vst [vmem:[#allocation37_spill] sm:$0xff] %v5531_v56 }
 0x167   :  { %6987 = vst [vmem:[#allocation38_spill] sm:$0xff] %v5534_v48 }
 0x169   :  { %v667_v57 = vpop.f32.mrb[20].mxu1 }
 0x16a   :  { %v5537_v0 = vadd.f32 %v667_v57, %v5486_v26  ;;  %v669_v15 = vpop.f32.mrb[21].mxu1 }
 0x16b   :  { %v5540_v37 = vadd.f32 %v669_v15, %v5472_v61  ;;  %v671_v59 = vpop.f32.mrb[22].mxu1 }
 0x16c   :  { %6988 = vst [vmem:[#allocation39_spill] sm:$0xff] %v5537_v0  ;;  %v5543_v22 = vadd.f32 %v671_v59, %v5486_v26  ;;  %v673_v10 = vpop.f32.mrb[23].mxu1 }
 0x16d   :  { %6989 = vst [vmem:[#allocation40_spill] sm:$0xff] %v5540_v37  ;;  %v5546_v12 = vadd.f32 %v673_v10, %v5472_v61  ;;  %v170_v10 = vsub.s32 4, %v5463_v5 }
 0x16e   :  { %6990 = vst [vmem:[#allocation41_spill] sm:$0xff] %v5543_v22 }
 0x16f   :  { %6991 = vst [vmem:[#allocation42_spill] sm:$0xff] %v5546_v12 }
 0x171   :  { %v677_v41 = vpop.f32.mrb[24].mxu1 }
 0x172   :  { %v5549_v45 = vadd.f32 %v677_v41, %v5486_v26  ;;  %v679_v56 = vpop.f32.mrb[25].mxu1 }
 0x173   :  { %v5552_v57 = vadd.f32 %v679_v56, %v5472_v61  ;;  %v681_v0 = vpop.f32.mrb[26].mxu1 }
 0x174   :  { %6992 = vst [vmem:[#allocation43_spill] sm:$0xff] %v5549_v45  ;;  %v5555_v15 = vadd.f32 %v681_v0, %v5486_v26  ;;  %v683_v14 = vpop.f32.mrb[27].mxu1  ;;  %v174_v45 = vsub.s32 5, %v5463_v5  ;;  %v5569_v0 = vrot.slane %v5469_v4, %v170_v10 }
 0x175   :  { %6993 = vst [vmem:[#allocation44_spill] sm:$0xff] %v5552_v57  ;;  %v5558_v59 = vadd.f32 %v683_v14, %v5472_v61 }
 0x176   :  { %6994 = vst [vmem:[#allocation45_spill] sm:$0xff] %v5555_v15  ;;  %v5572_v14 = vrot.slane %v5469_v4, %v174_v45 }
 0x177   :  { %6995 = vst [vmem:[#allocation46_spill] sm:$0xff] %v5558_v59 }
 0x179   :  { %v687_v22 = vpop.f32.mrb[28].mxu1 }
 0x17a   :  { %v5562_v48 = vadd.f32 %v687_v22, %v5486_v26  ;;  %v689_v41 = vpop.f32.mrb[29].mxu1 }
 0x17b   :  { %v691_v30 = vpop.f32.mrb[30].mxu1 }
 0x17c   :  { %6996 = vst [vmem:[#allocation47_spill] sm:$0xff] %v5562_v48  ;;  %v5566_v56 = vadd.f32 %v691_v30, %v5486_v26  ;;  %v693_v55 = vpop.f32.mrb[31].mxu1 }
 0x17e   :  { %6997 = vst [vmem:[#allocation48_spill] sm:$0xff] %v5566_v56 }
 0x181   :  { %v730_v15 = vpop.f32.mrb[32].mxu0  ;;  %v5574_v36 = vpop.f32.mrb[32].mxu1 }
 0x182   :  { %v5577_v22 = vadd.f32 %v730_v15, %v5569_v0  ;;  %v732_v48 = vpop.f32.mrb[33].mxu0  ;;  %v3967_v12 = vpop.f32.mrb[33].mxu1 }
 0x183   :  { %v5580_v37 = vadd.f32 %v732_v48, %v5572_v14  ;;  %v734_v30 = vpop.f32.mrb[34].mxu0  ;;  %v5582_v56 = vpop.f32.mrb[34].mxu1 }
 0x184   :  { %6998 = vst [vmem:[#allocation49_spill] sm:$0xff] %v5577_v22  ;;  %v5585_v10 = vadd.f32 %v734_v30, %v5569_v0  ;;  %v736_v11 = vpop.f32.mrb[35].mxu0  ;;  %v3968_v45 = vpop.f32.mrb[35].mxu1 }
 0x185   :  { %6999 = vst [vmem:[#allocation50_spill] sm:$0xff] %v5580_v37  ;;  %v5588_v52 = vadd.f32 %v736_v11, %v5572_v14 }
 0x186   :  { %7000 = vst [vmem:[#allocation51_spill] sm:$0xff] %v5585_v10 }
 0x187   :  { %7001 = vst [vmem:[#allocation52_spill] sm:$0xff] %v5588_v52 }
 0x189   :  { %v740_v59 = vpop.f32.mrb[36].mxu0 }
 0x18a   :  { %v5591_v15 = vadd.f32 %v740_v59, %v5569_v0  ;;  %v742_v22 = vpop.f32.mrb[37].mxu0 }
 0x18b   :  { %v5594_v12 = vadd.f32 %v742_v22, %v5572_v14  ;;  %v744_v48 = vpop.f32.mrb[38].mxu0 }
 0x18c   :  { %7002 = vst [vmem:[#allocation53_spill] sm:$0xff] %v5591_v15  ;;  %v5597_v37 = vadd.f32 %v744_v48, %v5569_v0  ;;  %v746_v57 = vpop.f32.mrb[39].mxu0 }
 0x18d   :  { %7003 = vst [vmem:[#allocation54_spill] sm:$0xff] %v5594_v12  ;;  %v5600_v30 = vadd.f32 %v746_v57, %v5572_v14 }
 0x18e   :  { %7004 = vst [vmem:[#allocation55_spill] sm:$0xff] %v5597_v37 }
 0x18f   :  { %7005 = vst [vmem:[#allocation56_spill] sm:$0xff] %v5600_v30 }
 0x191   :  { %v750_v45 = vpop.f32.mrb[40].mxu0 }
 0x192   :  { %v5603_v11 = vadd.f32 %v750_v45, %v5569_v0  ;;  %v752_v52 = vpop.f32.mrb[41].mxu0 }
 0x193   :  { %v5606_v59 = vadd.f32 %v752_v52, %v5572_v14  ;;  %v754_v10 = vpop.f32.mrb[42].mxu0 }
 0x194   :  { %7006 = vst [vmem:[#allocation57_spill] sm:$0xff] %v5603_v11  ;;  %v5609_v22 = vadd.f32 %v754_v10, %v5569_v0  ;;  %v756_v12 = vpop.f32.mrb[43].mxu0 }
 0x195   :  { %7007 = vst [vmem:[#allocation58_spill] sm:$0xff] %v5606_v59  ;;  %v5612_v48 = vadd.f32 %v756_v12, %v5572_v14  ;;  %v694_v12 = vadd.f32 %v693_v55, %v5472_v61 }
 0x196   :  { %7008 = vst [vmem:[#allocation59_spill] sm:$0xff] %v5609_v22  ;;  %v690_v22 = vadd.f32 %v689_v41, %v5472_v61 }
 0x197   :  { %7009 = vst [vmem:[#allocation60_spill] sm:$0xff] %v5612_v48 }
 0x199   :  { %v760_v37 = vpop.f32.mrb[44].mxu0 }
 0x19a   :  { %v5615_v57 = vadd.f32 %v760_v37, %v5569_v0  ;;  %v762_v30 = vpop.f32.mrb[45].mxu0 }
 0x19b   :  { %v5618_v45 = vadd.f32 %v762_v30, %v5572_v14  ;;  %v764_v15 = vpop.f32.mrb[46].mxu0 }
 0x19c   :  { %7010 = vst [vmem:[#allocation61_spill] sm:$0xff] %v5615_v57  ;;  %v5621_v52 = vadd.f32 %v764_v15, %v5569_v0  ;;  %v766_v59 = vpop.f32.mrb[47].mxu0 }
 0x19d   :  { %7011 = vst [vmem:[#allocation62_spill] sm:$0xff] %v5618_v45  ;;  %v5624_v10 = vadd.f32 %v766_v59, %v5572_v14 }
 0x19e   :  { %7012 = vst [vmem:[#allocation63_spill] sm:$0xff] %v5621_v52 }
 0x19f   :  { %7013 = vst [vmem:[#allocation64_spill] sm:$0xff] %v5624_v10 }
 0x1a1   :  { %v770_v48 = vpop.f32.mrb[48].mxu0  ;;  %v1359_v11 = vpop.f32.mrb[36].mxu1 }
 0x1a2   :  { %v5629_v37 = vadd.f32 %v770_v48, %v5569_v0  ;;  %v772_v57 = vpop.f32.mrb[49].mxu0  ;;  %v1469_v30 = vadd.f32 %v1359_v11, %v690_v22  ;;  %v1361_v45 = vpop.f32.mrb[37].mxu1 }
 0x1a3   :  { %v5632_v38 = vadd.f32 %v772_v57, %v5572_v14  ;;  %v774_v15 = vpop.f32.mrb[50].mxu0  ;;  %v1363_v52 = vpop.f32.mrb[38].mxu1 }
 0x1a4   :  { %7014 = vst [vmem:[#allocation65_spill] sm:$0xff] %v5629_v37  ;;  %v5635_v59 = vadd.f32 %v774_v15, %v5569_v0  ;;  %v776_v10 = vpop.f32.mrb[51].mxu0  ;;  %v3733_v41 = vmul.f32 -1.442695, %v1469_v30  ;;  %v1470_v32 = vadd.f32 %v1363_v52, %v694_v12  ;;  %v1365_v61 = vpop.f32.mrb[39].mxu1 }
 0x1a5   :  { %7015 = vst [vmem:[#allocation66_spill] sm:$0xff] %v5632_v38  ;;  %v5638_v55 = vadd.f32 %v776_v10, %v5572_v14 }
 0x1a6   :  { %7016 = vst [vmem:[#allocation67_spill] sm:$0xff] %v5635_v59  ;;  %4499 = vpow2.f32 %v3733_v41  ;;  %v3734_v48 = vmul.f32 -1.442695, %v1470_v32 }
 0x1a7   :  { %7017 = vst [vmem:[#allocation68_spill] sm:$0xff] %v5638_v55 }
 0x1a8   :  { %4501 = vpow2.f32 %v3734_v48 }
 0x1a9   :  { %v780_v11 = vpop.f32.mrb[52].mxu0 }
 0x1aa   :  { %v5641_v22 = vadd.f32 %v780_v11, %v5569_v0  ;;  %v782_v57 = vpop.f32.mrb[53].mxu0 }
 0x1ab   :  { %v5644_v38 = vadd.f32 %v782_v57, %v5572_v14  ;;  %v784_v15 = vpop.f32.mrb[54].mxu0 }
 0x1ac   :  { %7018 = vst [vmem:[#allocation69_spill] sm:$0xff] %v5641_v22  ;;  %v5647_v59 = vadd.f32 %v784_v15, %v5569_v0  ;;  %v786_v52 = vpop.f32.mrb[55].mxu0 }
 0x1ad   :  { %7019 = vst [vmem:[#allocation70_spill] sm:$0xff] %v5644_v38  ;;  %v5650_v12 = vadd.f32 %v786_v52, %v5572_v14 }
 0x1ae   :  { %7020 = vst [vmem:[#allocation71_spill] sm:$0xff] %v5647_v59 }
 0x1af   :  { %7021 = vst [vmem:[#allocation72_spill] sm:$0xff] %v5650_v12 }
 0x1b0   :  { %v4500_v10 = vpop.eup %4499 }
 0x1b1   :  { %v790_v30 = vpop.f32.mrb[56].mxu0  ;;  %v1477_v11 = vadd.f32 1.0, %v4500_v10  ;;  %v154_v10 = vsub.s32 0, %v5463_v5 }
 0x1b2   :  { %v4502_v32 = vpop.eup %4501  ;;  %v5653_v41 = vadd.f32 %v790_v30, %v5569_v0  ;;  %v792_v48 = vpop.f32.mrb[57].mxu0 }
 0x1b3   :  { %v5656_v55 = vadd.f32 %v792_v48, %v5572_v14  ;;  %v794_v57 = vpop.f32.mrb[58].mxu0  ;;  %v1478_v38 = vadd.f32 1.0, %v4502_v32  ;;  %4503 = vrcp.f32 %v1477_v11  ;;  %v5668_v32 = vrot.slane %v5469_v4, %v154_v10 }
 0x1b4   :  { %7022 = vst [vmem:[#allocation73_spill] sm:$0xff] %v5653_v41  ;;  %v5659_v37 = vadd.f32 %v794_v57, %v5569_v0  ;;  %v796_v15 = vpop.f32.mrb[59].mxu0 }
 0x1b5   :  { %7023 = vst [vmem:[#allocation74_spill] sm:$0xff] %v5656_v55  ;;  %v5662_v52 = vadd.f32 %v796_v15, %v5572_v14  ;;  %4505 = vrcp.f32 %v1478_v38  ;;  %7026 = vst [vmem:[#allocation77_spill] sm:$0xff] %v5668_v32  ;;  %v5673_v38 = vld [vmem:[%s6884_s7] ss:$0 sm:$0xff] }
 0x1b6   :  { %7024 = vst [vmem:[#allocation75_spill] sm:$0xff] %v5659_v37 }
 0x1b7   :  { %7025 = vst [vmem:[#allocation76_spill] sm:$0xff] %v5662_v52 }
 0x1b9   :  { %v800_v12 = vpop.f32.mrb[60].mxu0 }
 0x1ba   :  { %v801_v30 = vadd.f32 %v800_v12, %v5569_v0  ;;  %v802_v59 = vpop.f32.mrb[61].mxu0 }
 0x1bb   :  { %v804_v22 = vpop.f32.mrb[62].mxu0  ;;  %v803_v10 = vadd.f32 %v802_v59, %v5572_v14 }
 0x1bc   :  { %v1483_v48 = vadd.f32 %v1361_v45, %v801_v30  ;;  %v805_v55 = vadd.f32 %v804_v22, %v5569_v0  ;;  %v806_v41 = vpop.f32.mrb[63].mxu0  ;;  %v158_v45 = vsub.s32 1, %v5463_v5 }
 0x1bd   :  { %v4504_v11 = vpop.eup %4503 }
 0x1be   :  { %v3735_v57 = vmul.f32 -1.442695, %v1483_v48  ;;  %v1484_v37 = vadd.f32 %v1365_v61, %v805_v55 }
 0x1bf   :  { %v4506_v30 = vpop.eup %4505 }
 0x1c0   :  { %4507 = vpow2.f32 %v3735_v57  ;;  %v3736_v12 = vmul.f32 -1.442695, %v1484_v37 }
 0x1c1   :  { %v1402_v15 = vpop.f32.mrb[40].mxu1  ;;  %v1147_v52 = vpop.f32.mrb[0].mxu0 }
 0x1c2   :  { %4509 = vpow2.f32 %v3736_v12  ;;  %v1497_v0 = vadd.f32 %v5673_v38, %v1402_v15  ;;  %v4269_v61 = vadd.f32 %v1147_v52, %v5668_v32  ;;  %v3987_v55 = vpop.f32.mrb[41].mxu1  ;;  %v1149_v22 = vpop.f32.mrb[1].mxu0  ;;  %v807_v12 = vadd.f32 %v806_v41, %v5572_v14 }
 0x1c3   :  { %v1405_v48 = vpop.f32.mrb[42].mxu1  ;;  %v1151_v60 = vpop.f32.mrb[2].mxu0  ;;  %v5683_v15 = vrot.slane %v5469_v4, %v158_v45 }
 0x1c4   :  { %v1499_v54 = vmul.f32 %v4504_v11, %v1497_v0  ;;  %v3729_v57 = vmul.f32 -1.442695, %v4269_v61  ;;  %v1498_v37 = vadd.f32 %v5673_v38, %v1405_v48  ;;  %v4271_v53 = vadd.f32 %v1151_v60, %v5668_v32  ;;  %v1153_v50 = vpop.f32.mrb[3].mxu0  ;;  %v3988_v5 = vpop.f32.mrb[43].mxu1 }
 0x1c5   :  { %7027 = vst [vmem:[#allocation78_spill] sm:$0xff] %v5683_v15  ;;  %v4270_v0 = vadd.f32 %v1149_v22, %v5683_v15  ;;  %v4272_v14 = vadd.f32 %v1153_v50, %v5683_v15  ;;  %v5690_v50 = vld [vmem:[%s6883_s6] ss:$0 sm:$0xff] }
 0x1c6   :  { %v1501_v52 = vadd.f32 %v1499_v54, %v803_v10  ;;  %4511 = vpow2.f32 %v3729_v57  ;;  %v1500_v55 = vmul.f32 %v4506_v30, %v1498_v37  ;;  %v3730_v47 = vmul.f32 -1.442695, %v4271_v53 }
 0x1c7   :  { %v3731_v41 = vmul.f32 -1.442695, %v4270_v0  ;;  %v3732_v45 = vmul.f32 -1.442695, %v4272_v14 }
 0x1c8   :  { %4513 = vtanh.f32 %v1501_v52  ;;  %v1502_v59 = vadd.f32 %v1500_v55, %v807_v12 }
 0x1c9   :  { %4515 = vpow2.f32 %v3730_v47 }
 0x1ca   :  { %v4508_v11 = vpop.eup %4507  ;;  %4517 = vtanh.f32 %v1502_v59 }
 0x1cb   :  { %v1491_v61 = vadd.f32 1.0, %v4508_v11  ;;  %v1455_v11 = vadd.f32 %v5690_v50, %v5574_v36  ;;  %v622_v36 = vadd.f32 %v5479_v13, %v5486_v26 }
 0x1cc   :  { %v4510_v60 = vpop.eup %4509 }
 0x1cd   :  { %4519 = vrcp.f32 %v1491_v61  ;;  %v1492_v48 = vadd.f32 1.0, %v4510_v60  ;;  %v618_v60 = vadd.f32 %v5474_v1, %v5486_v26 }
 0x1cf   :  { %4521 = vrcp.f32 %v1492_v48 }
 0x1d0   :  { %v4512_v4 = vpop.eup %4511  ;;  %4523 = vpow2.f32 %v3731_v41 }
 0x1d1   :  { %v1435_v54 = vadd.f32 1.0, %v4512_v4  ;;  %v1456_v4 = vadd.f32 %v5690_v50, %v5582_v56 }
 0x1d2   :  { %v4514_v30 = vpop.eup %4513 }
 0x1d3   :  { %v4516_v53 = vpop.eup %4515  ;;  %4525 = vrcp.f32 %v1435_v54  ;;  %v1505_v22 = vsub.f32 0.0, %v4514_v30 }
 0x1d4   :  { %v1436_v47 = vadd.f32 1.0, %v4516_v53  ;;  %v4518_v10 = vpop.eup %4517  ;;  %4527 = vpow2.f32 %v3732_v45 }
 0x1d5   :  { %v1506_v5 = vsub.f32 0.0, %v4518_v10 }
 0x1d6   :  { %4529 = vrcp.f32 %v1436_v47 }
 0x1d7   :  { %v4520_v57 = vpop.eup %4519 }
 0x1d8   :  { %v1507_v37 = vmul.f32 %v4520_v57, %v1505_v22  ;;  %v5708_v22 = vpop.permute.xlu0 %1518 }
 0x1d9   :  { %v4522_v12 = vpop.eup %4521  ;;  %7028 = vst [vmem:[#allocation79_spill] sm:$0xff] %v5708_v22  ;;  %vm1523_vm1 = vcmp.eq.s32.totalorder %v5708_v22, 1  ;;  %v6050_v22 = vld [vmem:[#allocation8 + $0xac] ss:$12 sps:$4 sm:$0xff]  }
 0x1da   :  { %v5692_v52 = vadd.f32 %v4514_v30, %v1507_v37  ;;  %v1508_v55 = vmul.f32 %v4522_v12, %v1506_v5  ;;  %v4524_v59 = vpop.eup %4523  ;;  %7064 = vst [vmem:[#allocation87_spill] sm:$0xff] %v6050_v22 }
 0x1db   :  { %v1449_v45 = vadd.f32 1.0, %v4524_v59 }
 0x1dc   :  { %v5696_v0 = vadd.f32 %v4518_v10, %v1508_v55  ;;  %v5712_v13 = vpop.permute.xlu0 %1521 }
 0x1dd   :  { %v4526_v61 = vpop.eup %4525  ;;  %7029 = vst [vmem:[#allocation80_spill] sm:$0xff] %v5712_v13  ;;  %vm6947_vm2 = vcmp.eq.s32.totalorder %v5712_v13, 1  ;;  %v6046_v13 = vld [vmem:[#allocation8 + $0x90] ss:$12 sps:$4 sm:$0xff]  }
 0x1de   :  { %v1457_v48 = vmul.f32 %v4526_v61, %v1455_v11  ;;  %v5702_v14 = vpack.c.bf16 %v5696_v0, %v5692_v52  ;;  %v4528_v41 = vpop.eup %4527  ;;  %vm3737_vm3 = vmpackc.low %vm6947_vm2, %vm1523_vm1  ;;  %7063 = vst [vmem:[#allocation86_spill] sm:$0xff] %v6046_v13 }
 0x1df   :  { %v1450_v47 = vadd.f32 1.0, %v4528_v41 }
 0x1e0   :  { %v4530_v54 = vpop.eup %4529  ;;  %v1459_v30 = vadd.f32 %v1457_v48, %v618_v60  ;;  %v7030_v60 = vmov 0.0   ;;  %v7031_v48 = vmov 0  }
 0x1e1   :  { %v1458_v53 = vmul.f32 %v4530_v54, %v1456_v4 }
 0x1e2   :  { %4531 = vtanh.f32 %v1459_v30 }
 0x1e3   :  { %v1460_v10 = vadd.f32 %v1458_v53, %v622_v36  ;;  %4533 = vrcp.f32 %v1449_v45 }
 0x1e5   :  { %4535 = vtanh.f32 %v1460_v10 }
 0x1e6   :  { %4537 = vrcp.f32 %v1450_v47 }
 0x1ec   :  { %v4532_v1 = vpop.eup %4531 }
 0x1ed   :  { %v1463_v57 = vsub.f32 0.0, %v4532_v1  ;;  %v4534_v37 = vpop.eup %4533 }
 0x1ef   :  { %v4536_v5 = vpop.eup %4535  ;;  %v1465_v56 = vmul.f32 %v4534_v37, %v1463_v57 }
 0x1f0   :  { %v1464_v12 = vsub.f32 0.0, %v4536_v5  ;;  %v4538_v55 = vpop.eup %4537 }
 0x1f1   :  { %v5710_v59 = vadd.f32 %v4532_v1, %v1465_v56 }
 0x1f2   :  { %v1466_v11 = vmul.f32 %v4538_v55, %v1464_v12 }
 0x1f4   :  { %v5715_v26 = vadd.f32 %v4536_v5, %v1466_v11  ;;  %v7045_v5 = vld [vmem:[#allocation23_spill] sm:$0xff] }
 0x1f6   :  { %v3738_v61 = vpack.c.bf16 %v5715_v26, %v5710_v59 }
 0x1f8   :  { %3739 = vmatmul.mubr.msk.bf16.vlgmr.msra.gmra.mrb[4].mxu0 %vm3737_vm3, %v3738_v61  ;;  %4006 = vmatmul.mubr.msk.bf16.vlgmr.msra.gmra.mrb[44].mxu1 %vm3737_vm3, %v3738_v61 }
 0x1f9   :  { %1630 = vmatpush1.bf16.msra.mxu0 %v5264_v16  ;;  %4010 = vmatpush3.bf16.msra.mxu1 %v5373_v3  ;;  %v5747_v16 = vpop.permute.xlu1 %1530 }
 0x1fa   :  { %1631 = vmatprep.subr.bf16.mxu0 %v5268_v18  ;;  %4011 = vmatprep.subr.bf16.mxu1 %v7030_v60  ;;  %7032 = vst [vmem:[#allocation81_spill] sm:$0xff] %v5747_v16  ;;  %vm1535_vm4 = vcmp.eq.s32.totalorder %v5747_v16, 1 }
 0x1fb   :  { %1661 = vmatprep.mubr.bf16.mxu0 %v7031_v48  ;;  %4025 = vmatprep.mubr.msk.bf16.mxu1 %vm5049_vm8, %v7030_v60 }
 0x1fd   :  { %1632 = vmatpush1.bf16.msra.mxu0 %v5277_v20  ;;  %4012 = vmatpush3.bf16.msra.mxu1 %v5381_v6  ;;  %v5757_v18 = vpop.permute.xlu1 %1533  ;;  %v5763_v20 = vld [vmem:[#allocation8 + $0x4] ss:$12 sps:$4 sm:$0xff]  }
 0x1fe   :  { %1633 = vmatprep.subr.bf16.mxu0 %v5284_v23  ;;  %4013 = vmatprep.subr.bf16.mxu1 %v7030_v60  ;;  %7033 = vst [vmem:[#allocation82_spill] sm:$0xff] %v5757_v18  ;;  %vm1536_vm5 = vcmp.eq.s32.totalorder %v5757_v18, 1  ;;  %v5774_v23 = vld [vmem:[#allocation8 + $0x8] ss:$12 sps:$4 sm:$0xff]  }
 0x1ff   :  { %vm3743_vm6 = vmpackc.low %vm1536_vm5, %vm1535_vm4  ;;  %v6054_v18 = vld [vmem:[#allocation8 + $0xa8] ss:$12 sps:$4 sm:$0xff]  }
 0x200   :  { %7065 = vst [vmem:[#allocation88_spill] sm:$0xff] %v6054_v18 }
 0x201   :  { %1634 = vmatpush1.bf16.msra.mxu0 %v5292_v25  ;;  %4014 = vmatpush3.bf16.msra.mxu1 %v5388_v7  ;;  %v5783_v25 = vld [vmem:[#allocation8 + $0x20] ss:$12 sps:$4 sm:$0xff]  }
 0x202   :  { %1635 = vmatprep.subr.bf16.mxu0 %v5297_v27  ;;  %4015 = vmatprep.subr.bf16.mxu1 %v7030_v60  ;;  %v5807_v27 = vld [vmem:[#allocation8 + $0x80] ss:$12 sps:$4 sm:$0xff]  }
 0x205   :  { %1636 = vmatpush1.bf16.msra.mxu0 %v5307_v31  ;;  %4016 = vmatpush3.bf16.msra.mxu1 %v5393_v62  ;;  %v5813_v31 = vld [vmem:[#allocation8 + $0x98] ss:$12 sps:$4 sm:$0xff]  }
 0x206   :  { %1637 = vmatprep.subr.bf16.mxu0 %v5312_v33  ;;  %4017 = vmatprep.subr.bf16.mxu1 %v7030_v60  ;;  %v7041_v33 = vld [vmem:[#allocation19_spill] sm:$0xff] }
 0x209   :  { %1638 = vmatpush1.bf16.msra.mxu0 %v5321_v39  ;;  %4018 = vmatpush3.bf16.msra.mxu1 %v5398_v63  ;;  %v5822_v39 = vld [vmem:[#allocation9 + $0x4] ss:$12 sps:$4 sm:$0xff]  }
 0x20a   :  { %1639 = vmatprep.subr.bf16.mxu0 %v5324_v40  ;;  %4019 = vmatprep.subr.bf16.mxu1 %v7030_v60  ;;  %7044 = vst [vmem:[#allocation19_spill] sm:$0xff] %v5822_v39 }
 0x20d   :  { %1640 = vmatpush1.bf16.msra.mxu0 %v5334_v44  ;;  %4020 = vmatpush3.bf16.msra.mxu1 %v5403_v8 }
 0x20e   :  { %1641 = vmatprep.subr.bf16.mxu0 %v5338_v46  ;;  %4021 = vmatprep.subr.bf16.mxu1 %v7030_v60 }
 0x211   :  { %1642 = vmatpush1.bf16.msra.mxu0 %v5347_v49  ;;  %4022 = vmatpush3.bf16.msra.mxu1 %v5408_v2 }
 0x212   :  { %1643 = vmatprep.subr.bf16.mxu0 %v5350_v51  ;;  %4023 = vmatprep.subr.bf16.mxu1 %v7030_v60 }
 0x215   :  { %1644 = vmatpush1.bf16.msra.mxu0 %v5362_v58  ;;  %4024 = vmatpush3.bf16.msra.mxu1 %v5413_v9 }
 0x216   :  { %1852 = vmatprep.subr.bf16.mxu0 %v5763_v20  ;;  %4029 = vmatprep.subr.bf16.mxu1 %v7030_v60 }
 0x218   :  { %3745 = vmatmul.mubr.msk.bf16.vlgmr.msra.gmra.mrb[64].mxu0 %vm3743_vm6, %v5702_v14  ;;  %4026 = vmatmul.mubr.msk.bf16.vlgmr.msra.gmra.mrb[48].mxu1 %vm3743_vm6, %v5702_v14 }
 0x219   :  { %1853 = vmatpush1.bf16.msra.mxu0 %v5266_v17  ;;  %4030 = vmatpush3.bf16.msra.mxu1 %v5774_v23  ;;  %v5789_v17 = vld [vmem:[#allocation8 + $0x38] ss:$12 sps:$4 sm:$0xff]  }
 0x21a   :  { %1854 = vmatprep.subr.bf16.mxu0 %v5271_v19  ;;  %4031 = vmatprep.subr.bf16.mxu1 %v7030_v60  ;;  %v5795_v19 = vld [vmem:[#allocation8 + $0x50] ss:$12 sps:$4 sm:$0xff]  }
 0x21b   :  { %1884 = vmatprep.mubr.bf16.mxu0 %v7031_v48  ;;  %4045 = vmatprep.mubr.msk.bf16.mxu1 %vm5049_vm8, %v7030_v60  ;;  %7034 = vst [vmem:[#allocation83_spill] sm:$0xff] %v5795_v19 }
 0x21d   :  { %1855 = vmatpush1.bf16.msra.mxu0 %v5279_v21  ;;  %4032 = vmatpush3.bf16.msra.mxu1 %v5783_v25  ;;  %v5801_v21 = vld [vmem:[#allocation8 + $0x68] ss:$12 sps:$4 sm:$0xff]  }
 0x21e   :  { %1856 = vmatprep.subr.bf16.mxu0 %v5286_v24  ;;  %4033 = vmatprep.subr.bf16.mxu1 %v7030_v60  ;;  %7035 = vst [vmem:[#allocation84_spill] sm:$0xff] %v5801_v21  ;;  %v7036_v24 = vld [vmem:[#allocation16_spill] sm:$0xff] }
 0x21f   :  { %7037 = vst [vmem:[#allocation16_spill] sm:$0xff] %v5807_v27 }
 0x221   :  { %1857 = vmatpush1.bf16.msra.mxu0 %v5300_v28  ;;  %4034 = vmatpush3.bf16.msra.mxu1 %v5789_v17  ;;  %v7038_v28 = vld [vmem:[#allocation17_spill] sm:$0xff] }
 0x222   :  { %1858 = vmatprep.subr.bf16.mxu0 %v5303_v29  ;;  %4035 = vmatprep.subr.bf16.mxu1 %v7030_v60  ;;  %v7039_v29 = vld [vmem:[#allocation18_spill] sm:$0xff]  ;;  %7040 = vst [vmem:[#allocation17_spill] sm:$0xff] %v5813_v31 }
 0x225   :  { %1859 = vmatpush1.bf16.msra.mxu0 %v5315_v34  ;;  %4036 = vmatpush3.bf16.msra.mxu1 %v5795_v19  ;;  %v7042_v34 = vld [vmem:[#allocation20_spill] sm:$0xff] }
 0x226   :  { %1860 = vmatprep.subr.bf16.mxu0 %v5318_v35  ;;  %4037 = vmatprep.subr.bf16.mxu1 %v7030_v60  ;;  %v5819_v35 = vld [vmem:[#allocation8 + $0xb0] ss:$12 sps:$4 sm:$0xff]  }
 0x227   :  { %7043 = vst [vmem:[#allocation18_spill] sm:$0xff] %v5819_v35 }
 0x229   :  { %1861 = vmatpush1.bf16.msra.mxu0 %v5327_v42  ;;  %4038 = vmatpush3.bf16.msra.mxu1 %v5801_v21 }
 0x22a   :  { %1862 = vmatprep.subr.bf16.mxu0 %v5330_v43  ;;  %4039 = vmatprep.subr.bf16.mxu1 %v7030_v60 }
 0x22d   :  { %1863 = vmatpush1.bf16.msra.mxu0 %v7036_v24  ;;  %4040 = vmatpush3.bf16.msra.mxu1 %v5807_v27  ;;  %v7046_v24 = vld [vmem:[#allocation25_spill] sm:$0xff] }
 0x22e   :  { %1864 = vmatprep.subr.bf16.mxu0 %v7038_v28  ;;  %4041 = vmatprep.subr.bf16.mxu1 %v7030_v60 }
 0x231   :  { %1865 = vmatpush1.bf16.msra.mxu0 %v7039_v29  ;;  %4042 = vmatpush3.bf16.msra.mxu1 %v5813_v31  ;;  %v7047_v29 = vld [vmem:[#allocation44_spill] sm:$0xff] }
 0x232   :  { %1866 = vmatprep.subr.bf16.mxu0 %v7041_v33  ;;  %4043 = vmatprep.subr.bf16.mxu1 %v7030_v60 }
 0x235   :  { %1867 = vmatpush1.bf16.msra.mxu0 %v7042_v34  ;;  %4044 = vmatpush3.bf16.msra.mxu1 %v5819_v35 }
 0x236   :  { %1937 = vmatprep.subr.bf16.mxu0 %v5822_v39  ;;  %4049 = vmatprep.subr.bf16.mxu1 %v7030_v60 }
 0x2cb   :  { %v1578_v40 = vpop.f32.mrb[4].mxu0  ;;  %v1621_v42 = vpop.f32.mrb[44].mxu1 }
 0x2cc   :  { %v4273_v43 = vadd.f32 %v1578_v40, %v5668_v32  ;;  %v1580_v44 = vpop.f32.mrb[5].mxu0  ;;  %v4007_v46 = vpop.f32.mrb[45].mxu1  ;;  %v1759_v36 = vadd.f32 %v5690_v50, %v1621_v42  ;;  %v7048_v42 = vld [vmem:[#allocation73_spill] sm:$0xff] }
 0x2cd   :  { %v1582_v49 = vpop.f32.mrb[6].mxu0  ;;  %v1624_v51 = vpop.f32.mrb[46].mxu1  ;;  %v4274_v8 = vadd.f32 %v1580_v44, %v5683_v15 }
 0x2ce   :  { %v3749_v58 = vmul.f32 -1.442695, %v4273_v43  ;;  %v4275_v6 = vadd.f32 %v1582_v49, %v5668_v32  ;;  %v1584_v7 = vpop.f32.mrb[7].mxu0  ;;  %v4008_v62 = vpop.f32.mrb[47].mxu1  ;;  %v1760_v1 = vadd.f32 %v5690_v50, %v1624_v51  ;;  %v7049_v51 = vld [vmem:[#allocation46_spill] sm:$0xff] }
 0x2cf   :  { %v4276_v2 = vadd.f32 %v1584_v7, %v5683_v15  ;;  %v3751_v9 = vmul.f32 -1.442695, %v4274_v8  ;;  %v7050_v62 = vld [vmem:[#allocation75_spill] sm:$0xff] }
 0x2d0   :  { %4539 = vpow2.f32 %v3749_v58  ;;  %v3750_v63 = vmul.f32 -1.442695, %v4275_v6 }
 0x2d1   :  { %v3752_v41 = vmul.f32 -1.442695, %v4276_v2 }
 0x2d2   :  { %4541 = vpow2.f32 %v3750_v63 }
 0x2d3   :  { %4543 = vpow2.f32 %v3751_v9  ;;  %v5841_v9 = vsel %vm1523_vm1, %v5710_v59, 0.0 }
 0x2da   :  { %v4540_v14 = vpop.eup %4539 }
 0x2db   :  { %v1739_v4 = vadd.f32 1.0, %v4540_v14 }
 0x2dc   :  { %v4542_v54 = vpop.eup %4541 }
 0x2dd   :  { %4545 = vrcp.f32 %v1739_v4  ;;  %v1740_v45 = vadd.f32 1.0, %v4542_v54  ;;  %v4544_v30 = vpop.eup %4543  ;;  %v5847_v54 = vsel %vm6947_vm2, %v5715_v26, 0.0 }
 0x2de   :  { %4547 = vpow2.f32 %v3752_v41  ;;  %v1753_v37 = vadd.f32 1.0, %v4544_v30 }
 0x2df   :  { %4549 = vrcp.f32 %v1740_v45 }
 0x2e7   :  { %v4546_v53 = vpop.eup %4545 }
 0x2e8   :  { %v4548_v47 = vpop.eup %4547  ;;  %v1761_v10 = vmul.f32 %v4546_v53, %v1759_v36 }
 0x2e9   :  { %v4550_v57 = vpop.eup %4549  ;;  %v1754_v55 = vadd.f32 1.0, %v4548_v47 }
 0x2ea   :  { %v1763_v56 = vadd.f32 %v1761_v10, %v7045_v5  ;;  %v1762_v12 = vmul.f32 %v4550_v57, %v1760_v1  ;;  %v5852_v5 = vpop.permute.xlu0 %1822 }
 0x2eb   :  { %v1663_v11 = vpop.f32.mrb[64].mxu0  ;;  %v1706_v61 = vpop.f32.mrb[48].mxu1  ;;  %7051 = vst [vmem:[#allocation20_spill] sm:$0xff] %v5852_v5  ;;  %vm1827_vm7 = vcmp.eq.s32.totalorder %v5852_v5, 1 }
 0x2ec   :  { %4551 = vtanh.f32 %v1763_v56  ;;  %v1764_v28 = vadd.f32 %v1762_v12, %v7046_v24  ;;  %v1773_v33 = vadd.f32 %v1663_v11, %v7047_v29  ;;  %v1665_v34 = vpop.f32.mrb[65].mxu0  ;;  %v4027_v40 = vpop.f32.mrb[49].mxu1  ;;  %v5878_v29 = vld [vmem:[#allocation9 + $0x1c] ss:$12 sps:$4 sm:$0xff]  }
 0x2ed   :  { %4553 = vrcp.f32 %v1753_v37  ;;  %v1787_v43 = vadd.f32 %v1665_v34, %v7048_v42  ;;  %v1667_v44 = vpop.f32.mrb[66].mxu0  ;;  %v1709_v46 = vpop.f32.mrb[50].mxu1  ;;  %v1801_v34 = vadd.f32 %v5673_v38, %v1706_v61  ;;  %v5886_v42 = vld [vmem:[#allocation9 + $0x18] ss:$12 sps:$4 sm:$0xff]  }
 0x2ee   :  { %4555 = vtanh.f32 %v1764_v28  ;;  %v3753_v49 = vmul.f32 -1.442695, %v1773_v33  ;;  %v1774_v58 = vadd.f32 %v1667_v44, %v7049_v51  ;;  %v1669_v6 = vpop.f32.mrb[67].mxu0  ;;  %v4028_v7 = vpop.f32.mrb[51].mxu1  ;;  %v5874_v28 = vld [vmem:[#allocation9] ss:$12 sps:$4 sm:$0xff]  }
 0x2ef   :  { %4557 = vrcp.f32 %v1754_v55  ;;  %v1788_v63 = vadd.f32 %v1669_v6, %v7050_v62  ;;  %v3755_v45 = vmul.f32 -1.442695, %v1787_v43  ;;  %v5854_v56 = vpop.permute.xlu1 %1825  ;;  %v5893_v51 = vld [vmem:[#allocation9 + $0x34] ss:$12 sps:$4 sm:$0xff]  }
 0x2f0   :  { %4559 = vpow2.f32 %v3753_v49  ;;  %v3754_v8 = vmul.f32 -1.442695, %v1774_v58  ;;  %7052 = vst [vmem:[#allocation23_spill] sm:$0xff] %v5854_v56  ;;  %vm1828_vm9 = vcmp.eq.s32.totalorder %v5854_v56, 1  ;;  %v1802_v49 = vadd.f32 %v5673_v38, %v1709_v46  ;;  %v7053_v6 = vld [vmem:[#allocation74_spill] sm:$0xff]  ;;  %v7054_v46 = vld [vmem:[#allocation76_spill] sm:$0xff] }
 0x2f1   :  { %v3756_v10 = vmul.f32 -1.442695, %v1788_v63  ;;  %v5898_v63 = vld [vmem:[#allocation9 + $0x30] ss:$12 sps:$4 sm:$0xff]  }
 0x2f2   :  { %4561 = vpow2.f32 %v3754_v8  ;;  %v5901_v8 = vld [vmem:[#allocation9 + $0x38] ss:$12 sps:$4 sm:$0xff]  }
 0x2f3   :  { %4563 = vpow2.f32 %v3755_v45  ;;  %v5912_v45 = vld [vmem:[#allocation9 + $0x50] ss:$12 sps:$4 sm:$0xff]  }
 0x2f6   :  { %v4552_v2 = vpop.eup %4551 }
 0x2f7   :  { %v4554_v14 = vpop.eup %4553  ;;  %v1767_v41 = vsub.f32 %v5841_v9, %v4552_v2 }
 0x2f8   :  { %v4556_v4 = vpop.eup %4555 }
 0x2f9   :  { %v4558_v30 = vpop.eup %4557  ;;  %v1769_v36 = vmul.f32 %v4554_v14, %v1767_v41  ;;  %v1768_v53 = vsub.f32 %v5847_v54, %v4556_v4  ;;  %v5905_v41 = vld [vmem:[#allocation9 + $0x4c] ss:$12 sps:$4 sm:$0xff]  }
 0x2fa   :  { %v4560_v47 = vpop.eup %4559 }
 0x2fb   :  { %v1770_v1 = vmul.f32 %v4558_v30, %v1768_v53  ;;  %v1781_v57 = vadd.f32 1.0, %v4560_v47  ;;  %v5850_v59 = vadd.f32 %v4552_v2, %v1769_v36  ;;  %v5915_v30 = vld [vmem:[#allocation9 + $0x64] ss:$12 sps:$4 sm:$0xff]   ;;  %v5919_v36 = vld [vmem:[#allocation9 + $0x60] ss:$12 sps:$4 sm:$0xff]  }
 0x2fc   :  { %v4562_v37 = vpop.eup %4561  ;;  %v5922_v53 = vld [vmem:[#allocation9 + $0x68] ss:$12 sps:$4 sm:$0xff]  }
 0x2fd   :  { %4565 = vrcp.f32 %v1781_v57  ;;  %v1782_v26 = vadd.f32 1.0, %v4562_v37  ;;  %v5856_v12 = vadd.f32 %v4556_v4, %v1770_v1  ;;  %v5864_v55 = vsel %vm1827_vm7, %v5850_v59, %v5841_v9  ;;  %v4564_v33 = vpop.eup %4563  ;;  %v5909_v4 = vld [vmem:[#allocation9 + $0x48] ss:$12 sps:$4 sm:$0xff]  }
 0x2fe   :  { %4567 = vpow2.f32 %v3756_v10  ;;  %v1795_v58 = vadd.f32 1.0, %v4564_v33  ;;  %v5925_v47 = vld [vmem:[#allocation9 + $0x7c] ss:$12 sps:$4 sm:$0xff]   ;;  %v1537_v1 = vsel %vm1535_vm4, %v5692_v52, 0.0 }
 0x2ff   :  { %4569 = vrcp.f32 %v1782_v26  ;;  %v5870_v11 = vsel %vm1828_vm9, %v5856_v12, %v5847_v54  ;;  %v5932_v26 = vld [vmem:[#allocation9 + $0x78] ss:$12 sps:$4 sm:$0xff]  }
 0x300   :  { %v1851_v24 = vpack.c.bf16 %v5870_v11, %v5864_v55 }
 0x302   :  { %1885 = vmatmul.mubr.bf16.vlgmr.msra.gmra.mrb[8].mxu0 %v1851_v24  ;;  %4046 = vmatmul.mubr.bf16.vlgmr.msra.gmra.mrb[52].mxu1 %v1851_v24  ;;  %v5935_v24 = vld [vmem:[#allocation9 + $0x80] ss:$12 sps:$4 sm:$0xff]  }
 0x303   :  { %1938 = vmatpush1.bf16.msra.mxu0 %v5874_v28  ;;  %4050 = vmatpush3.bf16.msra.mxu1 %v5373_v3  ;;  %v5889_v3 = vld [vmem:[#allocation9 + $0x20] ss:$12 sps:$4 sm:$0xff]  }
 0x304   :  { %1939 = vmatprep.subr.bf16.mxu0 %v5878_v29  ;;  %4051 = vmatprep.subr.bf16.mxu1 %v7030_v60 }
 0x305   :  { %1969 = vmatprep.mubr.bf16.mxu0 %v7031_v48  ;;  %4065 = vmatprep.mubr.msk.bf16.mxu1 %vm5049_vm8, %v7030_v60 }
 0x307   :  { %v4566_v40 = vpop.eup %4565  ;;  %1940 = vmatpush1.bf16.msra.mxu0 %v5886_v42  ;;  %4052 = vmatpush3.bf16.msra.mxu1 %v5889_v3 }
 0x308   :  { %v4568_v43 = vpop.eup %4567  ;;  %v1803_v44 = vmul.f32 %v4566_v40, %v1801_v34  ;;  %1941 = vmatprep.subr.bf16.mxu0 %v5893_v51  ;;  %4053 = vmatprep.subr.bf16.mxu1 %v7030_v60  ;;  %v1538_v34 = vsel %vm1536_vm5, %v5696_v0, 0.0  ;;  %v5941_v40 = vld [vmem:[#allocation9 + $0x94] ss:$12 sps:$4 sm:$0xff]   ;;  %v1844_v0 = vsel %vm1828_vm9, %v5856_v12, 0.0  ;;  %v5966_v12 = vpop.permute.xlu1 %1837 }
 0x309   :  { %v4570_v61 = vpop.eup %4569  ;;  %v1796_v14 = vadd.f32 1.0, %v4568_v43  ;;  %7056 = vst [vmem:[#allocation44_spill] sm:$0xff] %v5966_v12  ;;  %vm1840_vm11 = vcmp.eq.s32.totalorder %v5966_v12, 1 }
 0x30a   :  { %v1805_v7 = vadd.f32 %v1803_v44, %v7053_v6  ;;  %v1804_v62 = vmul.f32 %v4570_v61, %v1802_v49  ;;  %v1843_v44 = vsel %vm1827_vm7, %v5850_v59, 0.0  ;;  %v1541_v61 = vadd.f32 %v1537_v1, %v5841_v9 }
 0x30b   :  { %1942 = vmatpush1.bf16.msra.mxu0 %v5898_v63  ;;  %4054 = vmatpush3.bf16.msra.mxu1 %v5901_v8  ;;  %v1542_v59 = vadd.f32 %v1538_v34, %v5847_v54  ;;  %v5973_v54 = vld [vmem:[#allocation9 + $0xa8] ss:$12 sps:$4 sm:$0xff]  }
 0x30c   :  { %4571 = vtanh.f32 %v1805_v7  ;;  %v1806_v2 = vadd.f32 %v1804_v62, %v7054_v46  ;;  %1943 = vmatprep.subr.bf16.mxu0 %v5905_v41  ;;  %4055 = vmatprep.subr.bf16.mxu1 %v7030_v60  ;;  %v5954_v7 = vld [vmem:[#allocation9 + $0x90] ss:$12 sps:$4 sm:$0xff]   ;;  %v5957_v62 = vld [vmem:[#allocation9 + $0x98] ss:$12 sps:$4 sm:$0xff]   ;;  %v1845_v9 = vadd.f32 %v1843_v44, %v1541_v61 }
 0x30d   :  { %4573 = vrcp.f32 %v1795_v58  ;;  %v5949_v58 = vpop.permute.xlu0 %1834 }
 0x30e   :  { %4575 = vtanh.f32 %v1806_v2  ;;  %7055 = vst [vmem:[#allocation25_spill] sm:$0xff] %v5949_v58  ;;  %vm1839_vm10 = vcmp.eq.s32.totalorder %v5949_v58, 1  ;;  %v5962_v2 = vld [vmem:[#allocation9 + $0xac] ss:$12 sps:$4 sm:$0xff]  }
 0x30f   :  { %1944 = vmatpush1.bf16.msra.mxu0 %v5909_v4  ;;  %4056 = vmatpush3.bf16.msra.mxu1 %v5912_v45  ;;  %4577 = vrcp.f32 %v1796_v14 }
 0x310   :  { %1945 = vmatprep.subr.bf16.mxu0 %v5915_v30  ;;  %4057 = vmatprep.subr.bf16.mxu1 %v7030_v60 }
 0x313   :  { %1946 = vmatpush1.bf16.msra.mxu0 %v5919_v36  ;;  %4058 = vmatpush3.bf16.msra.mxu1 %v5922_v53 }
 0x314   :  { %1947 = vmatprep.subr.bf16.mxu0 %v5925_v47  ;;  %4059 = vmatprep.subr.bf16.mxu1 %v7030_v60 }
 0x316   :  { %v4572_v10 = vpop.eup %4571 }
 0x317   :  { %v4574_v57 = vpop.eup %4573  ;;  %v1809_v37 = vsub.f32 %v1537_v1, %v4572_v10  ;;  %1948 = vmatpush1.bf16.msra.mxu0 %v5932_v26  ;;  %4060 = vmatpush3.bf16.msra.mxu1 %v5935_v24 }
 0x318   :  { %v4576_v33 = vpop.eup %4575  ;;  %1949 = vmatprep.subr.bf16.mxu0 %v5941_v40  ;;  %4061 = vmatprep.subr.bf16.mxu1 %v7030_v60 }
 0x319   :  { %v1811_v52 = vmul.f32 %v4574_v57, %v1809_v37  ;;  %v1810_v43 = vsub.f32 %v1538_v34, %v4576_v33  ;;  %v4578_v49 = vpop.eup %4577 }
 0x31b   :  { %v1812_v6 = vmul.f32 %v4578_v49, %v1810_v43  ;;  %1950 = vmatpush1.bf16.msra.mxu0 %v5954_v7  ;;  %4062 = vmatpush3.bf16.msra.mxu1 %v5957_v62  ;;  %v1813_v46 = vadd.f32 %v4572_v10, %v1811_v52  ;;  %v1846_v10 = vadd.f32 %v1844_v0, %v1542_v59  ;;  %v5976_v52 = vld [vmem:[#allocation9 + $0xb0] ss:$12 sps:$4 sm:$0xff]   ;;  %v6010_v0 = vld [vmem:[#allocation8 + $0x34] ss:$12 sps:$4 sm:$0xff]   ;;  %v6018_v59 = vld [vmem:[#allocation8 + $0x4c] ss:$12 sps:$4 sm:$0xff]  }
 0x31c   :  { %1951 = vmatprep.subr.bf16.mxu0 %v5962_v2  ;;  %4063 = vmatprep.subr.bf16.mxu1 %v7030_v60 }
 0x31d   :  { %v1814_v14 = vadd.f32 %v4576_v33, %v1812_v6  ;;  %v1847_v57 = vsel %vm1839_vm10, %v1813_v46, 0.0  ;;  %v5981_v43 = vsel %vm1839_vm10, %v1813_v46, %v1537_v1  ;;  %v5995_v1 = vld [vmem:[#allocation8] ss:$12 sps:$4 sm:$0xff]   ;;  %v6006_v6 = vld [vmem:[#allocation8 + $0x18] ss:$12 sps:$4 sm:$0xff]  }
 0x31e   :  { %v5971_v37 = vadd.f32 %v1847_v57, %v1845_v9  ;;  %v6014_v46 = vld [vmem:[#allocation8 + $0x30] ss:$12 sps:$4 sm:$0xff]   ;;  %v6022_v9 = vld [vmem:[#allocation8 + $0x48] ss:$12 sps:$4 sm:$0xff]   ;;  %v6030_v57 = vld [vmem:[#allocation8 + $0x60] ss:$12 sps:$4 sm:$0xff]  }
 0x31f   :  { %1952 = vmatpush1.bf16.msra.mxu0 %v5973_v54  ;;  %4064 = vmatpush3.bf16.msra.mxu1 %v5976_v52  ;;  %v5985_v33 = vsel %vm1840_vm11, %v1814_v14, %v1538_v34  ;;  %v1848_v44 = vsel %vm1840_vm11, %v1814_v14, 0.0  ;;  %v5999_v34 = vld [vmem:[#allocation8 + $0x1c] ss:$12 sps:$4 sm:$0xff]   ;;  %7057 = vst [vmem:[#allocation73_spill] sm:$0xff] %v6022_v9  ;;  %v6026_v14 = vld [vmem:[#allocation8 + $0x64] ss:$12 sps:$4 sm:$0xff]  }
 0x320   :  { %v5989_v49 = vadd.f32 %v1848_v44, %v1846_v10  ;;  %v1936_v61 = vpack.c.bf16 %v5985_v33, %v5981_v43  ;;  %2160 = vmatprep.subr.bf16.mxu0 %v5763_v20  ;;  %4069 = vmatprep.subr.bf16.mxu1 %v7030_v60  ;;  %7058 = vst [vmem:[#allocation46_spill] sm:$0xff] %v6026_v14  ;;  %7059 = vst [vmem:[#allocation75_spill] sm:$0xff] %v6030_v57  ;;  %v6034_v10 = vld [vmem:[#allocation8 + $0x7c] ss:$12 sps:$4 sm:$0xff]   ;;  %v6038_v44 = vld [vmem:[#allocation8 + $0x78] ss:$12 sps:$4 sm:$0xff]  }
 0x321   :  { %7060 = vst [vmem:[#allocation74_spill] sm:$0xff] %v6034_v10  ;;  %7061 = vst [vmem:[#allocation76_spill] sm:$0xff] %v6038_v44 }
 0x322   :  { %1970 = vmatmul.mubr.bf16.vlgmr.msra.gmra.mrb[68].mxu0 %v1936_v61  ;;  %4066 = vmatmul.mubr.bf16.vlgmr.msra.gmra.mrb[56].mxu1 %v1936_v61  ;;  %v6042_v61 = vld [vmem:[#allocation8 + $0x94] ss:$12 sps:$4 sm:$0xff]  }
 0x323   :  { %2161 = vmatpush1.bf16.msra.mxu0 %v5995_v1  ;;  %4070 = vmatpush3.bf16.msra.mxu1 %v5774_v23  ;;  %7062 = vst [vmem:[#allocation85_spill] sm:$0xff] %v6042_v61 }
 0x324   :  { %2162 = vmatprep.subr.bf16.mxu0 %v5999_v34  ;;  %4071 = vmatprep.subr.bf16.mxu1 %v7030_v60 }
 0x325   :  { %2192 = vmatprep.mubr.bf16.mxu0 %v7031_v48  ;;  %4085 = vmatprep.mubr.msk.bf16.mxu1 %vm5049_vm8, %v7030_v60 }
 0x327   :  { %2163 = vmatpush1.bf16.msra.mxu0 %v6006_v6  ;;  %4072 = vmatpush3.bf16.msra.mxu1 %v5783_v25 }
 0x328   :  { %2164 = vmatprep.subr.bf16.mxu0 %v6010_v0  ;;  %4073 = vmatprep.subr.bf16.mxu1 %v7030_v60 }
 0x32b   :  { %2165 = vmatpush1.bf16.msra.mxu0 %v6014_v46  ;;  %4074 = vmatpush3.bf16.msra.mxu1 %v5789_v17 }
 0x32c   :  { %2166 = vmatprep.subr.bf16.mxu0 %v6018_v59  ;;  %4075 = vmatprep.subr.bf16.mxu1 %v7030_v60 }
 0x32f   :  { %2167 = vmatpush1.bf16.msra.mxu0 %v6022_v9  ;;  %4076 = vmatpush3.bf16.msra.mxu1 %v5795_v19  ;;  %v7069_v9 = vld [vmem:[#allocation69_spill] sm:$0xff] }
 0x330   :  { %2168 = vmatprep.subr.bf16.mxu0 %v6026_v14  ;;  %4077 = vmatprep.subr.bf16.mxu1 %v7030_v60 }
 0x333   :  { %2169 = vmatpush1.bf16.msra.mxu0 %v6030_v57  ;;  %4078 = vmatpush3.bf16.msra.mxu1 %v5801_v21 }
 0x334   :  { %2170 = vmatprep.subr.bf16.mxu0 %v6034_v10  ;;  %4079 = vmatprep.subr.bf16.mxu1 %v7030_v60 }
 0x337   :  { %2171 = vmatpush1.bf16.msra.mxu0 %v6038_v44  ;;  %4080 = vmatpush3.bf16.msra.mxu1 %v5807_v27 }
 0x338   :  { %2172 = vmatprep.subr.bf16.mxu0 %v6042_v61  ;;  %4081 = vmatprep.subr.bf16.mxu1 %v7030_v60 }
 0x33b   :  { %2173 = vmatpush1.bf16.msra.mxu0 %v6046_v13  ;;  %4082 = vmatpush3.bf16.msra.mxu1 %v5813_v31 }
 0x33c   :  { %2174 = vmatprep.subr.bf16.mxu0 %v6050_v22  ;;  %4083 = vmatprep.subr.bf16.mxu1 %v7030_v60 }
 0x33f   :  { %2175 = vmatpush1.bf16.msra.mxu0 %v6054_v18  ;;  %4084 = vmatpush3.bf16.msra.mxu1 %v5819_v35 }
 0x340   :  { %2245 = vmatprep.subr.bf16.mxu0 %v5822_v39  ;;  %4089 = vmatprep.subr.bf16.mxu1 %v7030_v60 }
 0x3d5   :  { %v1886_v16 = vpop.f32.mrb[8].mxu0  ;;  %v1929_v56 = vpop.f32.mrb[52].mxu1 }
 0x3d6   :  { %v4277_v5 = vadd.f32 %v1886_v16, %v5668_v32  ;;  %v1888_v12 = vpop.f32.mrb[9].mxu0  ;;  %v4047_v58 = vpop.f32.mrb[53].mxu1 }
 0x3d7   :  { %v1890_v31 = vpop.f32.mrb[10].mxu0  ;;  %v1932_v22 = vpop.f32.mrb[54].mxu1  ;;  %v4278_v39 = vadd.f32 %v1888_v12, %v5683_v15 }
 0x3d8   :  { %v3757_v13 = vmul.f32 -1.442695, %v4277_v5  ;;  %v4279_v61 = vadd.f32 %v1890_v31, %v5668_v32  ;;  %v1892_v27 = vpop.f32.mrb[11].mxu0  ;;  %v4048_v44 = vpop.f32.mrb[55].mxu1  ;;  %v2067_v5 = vadd.f32 %v5690_v50, %v1929_v56  ;;  %v2068_v12 = vadd.f32 %v5690_v50, %v1932_v22 }
 0x3d9   :  { %v4280_v35 = vadd.f32 %v1892_v27, %v5683_v15  ;;  %v3759_v10 = vmul.f32 -1.442695, %v4278_v39  ;;  %v7066_v39 = vld [vmem:[#allocation27_spill] sm:$0xff] }
 0x3da   :  { %4579 = vpow2.f32 %v3757_v13  ;;  %v3758_v18 = vmul.f32 -1.442695, %v4279_v61 }
 0x3db   :  { %v3760_v57 = vmul.f32 -1.442695, %v4280_v35 }
 0x3dc   :  { %4581 = vpow2.f32 %v3758_v18 }
 0x3dd   :  { %4583 = vpow2.f32 %v3759_v10 }
 0x3e4   :  { %v4580_v21 = vpop.eup %4579 }
 0x3e5   :  { %v2047_v16 = vadd.f32 1.0, %v4580_v21 }
 0x3e6   :  { %v4582_v14 = vpop.eup %4581 }
 0x3e7   :  { %4585 = vrcp.f32 %v2047_v16  ;;  %v2048_v58 = vadd.f32 1.0, %v4582_v14  ;;  %v4584_v31 = vpop.eup %4583  ;;  %v7067_v14 = vld [vmem:[#allocation29_spill] sm:$0xff]  ;;  %v7068_v16 = vld [vmem:[#allocation40_spill] sm:$0xff] }
 0x3e8   :  { %4587 = vpow2.f32 %v3760_v57  ;;  %v2061_v27 = vadd.f32 1.0, %v4584_v31  ;;  %v7070_v31 = vld [vmem:[#allocation42_spill] sm:$0xff] }
 0x3e9   :  { %4589 = vrcp.f32 %v2048_v58 }
 0x3f1   :  { %v4586_v13 = vpop.eup %4585 }
 0x3f2   :  { %v4588_v44 = vpop.eup %4587  ;;  %v2069_v18 = vmul.f32 %v4586_v13, %v2067_v5 }
 0x3f3   :  { %v4590_v61 = vpop.eup %4589  ;;  %v2062_v21 = vadd.f32 1.0, %v4588_v44 }
 0x3f4   :  { %v2071_v15 = vadd.f32 %v2069_v18, %v7066_v39  ;;  %v2070_v35 = vmul.f32 %v4590_v61, %v2068_v12  ;;  %v7071_v61 = vld [vmem:[#allocation71_spill] sm:$0xff] }
 0x3f5   :  { %v1971_v32 = vpop.f32.mrb[68].mxu0  ;;  %v2014_v10 = vpop.f32.mrb[56].mxu1 }
 0x3f6   :  { %4591 = vtanh.f32 %v2071_v15  ;;  %v2072_v57 = vadd.f32 %v2070_v35, %v7067_v14  ;;  %v2081_v58 = vadd.f32 %v1971_v32, %v7068_v16  ;;  %v1973_v19 = vpop.f32.mrb[69].mxu0  ;;  %v4067_v56 = vpop.f32.mrb[57].mxu1 }
 0x3f7   :  { %4593 = vrcp.f32 %v2061_v27  ;;  %v2095_v5 = vadd.f32 %v1973_v19, %v7069_v9  ;;  %v1975_v13 = vpop.f32.mrb[70].mxu0  ;;  %v2017_v50 = vpop.f32.mrb[58].mxu1 }
 0x3f8   :  { %4595 = vtanh.f32 %v2072_v57  ;;  %v3761_v22 = vmul.f32 -1.442695, %v2081_v58  ;;  %v2082_v18 = vadd.f32 %v1975_v13, %v7070_v31  ;;  %v1977_v12 = vpop.f32.mrb[71].mxu0  ;;  %v4068_v44 = vpop.f32.mrb[59].mxu1 }
 0x3f9   :  { %4597 = vrcp.f32 %v2062_v21  ;;  %v2096_v15 = vadd.f32 %v1977_v12, %v7071_v61  ;;  %v3763_v19 = vmul.f32 -1.442695, %v2095_v5  ;;  %v6074_v12 = vpop.permute.xlu0 %2130 }
 0x3fa   :  { %4599 = vpow2.f32 %v3761_v22  ;;  %v3762_v39 = vmul.f32 -1.442695, %v2082_v18  ;;  %7072 = vst [vmem:[#allocation27_spill] sm:$0xff] %v6074_v12  ;;  %vm2135_vm12 = vcmp.eq.s32.totalorder %v6074_v12, 1  ;;  %v6077_v22 = vpop.permute.xlu1 %2133 }
 0x3fb   :  { %v3764_v56 = vmul.f32 -1.442695, %v2096_v15  ;;  %7073 = vst [vmem:[#allocation29_spill] sm:$0xff] %v6077_v22  ;;  %vm2136_vm13 = vcmp.eq.s32.totalorder %v6077_v22, 1 }
 0x3fc   :  { %4601 = vpow2.f32 %v3762_v39 }
 0x3fd   :  { %4603 = vpow2.f32 %v3763_v19 }
 0x400   :  { %v4592_v32 = vpop.eup %4591 }
 0x401   :  { %v4594_v35 = vpop.eup %4593  ;;  %v2075_v27 = vsub.f32 %v5864_v55, %v4592_v32 }
 0x402   :  { %v4596_v14 = vpop.eup %4595 }
 0x403   :  { %v4598_v9 = vpop.eup %4597  ;;  %v2077_v16 = vmul.f32 %v4594_v35, %v2075_v27  ;;  %v2076_v57 = vsub.f32 %v5870_v11, %v4596_v14 }
 0x404   :  { %v4600_v58 = vpop.eup %4599 }
 0x405   :  { %v2078_v13 = vmul.f32 %v4598_v9, %v2076_v57  ;;  %v2089_v31 = vadd.f32 1.0, %v4600_v58  ;;  %v2079_v21 = vadd.f32 %v4592_v32, %v2077_v16  ;;  %v2110_v16 = vadd.f32 %v5673_v38, %v2017_v50 }
 0x406   :  { %v4602_v44 = vpop.eup %4601 }
 0x407   :  { %4605 = vrcp.f32 %v2089_v31  ;;  %v2090_v18 = vadd.f32 1.0, %v4602_v44  ;;  %v2080_v5 = vadd.f32 %v4596_v14, %v2078_v13  ;;  %v6083_v61 = vsel %vm2135_vm12, %v2079_v21, %v5864_v55  ;;  %v6103_v14 = vld [vmem:[#allocation9 + $0x8] ss:$12 sps:$4 sm:$0xff]  }
 0x408   :  { %4607 = vpow2.f32 %v3764_v56  ;;  %v2151_v15 = vsel %vm2135_vm12, %v2079_v21, 0.0  ;;  %v7074_v56 = vld [vmem:[#allocation70_spill] sm:$0xff] }
 0x409   :  { %4609 = vrcp.f32 %v2090_v18  ;;  %v6090_v39 = vsel %vm2136_vm13, %v2080_v5, %v5870_v11  ;;  %v2152_v32 = vsel %vm2136_vm13, %v2080_v5, 0.0  ;;  %v6095_v35 = vadd.f32 %v2151_v15, %v5971_v37  ;;  %v4604_v11 = vpop.eup %4603 }
 0x40a   :  { %v6098_v27 = vadd.f32 %v2152_v32, %v5989_v49  ;;  %v2159_v55 = vpack.c.bf16 %v6090_v39, %v6083_v61  ;;  %v2109_v37 = vadd.f32 %v5673_v38, %v2014_v10  ;;  %v2103_v58 = vadd.f32 1.0, %v4604_v11  ;;  %v7075_v10 = vld [vmem:[#allocation72_spill] sm:$0xff]  ;;  %v6137_v11 = vpop.permute.xlu0 %2142 }
 0x40b   :  { %7076 = vst [vmem:[#allocation40_spill] sm:$0xff] %v6137_v11  ;;  %vm2147_vm14 = vcmp.eq.s32.totalorder %v6137_v11, 1 }
 0x40c   :  { %2193 = vmatmul.mubr.bf16.vlgmr.msra.gmra.mrb[12].mxu0 %v2159_v55  ;;  %4086 = vmatmul.mubr.bf16.vlgmr.msra.gmra.mrb[60].mxu1 %v2159_v55 }
 0x40d   :  { %2246 = vmatpush1.bf16.msra.mxu0 %v5874_v28  ;;  %4090 = vmatpush3.bf16.msra.mxu1 %v6103_v14 }
 0x40e   :  { %2247 = vmatprep.subr.bf16.mxu0 %v5878_v29  ;;  %4091 = vmatprep.subr.bf16.mxu1 %v7030_v60 }
 0x40f   :  { %2277 = vmatprep.mubr.bf16.mxu0 %v7031_v48  ;;  %4105 = vmatprep.mubr.msk.bf16.mxu1 %vm5049_vm8, %v7030_v60 }
 0x411   :  { %v4606_v49 = vpop.eup %4605  ;;  %2248 = vmatpush1.bf16.msra.mxu0 %v5886_v42  ;;  %4092 = vmatpush3.bf16.msra.mxu1 %v5889_v3 }
 0x412   :  { %v4608_v19 = vpop.eup %4607  ;;  %v2111_v9 = vmul.f32 %v4606_v49, %v2109_v37  ;;  %2249 = vmatprep.subr.bf16.mxu0 %v5893_v51  ;;  %4093 = vmatprep.subr.bf16.mxu1 %v7030_v60 }
 0x413   :  { %v4610_v57 = vpop.eup %4609  ;;  %v2104_v44 = vadd.f32 1.0, %v4608_v19  ;;  %v6144_v19 = vpop.permute.xlu1 %2145 }
 0x414   :  { %v2113_v13 = vadd.f32 %v2111_v9, %v7074_v56  ;;  %v2112_v31 = vmul.f32 %v4610_v57, %v2110_v16  ;;  %7077 = vst [vmem:[#allocation69_spill] sm:$0xff] %v6144_v19  ;;  %vm2148_vm15 = vcmp.eq.s32.totalorder %v6144_v19, 1 }
 0x415   :  { %2250 = vmatpush1.bf16.msra.mxu0 %v5898_v63  ;;  %4094 = vmatpush3.bf16.msra.mxu1 %v5901_v8 }
 0x416   :  { %4611 = vtanh.f32 %v2113_v13  ;;  %v2114_v21 = vadd.f32 %v2112_v31, %v7075_v10  ;;  %2251 = vmatprep.subr.bf16.mxu0 %v5905_v41  ;;  %4095 = vmatprep.subr.bf16.mxu1 %v7030_v60  ;;  %v7085_v10 = vld [vmem:[#allocation16_spill] sm:$0xff] }
 0x417   :  { %4613 = vrcp.f32 %v2103_v58 }
 0x418   :  { %4615 = vtanh.f32 %v2114_v21  ;;  %v7086_v21 = vld [vmem:[#allocation85_spill] sm:$0xff] }
 0x419   :  { %2252 = vmatpush1.bf16.msra.mxu0 %v5909_v4  ;;  %4096 = vmatpush3.bf16.msra.mxu1 %v5912_v45  ;;  %4617 = vrcp.f32 %v2104_v44  ;;  %v7087_v44 = vld [vmem:[#allocation86_spill] sm:$0xff] }
 0x41a   :  { %2253 = vmatprep.subr.bf16.mxu0 %v5915_v30  ;;  %4097 = vmatprep.subr.bf16.mxu1 %v7030_v60 }
 0x41d   :  { %2254 = vmatpush1.bf16.msra.mxu0 %v5919_v36  ;;  %4098 = vmatpush3.bf16.msra.mxu1 %v5922_v53 }
 0x41e   :  { %2255 = vmatprep.subr.bf16.mxu0 %v5925_v47  ;;  %4099 = vmatprep.subr.bf16.mxu1 %v7030_v60 }
 0x420   :  { %v4612_v38 = vpop.eup %4611 }
 0x421   :  { %v4614_v50 = vpop.eup %4613  ;;  %v2117_v18 = vsub.f32 %v5981_v43, %v4612_v38  ;;  %2256 = vmatpush1.bf16.msra.mxu0 %v5932_v26  ;;  %4100 = vmatpush3.bf16.msra.mxu1 %v5935_v24 }
 0x422   :  { %v4616_v5 = vpop.eup %4615  ;;  %2257 = vmatprep.subr.bf16.mxu0 %v5941_v40  ;;  %4101 = vmatprep.subr.bf16.mxu1 %v7030_v60 }
 0x423   :  { %v2119_v15 = vmul.f32 %v4614_v50, %v2117_v18  ;;  %v2118_v32 = vsub.f32 %v5985_v33, %v4616_v5  ;;  %v4618_v55 = vpop.eup %4617  ;;  %v7089_v50 = vld [vmem:[#allocation87_spill] sm:$0xff]  ;;  %v7090_v18 = vld [vmem:[#allocation88_spill] sm:$0xff] }
 0x425   :  { %v2120_v37 = vmul.f32 %v4618_v55, %v2118_v32  ;;  %2258 = vmatpush1.bf16.msra.mxu0 %v5954_v7  ;;  %4102 = vmatpush3.bf16.msra.mxu1 %v5957_v62  ;;  %v2121_v49 = vadd.f32 %v4612_v38, %v2119_v15  ;;  %v7088_v38 = vld [vmem:[#allocation17_spill] sm:$0xff]  ;;  %v7092_v15 = vld [vmem:[#allocation19_spill] sm:$0xff] }
 0x426   :  { %2259 = vmatprep.subr.bf16.mxu0 %v5962_v2  ;;  %4103 = vmatprep.subr.bf16.mxu1 %v7030_v60 }
 0x427   :  { %v2122_v9 = vadd.f32 %v4616_v5, %v2120_v37  ;;  %v2155_v16 = vsel %vm2147_vm14, %v2121_v49, 0.0  ;;  %v6157_v58 = vsel %vm2147_vm14, %v2121_v49, %v5981_v43  ;;  %v7080_v43 = vld [vmem:[#allocation46_spill] sm:$0xff]  ;;  %v7093_v37 = vld [vmem:[#allocation77_spill] sm:$0xff] }
 0x428   :  { %v6150_v57 = vadd.f32 %v2155_v16, %v6095_v35  ;;  %v7091_v5 = vld [vmem:[#allocation18_spill] sm:$0xff] }
 0x429   :  { %2260 = vmatpush1.bf16.msra.mxu0 %v5973_v54  ;;  %4104 = vmatpush3.bf16.msra.mxu1 %v5976_v52  ;;  %v6162_v56 = vsel %vm2148_vm15, %v2122_v9, %v5985_v33  ;;  %v2156_v13 = vsel %vm2148_vm15, %v2122_v9, 0.0  ;;  %v7082_v33 = vld [vmem:[#allocation84_spill] sm:$0xff] }
 0x42a   :  { %v6167_v35 = vadd.f32 %v2156_v13, %v6098_v27  ;;  %v2244_v31 = vpack.c.bf16 %v6162_v56, %v6157_v58  ;;  %2468 = vmatprep.subr.bf16.mxu0 %v5763_v20  ;;  %4109 = vmatprep.subr.bf16.mxu1 %v7030_v60  ;;  %v7078_v20 = vld [vmem:[#allocation73_spill] sm:$0xff]  ;;  %v7083_v27 = vld [vmem:[#allocation74_spill] sm:$0xff] }
 0x42c   :  { %2278 = vmatmul.mubr.bf16.vlgmr.msra.gmra.mrb[72].mxu0 %v2244_v31  ;;  %4106 = vmatmul.mubr.bf16.vlgmr.msra.gmra.mrb[64].mxu1 %v2244_v31 }
 0x42d   :  { %2469 = vmatpush1.bf16.msra.mxu0 %v5995_v1  ;;  %4110 = vmatpush3.bf16.msra.mxu1 %v5774_v23  ;;  %v7079_v23 = vld [vmem:[#allocation83_spill] sm:$0xff] }
 0x42e   :  { %2470 = vmatprep.subr.bf16.mxu0 %v5999_v34  ;;  %4111 = vmatprep.subr.bf16.mxu1 %v7030_v60 }
 0x42f   :  { %2500 = vmatprep.mubr.bf16.mxu0 %v7031_v48  ;;  %4125 = vmatprep.mubr.msk.bf16.mxu1 %vm5049_vm8, %v7030_v60 }
 0x431   :  { %2471 = vmatpush1.bf16.msra.mxu0 %v6006_v6  ;;  %4112 = vmatpush3.bf16.msra.mxu1 %v5783_v25  ;;  %v7081_v25 = vld [vmem:[#allocation75_spill] sm:$0xff] }
 0x432   :  { %2472 = vmatprep.subr.bf16.mxu0 %v6010_v0  ;;  %4113 = vmatprep.subr.bf16.mxu1 %v7030_v60 }
 0x435   :  { %2473 = vmatpush1.bf16.msra.mxu0 %v6014_v46  ;;  %4114 = vmatpush3.bf16.msra.mxu1 %v5789_v17  ;;  %v7084_v17 = vld [vmem:[#allocation76_spill] sm:$0xff] }
 0x436   :  { %2474 = vmatprep.subr.bf16.mxu0 %v6018_v59  ;;  %4115 = vmatprep.subr.bf16.mxu1 %v7030_v60 }
 0x439   :  { %2475 = vmatpush1.bf16.msra.mxu0 %v7078_v20  ;;  %4116 = vmatpush3.bf16.msra.mxu1 %v7079_v23 }
 0x43a   :  { %2476 = vmatprep.subr.bf16.mxu0 %v7080_v43  ;;  %4117 = vmatprep.subr.bf16.mxu1 %v7030_v60 }
 0x43d   :  { %2477 = vmatpush1.bf16.msra.mxu0 %v7081_v25  ;;  %4118 = vmatpush3.bf16.msra.mxu1 %v7082_v33 }
 0x43e   :  { %2478 = vmatprep.subr.bf16.mxu0 %v7083_v27  ;;  %4119 = vmatprep.subr.bf16.mxu1 %v7030_v60 }
 0x441   :  { %2479 = vmatpush1.bf16.msra.mxu0 %v7084_v17  ;;  %4120 = vmatpush3.bf16.msra.mxu1 %v7085_v10  ;;  %v7099_v17 = vld [vmem:[#allocation65_spill] sm:$0xff] }
 0x442   :  { %2480 = vmatprep.subr.bf16.mxu0 %v7086_v21  ;;  %4121 = vmatprep.subr.bf16.mxu1 %v7030_v60 }
 0x445   :  { %2481 = vmatpush1.bf16.msra.mxu0 %v7087_v44  ;;  %4122 = vmatpush3.bf16.msra.mxu1 %v7088_v38 }
 0x446   :  { %2482 = vmatprep.subr.bf16.mxu0 %v7089_v50  ;;  %4123 = vmatprep.subr.bf16.mxu1 %v7030_v60 }
 0x449   :  { %2483 = vmatpush1.bf16.msra.mxu0 %v7090_v18  ;;  %4124 = vmatpush3.bf16.msra.mxu1 %v7091_v5  ;;  %v7094_v5 = vld [vmem:[#allocation78_spill] sm:$0xff] }
 0x44a   :  { %2553 = vmatprep.subr.bf16.mxu0 %v7092_v15  ;;  %4129 = vmatprep.subr.bf16.mxu1 %v7030_v60 }
 0x4df   :  { %v2194_v32 = vpop.f32.mrb[12].mxu0  ;;  %v2237_v55 = vpop.f32.mrb[60].mxu1 }
 0x4e0   :  { %v4281_v49 = vadd.f32 %v2194_v32, %v7093_v37  ;;  %v2196_v9 = vpop.f32.mrb[13].mxu0  ;;  %v4087_v16 = vpop.f32.mrb[61].mxu1 }
 0x4e1   :  { %v2198_v13 = vpop.f32.mrb[14].mxu0  ;;  %v2240_v31 = vpop.f32.mrb[62].mxu1  ;;  %v4282_v15 = vadd.f32 %v2196_v9, %v7094_v5 }
 0x4e2   :  { %v3765_v23 = vmul.f32 -1.442695, %v4281_v49  ;;  %v4283_v33 = vadd.f32 %v2198_v13, %v7093_v37  ;;  %v2200_v10 = vpop.f32.mrb[15].mxu0  ;;  %v4088_v38 = vpop.f32.mrb[63].mxu1  ;;  %v6215_v13 = vld [vmem:[%s6883_s6] ss:$0 sm:$0xff] }
 0x4e3   :  { %v4284_v12 = vadd.f32 %v2200_v10, %v7094_v5  ;;  %v3767_v19 = vmul.f32 -1.442695, %v4282_v15  ;;  %7095 = vst [vmem:[#allocation42_spill] sm:$0xff] %v6215_v13  ;;  %v7098_v37 = vld [vmem:[#allocation36_spill] sm:$0xff] }
 0x4e4   :  { %4619 = vpow2.f32 %v3765_v23  ;;  %v3766_v22 = vmul.f32 -1.442695, %v4283_v33 }
 0x4e5   :  { %v3768_v18 = vmul.f32 -1.442695, %v4284_v12  ;;  %v2376_v12 = vadd.f32 %v6215_v13, %v2240_v31 }
 0x4e6   :  { %4621 = vpow2.f32 %v3766_v22  ;;  %v2375_v22 = vadd.f32 %v6215_v13, %v2237_v55  ;;  %v7100_v13 = vld [vmem:[#allocation38_spill] sm:$0xff] }
 0x4e7   :  { %4623 = vpow2.f32 %v3767_v19  ;;  %v7096_v19 = vld [vmem:[#allocation31_spill] sm:$0xff] }
 0x4ee   :  { %v4620_v11 = vpop.eup %4619 }
 0x4ef   :  { %v2355_v32 = vadd.f32 1.0, %v4620_v11 }
 0x4f0   :  { %v4622_v50 = vpop.eup %4621 }
 0x4f1   :  { %4625 = vrcp.f32 %v2355_v32  ;;  %v2356_v16 = vadd.f32 1.0, %v4622_v50  ;;  %v4624_v49 = vpop.eup %4623 }
 0x4f2   :  { %4627 = vpow2.f32 %v3768_v18  ;;  %v2369_v10 = vadd.f32 1.0, %v4624_v49 }
 0x4f3   :  { %4629 = vrcp.f32 %v2356_v16  ;;  %v7097_v16 = vld [vmem:[#allocation33_spill] sm:$0xff] }
 0x4fb   :  { %v4626_v9 = vpop.eup %4625 }
 0x4fc   :  { %v4628_v23 = vpop.eup %4627  ;;  %v2377_v33 = vmul.f32 %v4626_v9, %v2375_v22 }
 0x4fd   :  { %v4630_v11 = vpop.eup %4629  ;;  %v2370_v18 = vadd.f32 1.0, %v4628_v23 }
 0x4fe   :  { %v2379_v38 = vadd.f32 %v2377_v33, %v7096_v19  ;;  %v2378_v50 = vmul.f32 %v4630_v11, %v2376_v12  ;;  %v7101_v11 = vld [vmem:[#allocation67_spill] sm:$0xff] }
 0x4ff   :  { %v2279_v15 = vpop.f32.mrb[72].mxu0  ;;  %v2322_v32 = vpop.f32.mrb[64].mxu1 }
 0x500   :  { %4631 = vtanh.f32 %v2379_v38  ;;  %v2380_v5 = vadd.f32 %v2378_v50, %v7097_v16  ;;  %v2389_v44 = vadd.f32 %v2279_v15, %v7098_v37  ;;  %v2281_v21 = vpop.f32.mrb[73].mxu0  ;;  %v4107_v55 = vpop.f32.mrb[65].mxu1 }
 0x501   :  { %4633 = vrcp.f32 %v2369_v10  ;;  %v2403_v22 = vadd.f32 %v2281_v21, %v7099_v17  ;;  %v2283_v9 = vpop.f32.mrb[74].mxu0  ;;  %v2325_v31 = vpop.f32.mrb[66].mxu1 }
 0x502   :  { %4635 = vtanh.f32 %v2380_v5  ;;  %v3769_v49 = vmul.f32 -1.442695, %v2389_v44  ;;  %v2390_v33 = vadd.f32 %v2283_v9, %v7100_v13  ;;  %v2285_v12 = vpop.f32.mrb[75].mxu0  ;;  %v4108_v23 = vpop.f32.mrb[67].mxu1 }
 0x503   :  { %4637 = vrcp.f32 %v2370_v18  ;;  %v2404_v19 = vadd.f32 %v2285_v12, %v7101_v11  ;;  %v3771_v17 = vmul.f32 -1.442695, %v2403_v22  ;;  %v6227_v12 = vpop.permute.xlu0 %2438 }
 0x504   :  { %4639 = vpow2.f32 %v3769_v49  ;;  %v3770_v38 = vmul.f32 -1.442695, %v2390_v33  ;;  %vm2443_vm0 = vcmp.eq.s32.totalorder %v6227_v12, 1  ;;  %v6230_v49 = vpop.permute.xlu1 %2441  ;;  %v6527_v12 = vld [vmem:[#allocation8] ss:$12 sps:$4 sm:$0xff]  }
 0x505   :  { %v3772_v13 = vmul.f32 -1.442695, %v2404_v19  ;;  %vm2444_vm3 = vcmp.eq.s32.totalorder %v6230_v49, 1  ;;  %v6531_v49 = vld [vmem:[#allocation8 + $0x1c] ss:$12 sps:$4 sm:$0xff]  }
 0x506   :  { %4641 = vpow2.f32 %v3770_v38 }
 0x507   :  { %4643 = vpow2.f32 %v3771_v17 }
 0x50a   :  { %v4632_v37 = vpop.eup %4631 }
 0x50b   :  { %v4634_v50 = vpop.eup %4633  ;;  %v2383_v10 = vsub.f32 %v6083_v61, %v4632_v37 }
 0x50c   :  { %v4636_v15 = vpop.eup %4635 }
 0x50d   :  { %v4638_v21 = vpop.eup %4637  ;;  %v2385_v16 = vmul.f32 %v4634_v50, %v2383_v10  ;;  %v2384_v44 = vsub.f32 %v6090_v39, %v4636_v15 }
 0x50e   :  { %v4640_v5 = vpop.eup %4639 }
 0x50f   :  { %v2386_v55 = vmul.f32 %v4638_v21, %v2384_v44  ;;  %v2397_v9 = vadd.f32 1.0, %v4640_v5  ;;  %v2387_v18 = vadd.f32 %v4632_v37, %v2385_v16  ;;  %v7102_v44 = vld [vmem:[#allocation66_spill] sm:$0xff] }
 0x510   :  { %v4642_v23 = vpop.eup %4641 }
 0x511   :  { %4645 = vrcp.f32 %v2397_v9  ;;  %v2398_v33 = vadd.f32 1.0, %v4642_v23  ;;  %v2388_v22 = vadd.f32 %v4636_v15, %v2386_v55  ;;  %v6236_v11 = vsel %vm2443_vm0, %v2387_v18, %v6083_v61  ;;  %v6377_v9 = vld [vmem:[#allocation8 + $0xb0] ss:$12 sps:$4 sm:$0xff]  }
 0x512   :  { %4647 = vpow2.f32 %v3772_v13  ;;  %v2459_v19 = vsel %vm2443_vm0, %v2387_v18, 0.0  ;;  %7113 = vst [vmem:[#allocation83_spill] sm:$0xff] %v6377_v9  ;;  %v6380_v18 = vld [vmem:[#allocation9 + $0x4] ss:$12 sps:$4 sm:$0xff]  }
 0x513   :  { %4649 = vrcp.f32 %v2398_v33  ;;  %v6243_v38 = vsel %vm2444_vm3, %v2388_v22, %v6090_v39  ;;  %v2460_v37 = vsel %vm2444_vm3, %v2388_v22, 0.0  ;;  %v6248_v50 = vadd.f32 %v2459_v19, %v6150_v57  ;;  %v4644_v39 = vpop.eup %4643  ;;  %v6265_v57 = vld [vmem:[%s6884_s7] ss:$0 sm:$0xff]  ;;  %7114 = vst [vmem:[#allocation46_spill] sm:$0xff] %v6380_v18  ;;  %v7115_v22 = vld [vmem:[#allocation77_spill] sm:$0xff] }
 0x514   :  { %v6251_v10 = vadd.f32 %v2460_v37, %v6167_v35  ;;  %v2467_v61 = vpack.c.bf16 %v6243_v38, %v6236_v11  ;;  %v2417_v35 = vadd.f32 %v6265_v57, %v2322_v32  ;;  %v2418_v17 = vadd.f32 %v6265_v57, %v2325_v31 }
 0x515   :  { %v2411_v16 = vadd.f32 1.0, %v4644_v39 }
 0x516   :  { %2501 = vmatmul.mubr.bf16.vlgmr.msra.gmra.mrb[16].mxu0 %v2467_v61  ;;  %4126 = vmatmul.mubr.bf16.vlgmr.msra.gmra.mrb[68].mxu1 %v2467_v61 }
 0x517   :  { %2554 = vmatpush1.bf16.msra.mxu0 %v5874_v28  ;;  %4130 = vmatpush3.bf16.msra.mxu1 %v6103_v14 }
 0x518   :  { %2555 = vmatprep.subr.bf16.mxu0 %v5878_v29  ;;  %4131 = vmatprep.subr.bf16.mxu1 %v7030_v60 }
 0x519   :  { %2585 = vmatprep.mubr.bf16.mxu0 %v7031_v48  ;;  %4145 = vmatprep.mubr.msk.bf16.mxu1 %vm5049_vm8, %v7030_v60 }
 0x51b   :  { %v4646_v28 = vpop.eup %4645  ;;  %2556 = vmatpush1.bf16.msra.mxu0 %v5886_v42  ;;  %4132 = vmatpush3.bf16.msra.mxu1 %v5889_v3  ;;  %v7103_v42 = vld [vmem:[#allocation68_spill] sm:$0xff] }
 0x51c   :  { %v4648_v29 = vpop.eup %4647  ;;  %v2419_v15 = vmul.f32 %v4646_v28, %v2417_v35  ;;  %2557 = vmatprep.subr.bf16.mxu0 %v5893_v51  ;;  %4133 = vmatprep.subr.bf16.mxu1 %v7030_v60 }
 0x51d   :  { %v4650_v21 = vpop.eup %4649  ;;  %v2412_v32 = vadd.f32 1.0, %v4648_v29 }
 0x51e   :  { %v2421_v5 = vadd.f32 %v2419_v15, %v7102_v44  ;;  %v2420_v13 = vmul.f32 %v4650_v21, %v2418_v17  ;;  %v7116_v17 = vld [vmem:[#allocation78_spill] sm:$0xff] }
 0x51f   :  { %2558 = vmatpush1.bf16.msra.mxu0 %v5898_v63  ;;  %4134 = vmatpush3.bf16.msra.mxu1 %v5901_v8 }
 0x520   :  { %4651 = vtanh.f32 %v2421_v5  ;;  %v2422_v3 = vadd.f32 %v2420_v13, %v7103_v42  ;;  %2559 = vmatprep.subr.bf16.mxu0 %v5905_v41  ;;  %4135 = vmatprep.subr.bf16.mxu1 %v7030_v60 }
 0x521   :  { %4653 = vrcp.f32 %v2411_v16 }
 0x522   :  { %4655 = vtanh.f32 %v2422_v3 }
 0x523   :  { %2560 = vmatpush1.bf16.msra.mxu0 %v5909_v4  ;;  %4136 = vmatpush3.bf16.msra.mxu1 %v5912_v45  ;;  %4657 = vrcp.f32 %v2412_v32 }
 0x524   :  { %2561 = vmatprep.subr.bf16.mxu0 %v5915_v30  ;;  %4137 = vmatprep.subr.bf16.mxu1 %v7030_v60 }
 0x527   :  { %2562 = vmatpush1.bf16.msra.mxu0 %v5919_v36  ;;  %4138 = vmatpush3.bf16.msra.mxu1 %v5922_v53  ;;  %v6293_v36 = vpop.permute.xlu0 %2450 }
 0x528   :  { %2563 = vmatprep.subr.bf16.mxu0 %v5925_v47  ;;  %4139 = vmatprep.subr.bf16.mxu1 %v7030_v60  ;;  %vm2455_vm6 = vcmp.eq.s32.totalorder %v6293_v36, 1  ;;  %v6420_v36 = vld [vmem:[#allocation9] ss:$12 sps:$4 sm:$0xff]  }
 0x52a   :  { %v4652_v51 = vpop.eup %4651 }
 0x52b   :  { %v4654_v63 = vpop.eup %4653  ;;  %v2425_v8 = vsub.f32 %v6157_v58, %v4652_v51  ;;  %2564 = vmatpush1.bf16.msra.mxu0 %v5932_v26  ;;  %4140 = vmatpush3.bf16.msra.mxu1 %v5935_v24  ;;  %v6300_v26 = vpop.permute.xlu1 %2453 }
 0x52c   :  { %v4656_v41 = vpop.eup %4655  ;;  %2565 = vmatprep.subr.bf16.mxu0 %v5941_v40  ;;  %4141 = vmatprep.subr.bf16.mxu1 %v7030_v60  ;;  %vm2456_vm2 = vcmp.eq.s32.totalorder %v6300_v26, 1 }
 0x52d   :  { %v2427_v4 = vmul.f32 %v4654_v63, %v2425_v8  ;;  %v2426_v45 = vsub.f32 %v6162_v56, %v4656_v41  ;;  %v4658_v30 = vpop.eup %4657  ;;  %v7117_v63 = vld [vmem:[#allocation42_spill] sm:$0xff] }
 0x52f   :  { %v2428_v53 = vmul.f32 %v4658_v30, %v2426_v45  ;;  %2566 = vmatpush1.bf16.msra.mxu0 %v5954_v7  ;;  %4142 = vmatpush3.bf16.msra.mxu1 %v5957_v62  ;;  %v2429_v47 = vadd.f32 %v4652_v51, %v2427_v4 }
 0x530   :  { %2567 = vmatprep.subr.bf16.mxu0 %v5962_v2  ;;  %4143 = vmatprep.subr.bf16.mxu1 %v7030_v60 }
 0x531   :  { %v2430_v24 = vadd.f32 %v4656_v41, %v2428_v53  ;;  %v2463_v40 = vsel %vm2455_vm6, %v2429_v47, 0.0  ;;  %v6313_v7 = vsel %vm2455_vm6, %v2429_v47, %v6157_v58  ;;  %v6332_v58 = vld [vmem:[#allocation8 + $0x8] ss:$12 sps:$4 sm:$0xff]  }
 0x532   :  { %v6306_v31 = vadd.f32 %v2463_v40, %v6248_v50 }
 0x533   :  { %2568 = vmatpush1.bf16.msra.mxu0 %v5973_v54  ;;  %4144 = vmatpush3.bf16.msra.mxu1 %v5976_v52  ;;  %v6318_v62 = vsel %vm2456_vm2, %v2430_v24, %v6162_v56  ;;  %v2464_v2 = vsel %vm2456_vm2, %v2430_v24, 0.0  ;;  %v6327_v52 = vld [vmem:[#allocation8 + $0x4] ss:$12 sps:$4 sm:$0xff]   ;;  %v6341_v56 = vld [vmem:[#allocation8 + $0x20] ss:$12 sps:$4 sm:$0xff]  }
 0x534   :  { %v6323_v55 = vadd.f32 %v2464_v2, %v6251_v10  ;;  %v2552_v54 = vpack.c.bf16 %v6318_v62, %v6313_v7  ;;  %2746 = vmatprep.subr.bf16.mxu0 %v6327_v52  ;;  %4149 = vmatprep.subr.bf16.mxu1 %v7030_v60  ;;  %v7118_v24 = vld [vmem:[#allocation35_spill] sm:$0xff] }
 0x536   :  { %2586 = vmatmul.mubr.bf16.vlgmr.msra.gmra.mrb[76].mxu0 %v2552_v54  ;;  %4146 = vmatmul.mubr.bf16.vlgmr.msra.gmra.mrb[72].mxu1 %v2552_v54 }
 0x537   :  { %2747 = vmatpush1.bf16.msra.mxu0 %v5995_v1  ;;  %4150 = vmatpush3.bf16.msra.mxu1 %v6332_v58  ;;  %v6347_v1 = vld [vmem:[#allocation8 + $0x38] ss:$12 sps:$4 sm:$0xff]  }
 0x538   :  { %2748 = vmatprep.subr.bf16.mxu0 %v5999_v34  ;;  %4151 = vmatprep.subr.bf16.mxu1 %v7030_v60  ;;  %v6353_v34 = vld [vmem:[#allocation8 + $0x50] ss:$12 sps:$4 sm:$0xff]  }
 0x539   :  { %2778 = vmatprep.mubr.bf16.mxu0 %v7031_v48  ;;  %4165 = vmatprep.mubr.msk.bf16.mxu1 %vm5049_vm8, %v7030_v60  ;;  %7104 = vst [vmem:[#allocation71_spill] sm:$0xff] %v6353_v34 }
 0x53b   :  { %2749 = vmatpush1.bf16.msra.mxu0 %v6006_v6  ;;  %4152 = vmatpush3.bf16.msra.mxu1 %v6341_v56  ;;  %v6359_v6 = vld [vmem:[#allocation8 + $0x68] ss:$12 sps:$4 sm:$0xff]  }
 0x53c   :  { %2750 = vmatprep.subr.bf16.mxu0 %v6010_v0  ;;  %4153 = vmatprep.subr.bf16.mxu1 %v7030_v60  ;;  %7105 = vst [vmem:[#allocation70_spill] sm:$0xff] %v6359_v6  ;;  %v7106_v0 = vld [vmem:[#allocation76_spill] sm:$0xff] }
 0x53f   :  { %2751 = vmatpush1.bf16.msra.mxu0 %v6014_v46  ;;  %4154 = vmatpush3.bf16.msra.mxu1 %v6347_v1  ;;  %v6365_v46 = vld [vmem:[#allocation8 + $0x80] ss:$12 sps:$4 sm:$0xff]  }
 0x540   :  { %2752 = vmatprep.subr.bf16.mxu0 %v6018_v59  ;;  %4155 = vmatprep.subr.bf16.mxu1 %v7030_v60  ;;  %7107 = vst [vmem:[#allocation72_spill] sm:$0xff] %v6365_v46  ;;  %v7108_v59 = vld [vmem:[#allocation85_spill] sm:$0xff] }
 0x543   :  { %2753 = vmatpush1.bf16.msra.mxu0 %v7078_v20  ;;  %4156 = vmatpush3.bf16.msra.mxu1 %v6353_v34  ;;  %v7109_v20 = vld [vmem:[#allocation86_spill] sm:$0xff] }
 0x544   :  { %2754 = vmatprep.subr.bf16.mxu0 %v7080_v43  ;;  %4157 = vmatprep.subr.bf16.mxu1 %v7030_v60  ;;  %v6371_v43 = vld [vmem:[#allocation8 + $0x98] ss:$12 sps:$4 sm:$0xff]  }
 0x545   :  { %7110 = vst [vmem:[#allocation73_spill] sm:$0xff] %v6371_v43 }
 0x547   :  { %2755 = vmatpush1.bf16.msra.mxu0 %v7081_v25  ;;  %4158 = vmatpush3.bf16.msra.mxu1 %v6359_v6  ;;  %v7111_v25 = vld [vmem:[#allocation87_spill] sm:$0xff] }
 0x548   :  { %2756 = vmatprep.subr.bf16.mxu0 %v7083_v27  ;;  %4159 = vmatprep.subr.bf16.mxu1 %v7030_v60  ;;  %v7112_v27 = vld [vmem:[#allocation88_spill] sm:$0xff] }
 0x54b   :  { %2757 = vmatpush1.bf16.msra.mxu0 %v7106_v0  ;;  %4160 = vmatpush3.bf16.msra.mxu1 %v6365_v46 }
 0x54c   :  { %2758 = vmatprep.subr.bf16.mxu0 %v7108_v59  ;;  %4161 = vmatprep.subr.bf16.mxu1 %v7030_v60 }
 0x54f   :  { %2759 = vmatpush1.bf16.msra.mxu0 %v7109_v20  ;;  %4162 = vmatpush3.bf16.msra.mxu1 %v6371_v43  ;;  %v7119_v20 = vld [vmem:[#allocation37_spill] sm:$0xff] }
 0x550   :  { %2760 = vmatprep.subr.bf16.mxu0 %v7111_v25  ;;  %4163 = vmatprep.subr.bf16.mxu1 %v7030_v60 }
 0x553   :  { %2761 = vmatpush1.bf16.msra.mxu0 %v7112_v27  ;;  %4164 = vmatpush3.bf16.msra.mxu1 %v6377_v9  ;;  %v7120_v27 = vld [vmem:[#allocation32_spill] sm:$0xff] }
 0x554   :  { %2831 = vmatprep.subr.bf16.mxu0 %v6380_v18  ;;  %4169 = vmatprep.subr.bf16.mxu1 %v7030_v60 }
 0x5e9   :  { %v2502_v23 = vpop.f32.mrb[16].mxu0  ;;  %v2545_v33 = vpop.f32.mrb[68].mxu1 }
 0x5ea   :  { %v4285_v19 = vadd.f32 %v2502_v23, %v7115_v22  ;;  %v2504_v37 = vpop.f32.mrb[17].mxu0  ;;  %v4127_v50 = vpop.f32.mrb[69].mxu1  ;;  %v2677_v8 = vadd.f32 %v7117_v63, %v2545_v33 }
 0x5eb   :  { %v2506_v10 = vpop.f32.mrb[18].mxu0  ;;  %v2548_v61 = vpop.f32.mrb[70].mxu1  ;;  %v4286_v21 = vadd.f32 %v2504_v37, %v7116_v17  ;;  %v7121_v37 = vld [vmem:[#allocation61_spill] sm:$0xff] }
 0x5ec   :  { %v3773_v39 = vmul.f32 -1.442695, %v4285_v19  ;;  %v4287_v35 = vadd.f32 %v2506_v10, %v7115_v22  ;;  %v2508_v28 = vpop.f32.mrb[19].mxu0  ;;  %v4128_v29 = vpop.f32.mrb[71].mxu1  ;;  %v2678_v30 = vadd.f32 %v7117_v63, %v2548_v61 }
 0x5ed   :  { %v4288_v16 = vadd.f32 %v2508_v28, %v7116_v17  ;;  %v3775_v44 = vmul.f32 -1.442695, %v4286_v21  ;;  %v7123_v21 = vld [vmem:[#allocation63_spill] sm:$0xff] }
 0x5ee   :  { %4659 = vpow2.f32 %v3773_v39  ;;  %v3774_v15 = vmul.f32 -1.442695, %v4287_v35  ;;  %v7122_v35 = vld [vmem:[#allocation34_spill] sm:$0xff] }
 0x5ef   :  { %v3776_v13 = vmul.f32 -1.442695, %v4288_v16 }
 0x5f0   :  { %4661 = vpow2.f32 %v3774_v15 }
 0x5f1   :  { %4663 = vpow2.f32 %v3775_v44 }
 0x5f8   :  { %v4660_v5 = vpop.eup %4659 }
 0x5f9   :  { %v2657_v42 = vadd.f32 1.0, %v4660_v5 }
 0x5fa   :  { %v4662_v3 = vpop.eup %4661 }
 0x5fb   :  { %4665 = vrcp.f32 %v2657_v42  ;;  %v2658_v32 = vadd.f32 1.0, %v4662_v3  ;;  %v4664_v51 = vpop.eup %4663 }
 0x5fc   :  { %4667 = vpow2.f32 %v3776_v13  ;;  %v2671_v47 = vadd.f32 1.0, %v4664_v51 }
 0x5fd   :  { %4669 = vrcp.f32 %v2658_v32 }
 0x605   :  { %v4666_v41 = vpop.eup %4665 }
 0x606   :  { %v4668_v4 = vpop.eup %4667  ;;  %v2679_v45 = vmul.f32 %v4666_v41, %v2677_v8 }
 0x607   :  { %v4670_v53 = vpop.eup %4669  ;;  %v2672_v54 = vadd.f32 1.0, %v4668_v4 }
 0x608   :  { %v2681_v40 = vadd.f32 %v2679_v45, %v7118_v24  ;;  %v2680_v2 = vmul.f32 %v4670_v53, %v2678_v30 }
 0x609   :  { %v2587_v0 = vpop.f32.mrb[76].mxu0  ;;  %v2630_v59 = vpop.f32.mrb[72].mxu1 }
 0x60a   :  { %4671 = vtanh.f32 %v2681_v40  ;;  %v2682_v25 = vadd.f32 %v2680_v2, %v7119_v20  ;;  %v2691_v23 = vadd.f32 %v2587_v0, %v7120_v27  ;;  %v2589_v19 = vpop.f32.mrb[77].mxu0  ;;  %v4147_v33 = vpop.f32.mrb[73].mxu1 }
 0x60b   :  { %4673 = vrcp.f32 %v2671_v47  ;;  %v2705_v50 = vadd.f32 %v2589_v19, %v7121_v37  ;;  %v2591_v10 = vpop.f32.mrb[78].mxu0  ;;  %v2633_v61 = vpop.f32.mrb[74].mxu1  ;;  %v6432_v19 = vld [vmem:[#allocation9 + $0x18] ss:$12 sps:$4 sm:$0xff]  }
 0x60c   :  { %4675 = vtanh.f32 %v2682_v25  ;;  %v3777_v39 = vmul.f32 -1.442695, %v2691_v23  ;;  %v2692_v28 = vadd.f32 %v2591_v10, %v7122_v35  ;;  %v2593_v29 = vpop.f32.mrb[79].mxu0  ;;  %v4148_v15 = vpop.f32.mrb[75].mxu1  ;;  %v6439_v10 = vld [vmem:[#allocation9 + $0x34] ss:$12 sps:$4 sm:$0xff]  }
 0x60d   :  { %4677 = vrcp.f32 %v2672_v54  ;;  %v2706_v16 = vadd.f32 %v2593_v29, %v7123_v21  ;;  %v3779_v32 = vmul.f32 -1.442695, %v2705_v50  ;;  %v2720_v50 = vadd.f32 %v6265_v57, %v2633_v61  ;;  %v7124_v35 = vld [vmem:[#allocation62_spill] sm:$0xff]  ;;  %v6444_v15 = vld [vmem:[#allocation9 + $0x30] ss:$12 sps:$4 sm:$0xff]  }
 0x60e   :  { %4679 = vpow2.f32 %v3777_v39  ;;  %v3778_v44 = vmul.f32 -1.442695, %v2692_v28  ;;  %v6447_v21 = vld [vmem:[#allocation9 + $0x38] ss:$12 sps:$4 sm:$0xff]   ;;  %v7125_v61 = vld [vmem:[#allocation64_spill] sm:$0xff] }
 0x60f   :  { %v3780_v45 = vmul.f32 -1.442695, %v2706_v16 }
 0x610   :  { %4681 = vpow2.f32 %v3778_v44 }
 0x611   :  { %4683 = vpow2.f32 %v3779_v32  ;;  %v6465_v32 = vld [vmem:[#allocation9 + $0x60] ss:$12 sps:$4 sm:$0xff]  }
 0x614   :  { %v4672_v5 = vpop.eup %4671 }
 0x615   :  { %v4674_v13 = vpop.eup %4673  ;;  %v2685_v42 = vsub.f32 %v6236_v11, %v4672_v5 }
 0x616   :  { %v4676_v3 = vpop.eup %4675 }
 0x617   :  { %v4678_v51 = vpop.eup %4677  ;;  %v2687_v8 = vmul.f32 %v4674_v13, %v2685_v42  ;;  %v2686_v41 = vsub.f32 %v6243_v38, %v4676_v3  ;;  %v6455_v13 = vld [vmem:[#allocation9 + $0x48] ss:$12 sps:$4 sm:$0xff]   ;;  %v6458_v42 = vld [vmem:[#allocation9 + $0x50] ss:$12 sps:$4 sm:$0xff]  }
 0x618   :  { %v4680_v4 = vpop.eup %4679 }
 0x619   :  { %v2688_v30 = vmul.f32 %v4678_v51, %v2686_v41  ;;  %v2699_v53 = vadd.f32 1.0, %v4680_v4  ;;  %v2689_v47 = vadd.f32 %v4672_v5, %v2687_v8  ;;  %v6451_v5 = vld [vmem:[#allocation9 + $0x4c] ss:$12 sps:$4 sm:$0xff]   ;;  %v6468_v51 = vld [vmem:[#allocation9 + $0x68] ss:$12 sps:$4 sm:$0xff]  }
 0x61a   :  { %v4682_v24 = vpop.eup %4681  ;;  %v6471_v8 = vld [vmem:[#allocation9 + $0x7c] ss:$12 sps:$4 sm:$0xff]  }
 0x61b   :  { %4685 = vrcp.f32 %v2699_v53  ;;  %v2700_v40 = vadd.f32 1.0, %v4682_v24  ;;  %v2690_v2 = vadd.f32 %v4676_v3, %v2688_v30  ;;  %v6401_v54 = vsel %vm2455_vm6, %v2689_v47, %v6236_v11  ;;  %v4684_v26 = vpop.eup %4683  ;;  %v6461_v3 = vld [vmem:[#allocation9 + $0x64] ss:$12 sps:$4 sm:$0xff]   ;;  %v6479_v53 = vld [vmem:[#allocation9 + $0x80] ss:$12 sps:$4 sm:$0xff]  }
 0x61c   :  { %4687 = vpow2.f32 %v3780_v45  ;;  %v2737_v0 = vsel %vm2455_vm6, %v2689_v47, 0.0  ;;  %v2713_v39 = vadd.f32 1.0, %v4684_v26  ;;  %v6476_v30 = vld [vmem:[#allocation9 + $0x78] ss:$12 sps:$4 sm:$0xff]   ;;  %v6482_v24 = vld [vmem:[#allocation9 + $0x94] ss:$12 sps:$4 sm:$0xff]  }
 0x61d   :  { %4689 = vrcp.f32 %v2700_v40  ;;  %v6408_v20 = vsel %vm2456_vm2, %v2690_v2, %v6243_v38  ;;  %v2738_v25 = vsel %vm2456_vm2, %v2690_v2, 0.0  ;;  %v6413_v27 = vadd.f32 %v2737_v0, %v6306_v31  ;;  %v6424_v38 = vld [vmem:[#allocation9 + $0x1c] ss:$12 sps:$4 sm:$0xff]   ;;  %v6490_v26 = vld [vmem:[#allocation9 + $0x98] ss:$12 sps:$4 sm:$0xff]  }
 0x61e   :  { %v6416_v23 = vadd.f32 %v2738_v25, %v6323_v55  ;;  %v2745_v11 = vpack.c.bf16 %v6408_v20, %v6401_v54  ;;  %v2719_v31 = vadd.f32 %v6265_v57, %v2630_v59 }
 0x620   :  { %2779 = vmatmul.mubr.bf16.vlgmr.msra.gmra.mrb[20].mxu0 %v2745_v11  ;;  %4166 = vmatmul.mubr.bf16.vlgmr.msra.gmra.mrb[76].mxu1 %v2745_v11  ;;  %v6487_v11 = vld [vmem:[#allocation9 + $0x90] ss:$12 sps:$4 sm:$0xff]  }
 0x621   :  { %2832 = vmatpush1.bf16.msra.mxu0 %v6420_v36  ;;  %4170 = vmatpush3.bf16.msra.mxu1 %v6103_v14  ;;  %v6435_v14 = vld [vmem:[#allocation9 + $0x20] ss:$12 sps:$4 sm:$0xff]  }
 0x622   :  { %2833 = vmatprep.subr.bf16.mxu0 %v6424_v38  ;;  %4171 = vmatprep.subr.bf16.mxu1 %v7030_v60 }
 0x623   :  { %2863 = vmatprep.mubr.bf16.mxu0 %v7031_v48  ;;  %4185 = vmatprep.mubr.msk.bf16.mxu1 %vm5049_vm8, %v7030_v60 }
 0x625   :  { %v4686_v55 = vpop.eup %4685  ;;  %2834 = vmatpush1.bf16.msra.mxu0 %v6432_v19  ;;  %4172 = vmatpush3.bf16.msra.mxu1 %v6435_v14 }
 0x626   :  { %v4688_v33 = vpop.eup %4687  ;;  %v2721_v37 = vmul.f32 %v4686_v55, %v2719_v31  ;;  %2835 = vmatprep.subr.bf16.mxu0 %v6439_v10  ;;  %4173 = vmatprep.subr.bf16.mxu1 %v7030_v60  ;;  %v6493_v55 = vld [vmem:[#allocation9 + $0xac] ss:$12 sps:$4 sm:$0xff]  }
 0x627   :  { %v4690_v59 = vpop.eup %4689  ;;  %v2714_v44 = vadd.f32 1.0, %v4688_v33 }
 0x628   :  { %v2723_v28 = vadd.f32 %v2721_v37, %v7124_v35  ;;  %v2722_v29 = vmul.f32 %v4690_v59, %v2720_v50  ;;  %v6502_v59 = vld [vmem:[#allocation9 + $0xa8] ss:$12 sps:$4 sm:$0xff]  }
 0x629   :  { %2836 = vmatpush1.bf16.msra.mxu0 %v6444_v15  ;;  %4174 = vmatpush3.bf16.msra.mxu1 %v6447_v21 }
 0x62a   :  { %4691 = vtanh.f32 %v2723_v28  ;;  %v2724_v16 = vadd.f32 %v2722_v29, %v7125_v61  ;;  %2837 = vmatprep.subr.bf16.mxu0 %v6451_v5  ;;  %4175 = vmatprep.subr.bf16.mxu1 %v7030_v60 }
 0x62b   :  { %4693 = vrcp.f32 %v2713_v39  ;;  %v6505_v39 = vld [vmem:[#allocation9 + $0xb0] ss:$12 sps:$4 sm:$0xff]  }
 0x62c   :  { %4695 = vtanh.f32 %v2724_v16  ;;  %v6550_v16 = vld [vmem:[#allocation8 + $0x4c] ss:$12 sps:$4 sm:$0xff]  }
 0x62d   :  { %2838 = vmatpush1.bf16.msra.mxu0 %v6455_v13  ;;  %4176 = vmatpush3.bf16.msra.mxu1 %v6458_v42  ;;  %4697 = vrcp.f32 %v2714_v44  ;;  %v6554_v44 = vld [vmem:[#allocation8 + $0x48] ss:$12 sps:$4 sm:$0xff]  }
 0x62e   :  { %2839 = vmatprep.subr.bf16.mxu0 %v6461_v3  ;;  %4177 = vmatprep.subr.bf16.mxu1 %v7030_v60  ;;  %7126 = vst [vmem:[#allocation75_spill] sm:$0xff] %v6554_v44 }
 0x631   :  { %2840 = vmatpush1.bf16.msra.mxu0 %v6465_v32  ;;  %4178 = vmatpush3.bf16.msra.mxu1 %v6468_v51 }
 0x632   :  { %2841 = vmatprep.subr.bf16.mxu0 %v6471_v8  ;;  %4179 = vmatprep.subr.bf16.mxu1 %v7030_v60 }
 0x634   :  { %v4692_v41 = vpop.eup %4691 }
 0x635   :  { %v4694_v4 = vpop.eup %4693  ;;  %v2727_v45 = vsub.f32 %v6313_v7, %v4692_v41  ;;  %2842 = vmatpush1.bf16.msra.mxu0 %v6476_v30  ;;  %4180 = vmatpush3.bf16.msra.mxu1 %v6479_v53 }
 0x636   :  { %v4696_v47 = vpop.eup %4695  ;;  %2843 = vmatprep.subr.bf16.mxu0 %v6482_v24  ;;  %4181 = vmatprep.subr.bf16.mxu1 %v7030_v60 }
 0x637   :  { %v2729_v40 = vmul.f32 %v4694_v4, %v2727_v45  ;;  %v2728_v2 = vsub.f32 %v6318_v62, %v4696_v47  ;;  %v4698_v0 = vpop.eup %4697  ;;  %v6562_v4 = vld [vmem:[#allocation8 + $0x60] ss:$12 sps:$4 sm:$0xff]   ;;  %v6566_v45 = vld [vmem:[#allocation8 + $0x7c] ss:$12 sps:$4 sm:$0xff]  }
 0x638   :  { %7128 = vst [vmem:[#allocation74_spill] sm:$0xff] %v6562_v4  ;;  %7129 = vst [vmem:[#allocation16_spill] sm:$0xff] %v6566_v45 }
 0x639   :  { %v2730_v25 = vmul.f32 %v4698_v0, %v2728_v2  ;;  %2844 = vmatpush1.bf16.msra.mxu0 %v6487_v11  ;;  %4182 = vmatpush3.bf16.msra.mxu1 %v6490_v26  ;;  %v2731_v31 = vadd.f32 %v4692_v41, %v2729_v40  ;;  %v6558_v41 = vld [vmem:[#allocation8 + $0x64] ss:$12 sps:$4 sm:$0xff]   ;;  %v6574_v40 = vld [vmem:[#allocation8 + $0x94] ss:$12 sps:$4 sm:$0xff]   ;;  %v6582_v0 = vld [vmem:[#allocation8 + $0xac] ss:$12 sps:$4 sm:$0xff]  }
 0x63a   :  { %2845 = vmatprep.subr.bf16.mxu0 %v6493_v55  ;;  %4183 = vmatprep.subr.bf16.mxu1 %v7030_v60  ;;  %7127 = vst [vmem:[#allocation84_spill] sm:$0xff] %v6558_v41  ;;  %7131 = vst [vmem:[#allocation18_spill] sm:$0xff] %v6574_v40  ;;  %v6578_v2 = vld [vmem:[#allocation8 + $0x90] ss:$12 sps:$4 sm:$0xff]  }
 0x63b   :  { %v2732_v33 = vadd.f32 %v4696_v47, %v2730_v25  ;;  %v2741_v37 = vsel %vm2443_vm0, %v2731_v31, 0.0  ;;  %v6511_v35 = vsel %vm2443_vm0, %v2731_v31, %v6313_v7  ;;  %v6538_v7 = vld [vmem:[#allocation8 + $0x18] ss:$12 sps:$4 sm:$0xff]   ;;  %7132 = vst [vmem:[#allocation19_spill] sm:$0xff] %v6578_v2  ;;  %7133 = vst [vmem:[#allocation31_spill] sm:$0xff] %v6582_v0 }
 0x63c   :  { %v6500_v50 = vadd.f32 %v2741_v37, %v6413_v27  ;;  %v6570_v47 = vld [vmem:[#allocation8 + $0x78] ss:$12 sps:$4 sm:$0xff]   ;;  %v6586_v25 = vld [vmem:[#allocation8 + $0xa8] ss:$12 sps:$4 sm:$0xff]  }
 0x63d   :  { %2846 = vmatpush1.bf16.msra.mxu0 %v6502_v59  ;;  %4184 = vmatpush3.bf16.msra.mxu1 %v6505_v39  ;;  %v6516_v28 = vsel %vm2444_vm3, %v2732_v33, %v6318_v62  ;;  %v2742_v27 = vsel %vm2444_vm3, %v2732_v33, 0.0  ;;  %v6542_v62 = vld [vmem:[#allocation8 + $0x34] ss:$12 sps:$4 sm:$0xff]   ;;  %7130 = vst [vmem:[#allocation17_spill] sm:$0xff] %v6570_v47  ;;  %7134 = vst [vmem:[#allocation33_spill] sm:$0xff] %v6586_v25 }
 0x63e   :  { %v6521_v29 = vadd.f32 %v2742_v27, %v6416_v23  ;;  %v2830_v61 = vpack.c.bf16 %v6516_v28, %v6511_v35  ;;  %3024 = vmatprep.subr.bf16.mxu0 %v6327_v52  ;;  %4189 = vmatprep.subr.bf16.mxu1 %v7030_v60  ;;  %v6546_v23 = vld [vmem:[#allocation8 + $0x30] ss:$12 sps:$4 sm:$0xff]  }
 0x640   :  { %2864 = vmatmul.mubr.bf16.vlgmr.msra.gmra.mrb[80].mxu0 %v2830_v61  ;;  %4186 = vmatmul.mubr.bf16.vlgmr.msra.gmra.mrb[80].mxu1 %v2830_v61 }
 0x641   :  { %3025 = vmatpush1.bf16.msra.mxu0 %v6527_v12  ;;  %4190 = vmatpush3.bf16.msra.mxu1 %v6332_v58 }
 0x642   :  { %3026 = vmatprep.subr.bf16.mxu0 %v6531_v49  ;;  %4191 = vmatprep.subr.bf16.mxu1 %v7030_v60 }
 0x643   :  { %3056 = vmatprep.mubr.bf16.mxu0 %v7031_v48  ;;  %4205 = vmatprep.mubr.msk.bf16.mxu1 %vm5049_vm8, %v7030_v60 }
 0x645   :  { %3027 = vmatpush1.bf16.msra.mxu0 %v6538_v7  ;;  %4192 = vmatpush3.bf16.msra.mxu1 %v6341_v56 }
 0x646   :  { %3028 = vmatprep.subr.bf16.mxu0 %v6542_v62  ;;  %4193 = vmatprep.subr.bf16.mxu1 %v7030_v60 }
 0x649   :  { %3029 = vmatpush1.bf16.msra.mxu0 %v6546_v23  ;;  %4194 = vmatpush3.bf16.msra.mxu1 %v6347_v1 }
 0x64a   :  { %3030 = vmatprep.subr.bf16.mxu0 %v6550_v16  ;;  %4195 = vmatprep.subr.bf16.mxu1 %v7030_v60 }
 0x64d   :  { %3031 = vmatpush1.bf16.msra.mxu0 %v6554_v44  ;;  %4196 = vmatpush3.bf16.msra.mxu1 %v6353_v34  ;;  %v7138_v44 = vld [vmem:[#allocation57_spill] sm:$0xff] }
 0x64e   :  { %3032 = vmatprep.subr.bf16.mxu0 %v6558_v41  ;;  %4197 = vmatprep.subr.bf16.mxu1 %v7030_v60 }
 0x651   :  { %3033 = vmatpush1.bf16.msra.mxu0 %v6562_v4  ;;  %4198 = vmatpush3.bf16.msra.mxu1 %v6359_v6 }
 0x652   :  { %3034 = vmatprep.subr.bf16.mxu0 %v6566_v45  ;;  %4199 = vmatprep.subr.bf16.mxu1 %v7030_v60 }
 0x655   :  { %3035 = vmatpush1.bf16.msra.mxu0 %v6570_v47  ;;  %4200 = vmatpush3.bf16.msra.mxu1 %v6365_v46 }
 0x656   :  { %3036 = vmatprep.subr.bf16.mxu0 %v6574_v40  ;;  %4201 = vmatprep.subr.bf16.mxu1 %v7030_v60 }
 0x659   :  { %3037 = vmatpush1.bf16.msra.mxu0 %v6578_v2  ;;  %4202 = vmatpush3.bf16.msra.mxu1 %v6371_v43 }
 0x65a   :  { %3038 = vmatprep.subr.bf16.mxu0 %v6582_v0  ;;  %4203 = vmatprep.subr.bf16.mxu1 %v7030_v60 }
 0x65d   :  { %3039 = vmatpush1.bf16.msra.mxu0 %v6586_v25  ;;  %4204 = vmatpush3.bf16.msra.mxu1 %v6377_v9 }
 0x65e   :  { %3109 = vmatprep.subr.bf16.mxu0 %v6380_v18  ;;  %4209 = vmatprep.subr.bf16.mxu1 %v7030_v60 }
 0x6f3   :  { %v2780_v31 = vpop.f32.mrb[20].mxu0  ;;  %v2823_v33 = vpop.f32.mrb[76].mxu1 }
 0x6f4   :  { %v4289_v37 = vadd.f32 %v2780_v31, %v7115_v22  ;;  %v2782_v27 = vpop.f32.mrb[21].mxu0  ;;  %v4167_v61 = vpop.f32.mrb[77].mxu1 }
 0x6f5   :  { %v2784_v43 = vpop.f32.mrb[22].mxu0  ;;  %v2826_v0 = vpop.f32.mrb[78].mxu1  ;;  %v4290_v18 = vadd.f32 %v2782_v27, %v7116_v17 }
 0x6f6   :  { %v3781_v2 = vmul.f32 -1.442695, %v4289_v37  ;;  %v4291_v40 = vadd.f32 %v2784_v43, %v7115_v22  ;;  %v2786_v46 = vpop.f32.mrb[23].mxu0  ;;  %v4168_v47 = vpop.f32.mrb[79].mxu1  ;;  %v2956_v37 = vadd.f32 %v7117_v63, %v2826_v0 }
 0x6f7   :  { %v4292_v9 = vadd.f32 %v2786_v46, %v7116_v17  ;;  %v3783_v45 = vmul.f32 -1.442695, %v4290_v18  ;;  %v2955_v47 = vadd.f32 %v7117_v63, %v2823_v33  ;;  %v7135_v18 = vld [vmem:[#allocation39_spill] sm:$0xff] }
 0x6f8   :  { %4699 = vpow2.f32 %v3781_v2  ;;  %v3782_v25 = vmul.f32 -1.442695, %v4291_v40 }
 0x6f9   :  { %v3784_v4 = vmul.f32 -1.442695, %v4292_v9 }
 0x6fa   :  { %4701 = vpow2.f32 %v3782_v25 }
 0x6fb   :  { %4703 = vpow2.f32 %v3783_v45 }
 0x702   :  { %v4700_v6 = vpop.eup %4699 }
 0x703   :  { %v2935_v31 = vadd.f32 1.0, %v4700_v6 }
 0x704   :  { %v4702_v41 = vpop.eup %4701 }
 0x705   :  { %4705 = vrcp.f32 %v2935_v31  ;;  %v2936_v61 = vadd.f32 1.0, %v4702_v41  ;;  %v4704_v43 = vpop.eup %4703  ;;  %v7136_v41 = vld [vmem:[#allocation41_spill] sm:$0xff]  ;;  %v7137_v31 = vld [vmem:[#allocation28_spill] sm:$0xff] }
 0x706   :  { %4707 = vpow2.f32 %v3784_v4  ;;  %v2949_v46 = vadd.f32 1.0, %v4704_v43  ;;  %v7139_v43 = vld [vmem:[#allocation30_spill] sm:$0xff] }
 0x707   :  { %4709 = vrcp.f32 %v2936_v61 }
 0x70f   :  { %v4706_v2 = vpop.eup %4705 }
 0x710   :  { %v4708_v40 = vpop.eup %4707  ;;  %v2957_v25 = vmul.f32 %v4706_v2, %v2955_v47 }
 0x711   :  { %v4710_v27 = vpop.eup %4709  ;;  %v2950_v6 = vadd.f32 1.0, %v4708_v40 }
 0x712   :  { %v2959_v17 = vadd.f32 %v2957_v25, %v7135_v18  ;;  %v2958_v9 = vmul.f32 %v4710_v27, %v2956_v37  ;;  %v7140_v27 = vld [vmem:[#allocation59_spill] sm:$0xff] }
 0x713   :  { %v2865_v22 = vpop.f32.mrb[80].mxu0  ;;  %v2908_v45 = vpop.f32.mrb[80].mxu1 }
 0x714   :  { %4711 = vtanh.f32 %v2959_v17  ;;  %v2960_v4 = vadd.f32 %v2958_v9, %v7136_v41  ;;  %v2969_v61 = vadd.f32 %v2865_v22, %v7137_v31  ;;  %v2867_v34 = vpop.f32.mrb[81].mxu0  ;;  %v4187_v33 = vpop.f32.mrb[81].mxu1 }
 0x715   :  { %4713 = vrcp.f32 %v2949_v46  ;;  %v2983_v47 = vadd.f32 %v2867_v34, %v7138_v44  ;;  %v2869_v2 = vpop.f32.mrb[82].mxu0  ;;  %v2911_v63 = vpop.f32.mrb[82].mxu1 }
 0x716   :  { %4715 = vtanh.f32 %v2960_v4  ;;  %v3785_v0 = vmul.f32 -1.442695, %v2969_v61  ;;  %v2970_v25 = vadd.f32 %v2869_v2, %v7139_v43  ;;  %v2871_v37 = vpop.f32.mrb[83].mxu0  ;;  %v4188_v40 = vpop.f32.mrb[83].mxu1 }
 0x717   :  { %4717 = vrcp.f32 %v2950_v6  ;;  %v2984_v17 = vadd.f32 %v2871_v37, %v7140_v27  ;;  %v3787_v34 = vmul.f32 -1.442695, %v2983_v47 }
 0x718   :  { %4719 = vpow2.f32 %v3785_v0  ;;  %v3786_v18 = vmul.f32 -1.442695, %v2970_v25 }
 0x719   :  { %v3788_v33 = vmul.f32 -1.442695, %v2984_v17 }
 0x71a   :  { %4721 = vpow2.f32 %v3786_v18 }
 0x71b   :  { %4723 = vpow2.f32 %v3787_v34 }
 0x71e   :  { %v4712_v22 = vpop.eup %4711 }
 0x71f   :  { %v4714_v9 = vpop.eup %4713  ;;  %v2963_v46 = vsub.f32 %v6401_v54, %v4712_v22 }
 0x720   :  { %v4716_v41 = vpop.eup %4715 }
 0x721   :  { %v4718_v44 = vpop.eup %4717  ;;  %v2965_v31 = vmul.f32 %v4714_v9, %v2963_v46  ;;  %v2964_v4 = vsub.f32 %v6408_v20, %v4716_v41 }
 0x722   :  { %v4720_v61 = vpop.eup %4719 }
 0x723   :  { %v2966_v2 = vmul.f32 %v4718_v44, %v2964_v4  ;;  %v2977_v43 = vadd.f32 1.0, %v4720_v61  ;;  %v2967_v6 = vadd.f32 %v4712_v22, %v2965_v31  ;;  %v2998_v31 = vadd.f32 %v6265_v57, %v2911_v63 }
 0x724   :  { %v4722_v40 = vpop.eup %4721 }
 0x725   :  { %4725 = vrcp.f32 %v2977_v43  ;;  %v2978_v0 = vadd.f32 1.0, %v4722_v40  ;;  %v2968_v25 = vadd.f32 %v4716_v41, %v2966_v2  ;;  %v6609_v27 = vsel %vm2147_vm14, %v2967_v6, %v6401_v54  ;;  %v6629_v41 = vld [vmem:[#allocation9 + $0x8] ss:$12 sps:$4 sm:$0xff]  }
 0x726   :  { %4727 = vpow2.f32 %v3788_v33  ;;  %v3015_v47 = vsel %vm2147_vm14, %v2967_v6, 0.0  ;;  %v7143_v33 = vld [vmem:[#allocation58_spill] sm:$0xff] }
 0x727   :  { %4729 = vrcp.f32 %v2978_v0  ;;  %v6616_v18 = vsel %vm2148_vm15, %v2968_v25, %v6408_v20  ;;  %v3016_v22 = vsel %vm2148_vm15, %v2968_v25, 0.0  ;;  %v6621_v9 = vadd.f32 %v3015_v47, %v6500_v50  ;;  %v4724_v20 = vpop.eup %4723 }
 0x728   :  { %v6624_v46 = vadd.f32 %v3016_v22, %v6521_v29  ;;  %v3023_v54 = vpack.c.bf16 %v6616_v18, %v6609_v27  ;;  %v2997_v50 = vadd.f32 %v6265_v57, %v2908_v45  ;;  %v2991_v61 = vadd.f32 1.0, %v4724_v20  ;;  %v7144_v45 = vld [vmem:[#allocation60_spill] sm:$0xff] }
 0x72a   :  { %3057 = vmatmul.mubr.bf16.vlgmr.msra.gmra.mrb[24].mxu0 %v3023_v54  ;;  %4206 = vmatmul.mubr.bf16.vlgmr.msra.gmra.mrb[84].mxu1 %v3023_v54 }
 0x72b   :  { %3110 = vmatpush1.bf16.msra.mxu0 %v6420_v36  ;;  %4210 = vmatpush3.bf16.msra.mxu1 %v6629_v41 }
 0x72c   :  { %3111 = vmatprep.subr.bf16.mxu0 %v6424_v38  ;;  %4211 = vmatprep.subr.bf16.mxu1 %v7030_v60 }
 0x72d   :  { %3141 = vmatprep.mubr.bf16.mxu0 %v7031_v48  ;;  %4225 = vmatprep.mubr.msk.bf16.mxu1 %vm5049_vm8, %v7030_v60 }
 0x72f   :  { %v4726_v29 = vpop.eup %4725  ;;  %3112 = vmatpush1.bf16.msra.mxu0 %v6432_v19  ;;  %4212 = vmatpush3.bf16.msra.mxu1 %v6435_v14 }
 0x730   :  { %v4728_v34 = vpop.eup %4727  ;;  %v2999_v44 = vmul.f32 %v4726_v29, %v2997_v50  ;;  %3113 = vmatprep.subr.bf16.mxu0 %v6439_v10  ;;  %4213 = vmatprep.subr.bf16.mxu1 %v7030_v60  ;;  %v7163_v50 = vld [vmem:[#allocation78_spill] sm:$0xff] }
 0x731   :  { %v4730_v4 = vpop.eup %4729  ;;  %v2992_v40 = vadd.f32 1.0, %v4728_v34 }
 0x732   :  { %v3001_v2 = vadd.f32 %v2999_v44, %v7143_v33  ;;  %v3000_v43 = vmul.f32 %v4730_v4, %v2998_v31 }
 0x733   :  { %3114 = vmatpush1.bf16.msra.mxu0 %v6444_v15  ;;  %4214 = vmatpush3.bf16.msra.mxu1 %v6447_v21 }
 0x734   :  { %4731 = vtanh.f32 %v3001_v2  ;;  %v3002_v6 = vadd.f32 %v3000_v43, %v7144_v45  ;;  %3115 = vmatprep.subr.bf16.mxu0 %v6451_v5  ;;  %4215 = vmatprep.subr.bf16.mxu1 %v7030_v60  ;;  %v7160_v2 = vld [vmem:[#allocation83_spill] sm:$0xff]  ;;  %v7161_v43 = vld [vmem:[#allocation46_spill] sm:$0xff] }
 0x735   :  { %4733 = vrcp.f32 %v2991_v61 }
 0x736   :  { %4735 = vtanh.f32 %v3002_v6 }
 0x737   :  { %3116 = vmatpush1.bf16.msra.mxu0 %v6455_v13  ;;  %4216 = vmatpush3.bf16.msra.mxu1 %v6458_v42  ;;  %4737 = vrcp.f32 %v2992_v40  ;;  %v7162_v40 = vld [vmem:[#allocation77_spill] sm:$0xff] }
 0x738   :  { %3117 = vmatprep.subr.bf16.mxu0 %v6461_v3  ;;  %4217 = vmatprep.subr.bf16.mxu1 %v7030_v60 }
 0x73b   :  { %3118 = vmatpush1.bf16.msra.mxu0 %v6465_v32  ;;  %4218 = vmatpush3.bf16.msra.mxu1 %v6468_v51 }
 0x73c   :  { %3119 = vmatprep.subr.bf16.mxu0 %v6471_v8  ;;  %4219 = vmatprep.subr.bf16.mxu1 %v7030_v60 }
 0x73e   :  { %v4732_v57 = vpop.eup %4731 }
 0x73f   :  { %v4734_v63 = vpop.eup %4733  ;;  %v3005_v0 = vsub.f32 %v6511_v35, %v4732_v57  ;;  %3120 = vmatpush1.bf16.msra.mxu0 %v6476_v30  ;;  %4220 = vmatpush3.bf16.msra.mxu1 %v6479_v53 }
 0x740   :  { %v4736_v25 = vpop.eup %4735  ;;  %3121 = vmatprep.subr.bf16.mxu0 %v6482_v24  ;;  %4221 = vmatprep.subr.bf16.mxu1 %v7030_v60 }
 0x741   :  { %v3007_v37 = vmul.f32 %v4734_v63, %v3005_v0  ;;  %v3006_v47 = vsub.f32 %v6516_v28, %v4736_v25  ;;  %v4738_v17 = vpop.eup %4737 }
 0x743   :  { %v3008_v22 = vmul.f32 %v4738_v17, %v3006_v47  ;;  %3122 = vmatpush1.bf16.msra.mxu0 %v6487_v11  ;;  %4222 = vmatpush3.bf16.msra.mxu1 %v6490_v26  ;;  %v3009_v54 = vadd.f32 %v4732_v57, %v3007_v37 }
 0x744   :  { %3123 = vmatprep.subr.bf16.mxu0 %v6493_v55  ;;  %4223 = vmatprep.subr.bf16.mxu1 %v7030_v60 }
 0x745   :  { %v3010_v20 = vadd.f32 %v4736_v25, %v3008_v22  ;;  %v3019_v29 = vsel %vm2135_vm12, %v3009_v54, 0.0  ;;  %v6677_v44 = vsel %vm2135_vm12, %v3009_v54, %v6511_v35  ;;  %v7149_v35 = vld [vmem:[#allocation84_spill] sm:$0xff] }
 0x746   :  { %v6670_v34 = vadd.f32 %v3019_v29, %v6621_v9 }
 0x747   :  { %3124 = vmatpush1.bf16.msra.mxu0 %v6502_v59  ;;  %4224 = vmatpush3.bf16.msra.mxu1 %v6505_v39  ;;  %v6682_v4 = vsel %vm2136_vm13, %v3010_v20, %v6516_v28  ;;  %v3020_v61 = vsel %vm2136_vm13, %v3010_v20, 0.0  ;;  %v7151_v28 = vld [vmem:[#allocation70_spill] sm:$0xff] }
 0x748   :  { %v6687_v9 = vadd.f32 %v3020_v61, %v6624_v46  ;;  %v3108_v33 = vpack.c.bf16 %v6682_v4, %v6677_v44  ;;  %3302 = vmatprep.subr.bf16.mxu0 %v6327_v52  ;;  %4229 = vmatprep.subr.bf16.mxu1 %v7030_v60  ;;  %v7147_v52 = vld [vmem:[#allocation75_spill] sm:$0xff]  ;;  %v7159_v46 = vld [vmem:[#allocation33_spill] sm:$0xff] }
 0x74a   :  { %3142 = vmatmul.mubr.bf16.vlgmr.msra.gmra.mrb[84].mxu0 %v3108_v33  ;;  %4226 = vmatmul.mubr.bf16.vlgmr.msra.gmra.mrb[88].mxu1 %v3108_v33 }
 0x74b   :  { %3303 = vmatpush1.bf16.msra.mxu0 %v6527_v12  ;;  %4230 = vmatpush3.bf16.msra.mxu1 %v6332_v58  ;;  %v7148_v58 = vld [vmem:[#allocation71_spill] sm:$0xff]  ;;  %v7152_v12 = vld [vmem:[#allocation16_spill] sm:$0xff] }
 0x74c   :  { %3304 = vmatprep.subr.bf16.mxu0 %v6531_v49  ;;  %4231 = vmatprep.subr.bf16.mxu1 %v7030_v60  ;;  %v7154_v49 = vld [vmem:[#allocation72_spill] sm:$0xff] }
 0x74d   :  { %3334 = vmatprep.mubr.bf16.mxu0 %v7031_v48  ;;  %4245 = vmatprep.mubr.msk.bf16.mxu1 %vm5049_vm8, %v7030_v60 }
 0x74f   :  { %3305 = vmatpush1.bf16.msra.mxu0 %v6538_v7  ;;  %4232 = vmatpush3.bf16.msra.mxu1 %v6341_v56  ;;  %v7150_v56 = vld [vmem:[#allocation74_spill] sm:$0xff] }
 0x750   :  { %3306 = vmatprep.subr.bf16.mxu0 %v6542_v62  ;;  %4233 = vmatprep.subr.bf16.mxu1 %v7030_v60  ;;  %v7155_v7 = vld [vmem:[#allocation18_spill] sm:$0xff]  ;;  %v7156_v62 = vld [vmem:[#allocation19_spill] sm:$0xff] }
 0x753   :  { %3307 = vmatpush1.bf16.msra.mxu0 %v6546_v23  ;;  %4234 = vmatpush3.bf16.msra.mxu1 %v6347_v1  ;;  %v7153_v1 = vld [vmem:[#allocation17_spill] sm:$0xff] }
 0x754   :  { %3308 = vmatprep.subr.bf16.mxu0 %v6550_v16  ;;  %4235 = vmatprep.subr.bf16.mxu1 %v7030_v60  ;;  %v7157_v23 = vld [vmem:[#allocation73_spill] sm:$0xff]  ;;  %v7158_v16 = vld [vmem:[#allocation31_spill] sm:$0xff] }
 0x757   :  { %3309 = vmatpush1.bf16.msra.mxu0 %v7147_v52  ;;  %4236 = vmatpush3.bf16.msra.mxu1 %v7148_v58 }
 0x758   :  { %3310 = vmatprep.subr.bf16.mxu0 %v7149_v35  ;;  %4237 = vmatprep.subr.bf16.mxu1 %v7030_v60 }
 0x75b   :  { %3311 = vmatpush1.bf16.msra.mxu0 %v7150_v56  ;;  %4238 = vmatpush3.bf16.msra.mxu1 %v7151_v28 }
 0x75c   :  { %3312 = vmatprep.subr.bf16.mxu0 %v7152_v12  ;;  %4239 = vmatprep.subr.bf16.mxu1 %v7030_v60  ;;  %v6735_v12 = vld [vmem:[%s6883_s6] ss:$0 sm:$0xff] }
 0x75f   :  { %3313 = vmatpush1.bf16.msra.mxu0 %v7153_v1  ;;  %4240 = vmatpush3.bf16.msra.mxu1 %v7154_v49 }
 0x760   :  { %3314 = vmatprep.subr.bf16.mxu0 %v7155_v7  ;;  %4241 = vmatprep.subr.bf16.mxu1 %v7030_v60 }
 0x763   :  { %3315 = vmatpush1.bf16.msra.mxu0 %v7156_v62  ;;  %4242 = vmatpush3.bf16.msra.mxu1 %v7157_v23 }
 0x764   :  { %3316 = vmatprep.subr.bf16.mxu0 %v7158_v16  ;;  %4243 = vmatprep.subr.bf16.mxu1 %v7030_v60 }
 0x767   :  { %3317 = vmatpush1.bf16.msra.mxu0 %v7159_v46  ;;  %4244 = vmatpush3.bf16.msra.mxu1 %v7160_v2  ;;  %v7164_v2 = vld [vmem:[#allocation43_spill] sm:$0xff] }
 0x768   :  { %3387 = vmatprep.subr.bf16.mxu0 %v7161_v43  ;;  %4249 = vmatprep.subr.bf16.mxu1 %v7030_v60 }
 0x7fd   :  { %v3058_v45 = vpop.f32.mrb[24].mxu0  ;;  %v3101_v6 = vpop.f32.mrb[84].mxu1 }
 0x7fe   :  { %v4293_v57 = vadd.f32 %v3058_v45, %v7162_v40  ;;  %v3060_v63 = vpop.f32.mrb[25].mxu0  ;;  %v4207_v0 = vpop.f32.mrb[85].mxu1  ;;  %v3233_v1 = vadd.f32 %v6735_v12, %v3101_v6 }
 0x7ff   :  { %v3062_v25 = vpop.f32.mrb[26].mxu0  ;;  %v3104_v37 = vpop.f32.mrb[86].mxu1  ;;  %v4294_v29 = vadd.f32 %v3060_v63, %v7163_v50 }
 0x800   :  { %v3789_v47 = vmul.f32 -1.442695, %v4293_v57  ;;  %v4295_v17 = vadd.f32 %v3062_v25, %v7162_v40  ;;  %v3064_v22 = vpop.f32.mrb[27].mxu0  ;;  %v4208_v54 = vpop.f32.mrb[87].mxu1  ;;  %v3234_v23 = vadd.f32 %v6735_v12, %v3104_v37  ;;  %v7165_v25 = vld [vmem:[#allocation45_spill] sm:$0xff] }
 0x801   :  { %v4296_v31 = vadd.f32 %v3064_v22, %v7163_v50  ;;  %v3791_v61 = vmul.f32 -1.442695, %v4294_v29 }
 0x802   :  { %4739 = vpow2.f32 %v3789_v47  ;;  %v3790_v20 = vmul.f32 -1.442695, %v4295_v17  ;;  %v7166_v17 = vld [vmem:[#allocation24_spill] sm:$0xff] }
 0x803   :  { %v3792_v52 = vmul.f32 -1.442695, %v4296_v31 }
 0x804   :  { %4741 = vpow2.f32 %v3790_v20  ;;  %v7167_v20 = vld [vmem:[#allocation53_spill] sm:$0xff] }
 0x805   :  { %4743 = vpow2.f32 %v3791_v61 }
 0x80c   :  { %v4740_v33 = vpop.eup %4739 }
 0x80d   :  { %v3213_v58 = vadd.f32 1.0, %v4740_v33  ;;  %v7168_v33 = vld [vmem:[#allocation26_spill] sm:$0xff] }
 0x80e   :  { %v4742_v35 = vpop.eup %4741 }
 0x80f   :  { %4745 = vrcp.f32 %v3213_v58  ;;  %v3214_v56 = vadd.f32 1.0, %v4742_v35  ;;  %v4744_v28 = vpop.eup %4743 }
 0x810   :  { %4747 = vpow2.f32 %v3792_v52  ;;  %v3227_v46 = vadd.f32 1.0, %v4744_v28 }
 0x811   :  { %4749 = vrcp.f32 %v3214_v56  ;;  %v7169_v56 = vld [vmem:[#allocation55_spill] sm:$0xff] }
 0x819   :  { %v4746_v49 = vpop.eup %4745 }
 0x81a   :  { %v4748_v7 = vpop.eup %4747  ;;  %v3235_v62 = vmul.f32 %v4746_v49, %v3233_v1 }
 0x81b   :  { %v4750_v16 = vpop.eup %4749  ;;  %v3228_v57 = vadd.f32 1.0, %v4748_v7 }
 0x81c   :  { %v3237_v43 = vadd.f32 %v3235_v62, %v7164_v2  ;;  %v3236_v45 = vmul.f32 %v4750_v16, %v3234_v23 }
 0x81d   :  { %v3143_v63 = vpop.f32.mrb[84].mxu0  ;;  %v3186_v0 = vpop.f32.mrb[88].mxu1 }
 0x81e   :  { %4751 = vtanh.f32 %v3237_v43  ;;  %v3238_v47 = vadd.f32 %v3236_v45, %v7165_v25  ;;  %v3247_v22 = vadd.f32 %v3143_v63, %v7166_v17  ;;  %v3145_v54 = vpop.f32.mrb[85].mxu0  ;;  %v4227_v6 = vpop.f32.mrb[89].mxu1 }
 0x81f   :  { %4753 = vrcp.f32 %v3227_v46  ;;  %v3261_v29 = vadd.f32 %v3145_v54, %v7167_v20  ;;  %v3147_v31 = vpop.f32.mrb[86].mxu0  ;;  %v3189_v37 = vpop.f32.mrb[90].mxu1 }
 0x820   :  { %4755 = vtanh.f32 %v3238_v47  ;;  %v3793_v61 = vmul.f32 -1.442695, %v3247_v22  ;;  %v3248_v52 = vadd.f32 %v3147_v31, %v7168_v33  ;;  %v3149_v58 = vpop.f32.mrb[87].mxu0  ;;  %v4228_v35 = vpop.f32.mrb[91].mxu1 }
 0x821   :  { %4757 = vrcp.f32 %v3228_v57  ;;  %v3262_v28 = vadd.f32 %v3149_v58, %v7169_v56  ;;  %v3795_v16 = vmul.f32 -1.442695, %v3261_v29 }
 0x822   :  { %4759 = vpow2.f32 %v3793_v61  ;;  %v3794_v1 = vmul.f32 -1.442695, %v3248_v52 }
 0x823   :  { %v3796_v63 = vmul.f32 -1.442695, %v3262_v28  ;;  %v7172_v28 = vld [vmem:[#allocation54_spill] sm:$0xff] }
 0x824   :  { %4761 = vpow2.f32 %v3794_v1 }
 0x825   :  { %4763 = vpow2.f32 %v3795_v16 }
 0x828   :  { %v4752_v49 = vpop.eup %4751 }
 0x829   :  { %v4754_v7 = vpop.eup %4753  ;;  %v3241_v62 = vsub.f32 %v6609_v27, %v4752_v49 }
 0x82a   :  { %v4756_v23 = vpop.eup %4755 }
 0x82b   :  { %v4758_v46 = vpop.eup %4757  ;;  %v3242_v2 = vsub.f32 %v6616_v18, %v4756_v23  ;;  %v3243_v43 = vmul.f32 %v4754_v7, %v3241_v62 }
 0x82c   :  { %v4760_v45 = vpop.eup %4759 }
 0x82d   :  { %v3255_v25 = vadd.f32 1.0, %v4760_v45  ;;  %v3244_v47 = vmul.f32 %v4758_v46, %v3242_v2  ;;  %v3245_v57 = vadd.f32 %v4752_v49, %v3243_v43 }
 0x82e   :  { %v4762_v17 = vpop.eup %4761 }
 0x82f   :  { %4765 = vrcp.f32 %v3255_v25  ;;  %v3256_v22 = vadd.f32 1.0, %v4762_v17  ;;  %v3246_v54 = vadd.f32 %v4756_v23, %v3244_v47  ;;  %v6750_v20 = vsel %vm1839_vm10, %v3245_v57, %v6609_v27 }
 0x830   :  { %4767 = vpow2.f32 %v3796_v63  ;;  %v3293_v29 = vsel %vm1839_vm10, %v3245_v57, 0.0 }
 0x831   :  { %4769 = vrcp.f32 %v3256_v22  ;;  %v6757_v61 = vsel %vm1840_vm11, %v3246_v54, %v6616_v18  ;;  %v3294_v33 = vsel %vm1840_vm11, %v3246_v54, 0.0  ;;  %v6762_v52 = vadd.f32 %v3293_v29, %v6670_v34  ;;  %v4764_v18 = vpop.eup %4763  ;;  %v6779_v34 = vld [vmem:[%s6884_s7] ss:$0 sm:$0xff]  ;;  %s5050_s7 = smov [#allocation11]  }
 0x832   :  { %v6765_v58 = vadd.f32 %v3294_v33, %v6687_v9  ;;  %v3301_v27 = vpack.c.bf16 %v6757_v61, %v6750_v20  ;;  %v3275_v9 = vadd.f32 %v6779_v34, %v3186_v0  ;;  %v3269_v56 = vadd.f32 1.0, %v4764_v18  ;;  %s3602_s24 = sshll.u32 %s5050_s7, 4  ;;  %s3603_s24 = int_to_ptr.vmem [resolvable:$true] %s3602_s24 }
 0x833   :  { %s5007_s25 = scalar_lea.vmem %s3603_s24, 256  ;;  %p5012_p5 = scmp.lt.s32.totalorder %s3603_s24, %s3603_s24 }
 0x834   :  { %3335 = vmatmul.mubr.bf16.vlgmr.msra.gmra.mrb[28].mxu0 %v3301_v27  ;;  %4246 = vmatmul.mubr.bf16.vlgmr.msra.gmra.mrb[92].mxu1 %v3301_v27  ;;  %p5008_p4 = scmp.ne.s32.totalorder %s3603_s24, %s5007_s25  ;;  %p5013_p6 = scmp.lt.s32.totalorder %s5007_s25, %s5007_s25 }
 0x835   :  { %3388 = vmatpush1.bf16.msra.mxu0 %v6420_v36  ;;  %4250 = vmatpush3.bf16.msra.mxu1 %v6629_v41 }
 0x836   :  { %3389 = vmatprep.subr.bf16.mxu0 %v6424_v38  ;;  %4251 = vmatprep.subr.bf16.mxu1 %v7030_v60  ;;  %p5014_p7 = por %p5013_p6, %p5012_p5 }
 0x837   :  { %3419 = vmatprep.mubr.bf16.mxu0 %v7031_v48  ;;  %4265 = vmatprep.mubr.msk.bf16.mxu1 %vm5049_vm8, %v7030_v60  ;;  %v3276_v48 = vadd.f32 %v6779_v34, %v3189_v37 }
 0x838   :  { %p5015_p8 = pnand %p5014_p7, %p5008_p4 }
 0x839   :  { %v4766_v36 = vpop.eup %4765  ;;  %3390 = vmatpush1.bf16.msra.mxu0 %v6432_v19  ;;  %4252 = vmatpush3.bf16.msra.mxu1 %v6435_v14  ;;  %v7173_v19 = vld [vmem:[#allocation56_spill] sm:$0xff] }
 0x83a   :  { %v4768_v38 = vpop.eup %4767  ;;  %v3277_v41 = vmul.f32 %v4766_v36, %v3275_v9  ;;  %3391 = vmatprep.subr.bf16.mxu0 %v6439_v10  ;;  %4253 = vmatprep.subr.bf16.mxu1 %v7030_v60  ;;  %v7176_v9 = vld [vmem:[#allocation47_spill] sm:$0xff] }
 0x83b   :  { %v4770_v35 = vpop.eup %4769  ;;  %v3270_v0 = vadd.f32 1.0, %v4768_v38 }
 0x83c   :  { %v3279_v1 = vadd.f32 %v3277_v41, %v7172_v28  ;;  %v3278_v49 = vmul.f32 %v4770_v35, %v3276_v48 }
 0x83d   :  { %3392 = vmatpush1.bf16.msra.mxu0 %v6444_v15  ;;  %4254 = vmatpush3.bf16.msra.mxu1 %v6447_v21 }
 0x83e   :  { %4771 = vtanh.f32 %v3279_v1  ;;  %v3280_v14 = vadd.f32 %v3278_v49, %v7173_v19  ;;  %3393 = vmatprep.subr.bf16.mxu0 %v6451_v5  ;;  %4255 = vmatprep.subr.bf16.mxu1 %v7030_v60  ;;  %v7178_v1 = vld [vmem:[#allocation21_spill] sm:$0xff] }
 0x83f   :  { %4773 = vrcp.f32 %v3269_v56  ;;  %v7177_v56 = vld [vmem:[#allocation48_spill] sm:$0xff] }
 0x840   :  { %4775 = vtanh.f32 %v3280_v14 }
 0x841   :  { %3394 = vmatpush1.bf16.msra.mxu0 %v6455_v13  ;;  %4256 = vmatpush3.bf16.msra.mxu1 %v6458_v42  ;;  %4777 = vrcp.f32 %v3270_v0  ;;  %v7179_v0 = vld [vmem:[#allocation49_spill] sm:$0xff] }
 0x842   :  { %3395 = vmatprep.subr.bf16.mxu0 %v6461_v3  ;;  %4257 = vmatprep.subr.bf16.mxu1 %v7030_v60 }
 0x845   :  { %3396 = vmatpush1.bf16.msra.mxu0 %v6465_v32  ;;  %4258 = vmatpush3.bf16.msra.mxu1 %v6468_v51 }
 0x846   :  { %3397 = vmatprep.subr.bf16.mxu0 %v6471_v8  ;;  %4259 = vmatprep.subr.bf16.mxu1 %v7030_v60 }
 0x848   :  { %v4772_v10 = vpop.eup %4771 }
 0x849   :  { %v4774_v15 = vpop.eup %4773  ;;  %v3283_v21 = vsub.f32 %v6677_v44, %v4772_v10  ;;  %3398 = vmatpush1.bf16.msra.mxu0 %v6476_v30  ;;  %4260 = vmatpush3.bf16.msra.mxu1 %v6479_v53 }
 0x84a   :  { %v4776_v5 = vpop.eup %4775  ;;  %3399 = vmatprep.subr.bf16.mxu0 %v6482_v24  ;;  %4261 = vmatprep.subr.bf16.mxu1 %v7030_v60 }
 0x84b   :  { %v3284_v13 = vsub.f32 %v6682_v4, %v4776_v5  ;;  %v3285_v42 = vmul.f32 %v4774_v15, %v3283_v21  ;;  %v4778_v3 = vpop.eup %4777 }
 0x84d   :  { %3400 = vmatpush1.bf16.msra.mxu0 %v6487_v11  ;;  %4262 = vmatpush3.bf16.msra.mxu1 %v6490_v26  ;;  %v3286_v32 = vmul.f32 %v4778_v3, %v3284_v13  ;;  %v3287_v51 = vadd.f32 %v4772_v10, %v3285_v42 }
 0x84e   :  { %3401 = vmatprep.subr.bf16.mxu0 %v6493_v55  ;;  %4263 = vmatprep.subr.bf16.mxu1 %v7030_v60 }
 0x84f   :  { %v3288_v8 = vadd.f32 %v4776_v5, %v3286_v32  ;;  %v3297_v53 = vsel %vm1827_vm7, %v3287_v51, 0.0  ;;  %v6821_v11 = vsel %vm1827_vm7, %v3287_v51, %v6677_v44  ;;  %v7180_v5 = vld [vmem:[#allocation22_spill] sm:$0xff]  ;;  %v7181_v32 = vld [vmem:[#allocation51_spill] sm:$0xff] }
 0x850   :  { %v6814_v24 = vadd.f32 %v3297_v53, %v6762_v52 }
 0x851   :  { %3402 = vmatpush1.bf16.msra.mxu0 %v6502_v59  ;;  %4264 = vmatpush3.bf16.msra.mxu1 %v6505_v39  ;;  %v6826_v60 = vsel %vm1828_vm9, %v3288_v8, %v6682_v4  ;;  %v3298_v55 = vsel %vm1828_vm9, %v3288_v8, 0.0 }
 0x852   :  { %v6831_v37 = vadd.f32 %v3298_v55, %v6765_v58  ;;  %v3386_v59 = vpack.c.bf16 %v6826_v60, %v6821_v11 }
 0x854   :  { %3420 = vmatmul.mubr.bf16.vlgmr.msra.gmra.mrb[88].mxu0 %v3386_v59  ;;  %4266 = vmatmul.mubr.bf16.vlgmr.msra.gmra.mrb[96].mxu1 %v3386_v59 }
 0x907   :  { %v3336_v39 = vpop.f32.mrb[28].mxu0  ;;  %v3379_v7 = vpop.f32.mrb[92].mxu1 }
 0x908   :  { %v4297_v44 = vadd.f32 %v3336_v39, %v7162_v40  ;;  %v3338_v62 = vpop.f32.mrb[29].mxu0  ;;  %v4247_v23 = vpop.f32.mrb[93].mxu1  ;;  %v3511_v31 = vadd.f32 %v6735_v12, %v3379_v7 }
 0x909   :  { %v3340_v16 = vpop.f32.mrb[30].mxu0  ;;  %v3382_v4 = vpop.f32.mrb[94].mxu1  ;;  %v4298_v25 = vadd.f32 %v3338_v62, %v7163_v50 }
 0x90a   :  { %v3797_v46 = vmul.f32 -1.442695, %v4297_v44  ;;  %v4299_v2 = vadd.f32 %v3340_v16, %v7162_v40  ;;  %v3342_v43 = vpop.f32.mrb[31].mxu0  ;;  %v4248_v45 = vpop.f32.mrb[95].mxu1  ;;  %v3512_v27 = vadd.f32 %v6735_v12, %v3382_v4 }
 0x90b   :  { %v4300_v47 = vadd.f32 %v3342_v43, %v7163_v50  ;;  %v3799_v57 = vmul.f32 -1.442695, %v4298_v25 }
 0x90c   :  { %4779 = vpow2.f32 %v3797_v46  ;;  %v3798_v63 = vmul.f32 -1.442695, %v4299_v2 }
 0x90d   :  { %v3800_v22 = vmul.f32 -1.442695, %v4300_v47 }
 0x90e   :  { %4781 = vpow2.f32 %v3798_v63 }
 0x90f   :  { %4783 = vpow2.f32 %v3799_v57 }
 0x916   :  { %v4780_v17 = vpop.eup %4779 }
 0x917   :  { %v3491_v54 = vadd.f32 1.0, %v4780_v17 }
 0x918   :  { %v4782_v6 = vpop.eup %4781 }
 0x919   :  { %4785 = vrcp.f32 %v3491_v54  ;;  %v3492_v29 = vadd.f32 1.0, %v4782_v6  ;;  %v4784_v40 = vpop.eup %4783 }
 0x91a   :  { %4787 = vpow2.f32 %v3800_v22  ;;  %v3505_v50 = vadd.f32 1.0, %v4784_v40 }
 0x91b   :  { %4789 = vrcp.f32 %v3492_v29 }
 0x923   :  { %v4786_v33 = vpop.eup %4785 }
 0x924   :  { %v4788_v52 = vpop.eup %4787  ;;  %v3513_v58 = vmul.f32 %v4786_v33, %v3511_v31 }
 0x925   :  { %v4790_v18 = vpop.eup %4789  ;;  %v3506_v41 = vadd.f32 1.0, %v4788_v52  ;;  %v7184_v52 = vld [vmem:[#allocation50_spill] sm:$0xff] }
 0x926   :  { %v3515_v36 = vadd.f32 %v3513_v58, %v7176_v9  ;;  %v3514_v38 = vmul.f32 %v4790_v18, %v3512_v27 }
 0x927   :  { %v3421_v48 = vpop.f32.mrb[88].mxu0  ;;  %v3464_v35 = vpop.f32.mrb[96].mxu1 }
 0x928   :  { %4791 = vtanh.f32 %v3515_v36  ;;  %v3516_v28 = vadd.f32 %v3514_v38, %v7177_v56  ;;  %v3525_v49 = vadd.f32 %v3421_v48, %v7178_v1  ;;  %v3423_v19 = vpop.f32.mrb[89].mxu0  ;;  %v4267_v14 = vpop.f32.mrb[97].mxu1  ;;  %v3553_v22 = vadd.f32 %v6779_v34, %v3464_v35 }
 0x929   :  { %4793 = vrcp.f32 %v3505_v50  ;;  %v3539_v10 = vadd.f32 %v3423_v19, %v7179_v0  ;;  %v3425_v15 = vpop.f32.mrb[90].mxu0  ;;  %v3467_v12 = vpop.f32.mrb[98].mxu1  ;;  %v7187_v0 = vld [vmem:[#allocation80_spill] sm:$0xff] }
 0x92a   :  { %4795 = vtanh.f32 %v3516_v28  ;;  %v3801_v21 = vmul.f32 -1.442695, %v3525_v49  ;;  %v3526_v13 = vadd.f32 %v3425_v15, %v7180_v5  ;;  %v3427_v42 = vpop.f32.mrb[91].mxu0  ;;  %v4268_v3 = vpop.f32.mrb[99].mxu1  ;;  %v3554_v40 = vadd.f32 %v6779_v34, %v3467_v12 }
 0x92b   :  { %4797 = vrcp.f32 %v3506_v41  ;;  %v3540_v51 = vadd.f32 %v3427_v42, %v7181_v32  ;;  %v3803_v59 = vmul.f32 -1.442695, %v3539_v10  ;;  %v3586_v14 = vpop.permute.xlu0 %3585  ;;  %vm7188_vm8 = vcmp.eq.s32.totalorder %v7187_v0, 1  ;;  %v3591_v12 = vpop.permute.xlu1 %3590 }
 0x92c   :  { %4799 = vpow2.f32 %v3801_v21  ;;  %v3802_v8 = vmul.f32 -1.442695, %v3526_v13 }
 0x92d   :  { %v3804_v23 = vmul.f32 -1.442695, %v3540_v51 }
 0x92e   :  { %4801 = vpow2.f32 %v3802_v8 }
 0x92f   :  { %4803 = vpow2.f32 %v3803_v59 }
 0x932   :  { %v4792_v30 = vpop.eup %4791 }
 0x933   :  { %v4794_v53 = vpop.eup %4793  ;;  %v3519_v26 = vsub.f32 %v6750_v20, %v4792_v30 }
 0x934   :  { %v4796_v55 = vpop.eup %4795 }
 0x935   :  { %v4798_v39 = vpop.eup %4797  ;;  %v3521_v7 = vmul.f32 %v4794_v53, %v3519_v26  ;;  %v3520_v44 = vsub.f32 %v6757_v61, %v4796_v55 }
 0x936   :  { %v4800_v62 = vpop.eup %4799 }
 0x937   :  { %v3522_v16 = vmul.f32 %v4798_v39, %v3520_v44  ;;  %v3533_v4 = vadd.f32 1.0, %v4800_v62  ;;  %v3523_v46 = vadd.f32 %v4792_v30, %v3521_v7 }
 0x938   :  { %v4802_v2 = vpop.eup %4801 }
 0x939   :  { %4805 = vrcp.f32 %v3533_v4  ;;  %v3534_v43 = vadd.f32 1.0, %v4802_v2  ;;  %v3524_v45 = vadd.f32 %v4796_v55, %v3522_v16  ;;  %v3567_v25 = vsel %vm1535_vm4, %v3523_v46, 0.0  ;;  %v4804_v17 = vpop.eup %4803 }
 0x93a   :  { %4807 = vpow2.f32 %v3804_v23  ;;  %v3569_v20 = vadd.f32 %v3567_v25, %v6814_v24  ;;  %v3547_v33 = vadd.f32 1.0, %v4804_v17  ;;  %v7185_v24 = vld [vmem:[#allocation52_spill] sm:$0xff] }
 0x93b   :  { %4809 = vrcp.f32 %v3534_v43  ;;  %v3568_v61 = vsel %vm1536_vm5, %v3524_v45, 0.0 }
 0x93c   :  { %v3570_v57 = vadd.f32 %v3568_v61, %v6831_v37 }
 0x943   :  { %v4806_v54 = vpop.eup %4805 }
 0x944   :  { %v4808_v6 = vpop.eup %4807  ;;  %v3555_v29 = vmul.f32 %v4806_v54, %v3553_v22 }
 0x945   :  { %v4810_v31 = vpop.eup %4809  ;;  %v3548_v50 = vadd.f32 1.0, %v4808_v6 }
 0x946   :  { %v3557_v58 = vadd.f32 %v3555_v29, %v7184_v52  ;;  %v3556_v27 = vmul.f32 %v4810_v31, %v3554_v40 }
 0x948   :  { %4811 = vtanh.f32 %v3557_v58  ;;  %v3558_v18 = vadd.f32 %v3556_v27, %v7185_v24 }
 0x949   :  { %4813 = vrcp.f32 %v3547_v33 }
 0x94a   :  { %4815 = vtanh.f32 %v3558_v18 }
 0x94b   :  { %4817 = vrcp.f32 %v3548_v50 }
 0x952   :  { %v4812_v37 = vpop.eup %4811 }
 0x953   :  { %v4814_v9 = vpop.eup %4813  ;;  %v3561_v36 = vsub.f32 %v6821_v11, %v4812_v37 }
 0x954   :  { %v4816_v38 = vpop.eup %4815 }
 0x955   :  { %v3563_v41 = vmul.f32 %v4814_v9, %v3561_v36  ;;  %v3562_v34 = vsub.f32 %v6826_v60, %v4816_v38  ;;  %v4818_v48 = vpop.eup %4817 }
 0x957   :  { %v3564_v35 = vmul.f32 %v4818_v48, %v3562_v34  ;;  %v3565_v56 = vadd.f32 %v4812_v37, %v3563_v41 }
 0x959   :  { %v3566_v28 = vadd.f32 %v4816_v38, %v3564_v35  ;;  %v3571_v49 = vsel %vm1523_vm1, %v3565_v56, 0.0 }
 0x95a   :  { %v3573_v19 = vadd.f32 %v3571_v49, %v3569_v20 }
 0x95b   :  { %v3572_v10 = vsel %vm7188_vm8, %v3566_v28, 0.0 }
 0x95c   :  { %v3574_v15 = vadd.f32 %v3572_v10, %v3570_v57  ;;  %v3593_v11 = vmul.f32 %v3586_v14, %v3573_v19 }
 0x95e   :  { %v3594_v21 = vmul.f32 %v3591_v12, %v3574_v15  ;;  %3595 = vst [vmem:[#allocation11] sm:$0xff] %v3593_v11 }
 0x960   :  { %3596 = vst [vmem:[#allocation11 + $0x8] sm:$0xff] %v3594_v21 }
 0x961   :  { %5018 = shalt.err (!%p5015_p8)
}
 0x962   :  { %s5019_s29 = scalar_lea.hbm %s6885_s8, 256 }
 0x963   :  { %p5020_p9 = scmp.ne.s32.totalorder %s6885_s8, %s5019_s29  ;;  %p5023_p10 = scmp.lt.u32.totalorder %s5019_s29, %s6885_s8 }
 0x965   :  { %p5025_p11 = pnand %p5023_p10, %p5020_p9 }
 0x967   :  { %5028 = shalt.err (!%p5025_p11)
}
 0x968   :  { %s5051_s4 = smov 128   ;;  %s5052_s10 = smov 8  }
 0x969   :  { %3608 = dma.vmem_to_hbm [thread:$0]  %s3603_s24, 256, %s6885_s8, [#allocation5], %s5051_s4, %s5051_s4, %s5052_s10  }
 0x96a   :  { %5035 = dma.done.wait [#allocation5], 256  }
 0x96b   :  { %5036 = vsyncadd [#allocation5], 4294967040 }
 0x96c   :  { %3612 = vsyncpa [#allocation4], 1 }
 0x96d   :  { %3613 = vsyncpa [#allocation7], 1 }
 0x96e   :  { %3614 = vsyncpa [#allocation10], 1 }
 0x96f   :  { %3615 = vsyncpa [#allocation5], 1 }

</bundles_post_ra>
